<compile_context>
chip_gen: v5e
topology: v5e:2x2
jax: 0.10.0
libtpu: 0.0.40
codegen_flags: <defaults>
</compile_context>

<pallas_src>
import jax
import jax.numpy as jnp
from jax.experimental import pallas as pl
from jax.experimental.pallas import tpu as pltpu

LANE = 128                      # padded lane width of the hidden / class feature path
NODE_PAD = 256                  # node-axis padding multiple
FUSE_VMEM_BUDGET = 40 * 2**20   # fuse both layers when est. VMEM stays under this (v7x-safe)


def _round_up(x, m):
    return (x + m - 1) // m * m


def _divisor_tile(n, cap):
    """Largest tile <= cap that divides n (n is always a multiple of 256 here)."""
    t = min(cap, n)
    while n % t:
        t //= 2
    return t


# ---------------------------------------------------------------------------
# Path A: fully fused 2-layer forward — Ahat loaded into VMEM exactly once.
# ---------------------------------------------------------------------------
def _fused_gcn_kernel(adj_ref, x_ref, w1_ref, b1_ref, w2_ref, b2_ref, o_ref):
    adj = adj_ref[...]                                             # [n_pad, n_pad] bf16
    # layer 1: project -> aggregate -> bias -> ReLU
    p1 = jnp.dot(x_ref[...], w1_ref[...],
                 preferred_element_type=jnp.float32).astype(jnp.bfloat16)
    h1 = jnp.dot(adj, p1, preferred_element_type=jnp.float32) + b1_ref[...]
    h1 = jnp.maximum(h1, 0.0).astype(jnp.bfloat16)
    # dropout: identity in eval / inference mode.
    # layer 2: project -> aggregate -> bias
    p2 = jnp.dot(h1, w2_ref[...],
                 preferred_element_type=jnp.float32).astype(jnp.bfloat16)
    out = jnp.dot(adj, p2, preferred_element_type=jnp.float32) + b2_ref[...]
    o_ref[...] = out.astype(o_ref.dtype)


def _fused_vmem_estimate(n_pad, f_in):
    return (n_pad * n_pad * 2            # resident Ahat (bf16)
            + n_pad * f_in * 2           # X
            + (f_in + LANE) * LANE * 2   # W1, W2
            + 2 * LANE * 4               # biases
            + n_pad * LANE * 4           # output (f32)
            + 8 * n_pad * LANE * 4       # in-kernel intermediates headroom
            + (8 << 20))                 # Mosaic internal scratch headroom


def gcn_forward_fused(adj_p, x_p, w1_p, b1_p, w2_p, b2_p, *, out_dtype=jnp.float32):
    n_pad = adj_p.shape[0]
    f_in = x_p.shape[1]
    vmem_bytes = _fused_vmem_estimate(n_pad, f_in)
    flops = (2 * n_pad * f_in * LANE            # projection 1
             + 2 * n_pad * LANE * LANE          # projection 2
             + 2 * (2 * n_pad * n_pad * LANE))  # two Ahat aggregations
    bytes_accessed = (adj_p.size * adj_p.dtype.itemsize
                      + x_p.size * x_p.dtype.itemsize
                      + w1_p.size * w1_p.dtype.itemsize
                      + w2_p.size * w2_p.dtype.itemsize
                      + (b1_p.size + b2_p.size) * 4
                      + n_pad * LANE * jnp.dtype(out_dtype).itemsize)
    return pl.pallas_call(
        _fused_gcn_kernel,
        out_shape=jax.ShapeDtypeStruct((n_pad, LANE), out_dtype),
        compiler_params=pltpu.CompilerParams(
            vmem_limit_bytes=int(min(vmem_bytes, 56 * 2**20))),
        cost_estimate=pl.CostEstimate(
            flops=int(flops), transcendentals=0, bytes_accessed=int(bytes_accessed)),
    )(adj_p, x_p, w1_p, b1_p, w2_p, b2_p)


# ---------------------------------------------------------------------------
# Path B (large graphs): row-tiled projection + tiled aggregation with a
# VMEM-resident P (P is fetched from HBM once, not once per row tile).
# ---------------------------------------------------------------------------
def _project_kernel(x_ref, w_ref, o_ref):
    o_ref[...] = jnp.dot(
        x_ref[...], w_ref[...], preferred_element_type=jnp.float32
    ).astype(o_ref.dtype)


def project(x, w, *, tm, out_dtype=jnp.bfloat16):
    n, k = x.shape
    kw, f = w.shape
    assert k == kw and n % tm == 0
    return pl.pallas_call(
        _project_kernel,
        out_shape=jax.ShapeDtypeStruct((n, f), out_dtype),
        grid=(n // tm,),
        in_specs=[
            pl.BlockSpec((tm, k), lambda i: (i, 0)),
            pl.BlockSpec((kw, f), lambda i: (0, 0)),
        ],
        out_specs=pl.BlockSpec((tm, f), lambda i: (i, 0)),
        compiler_params=pltpu.CompilerParams(dimension_semantics=("parallel",)),
    )(x, w)


def _make_aggregate_kernel(apply_relu, tk):
    def kernel(adj_ref, p_ref, b_ref, o_ref, acc_ref):
        k = pl.program_id(1)

        @pl.when(k == 0)
        def _():
            acc_ref[...] = jnp.zeros_like(acc_ref)

        start = pl.multiple_of(k * tk, 128)
        acc_ref[...] += jnp.dot(
            adj_ref[...], p_ref[pl.ds(start, tk), :],
            preferred_element_type=jnp.float32)

        @pl.when(k == pl.num_programs(1) - 1)
        def _():
            r = acc_ref[...] + b_ref[...]
            if apply_relu:
                r = jnp.maximum(r, 0.0)
            o_ref[...] = r.astype(o_ref.dtype)

    return kernel


def aggregate(adj, p, b, *, tm, tk, apply_relu, out_dtype):
    n, n2 = adj.shape
    n3, f = p.shape
    assert n == n2 == n3 and n % tm == 0 and n % tk == 0
    out_isz = jnp.dtype(out_dtype).itemsize
    vmem_bytes = (2 * tm * tk * adj.dtype.itemsize   # double-buffered Ahat tile
                  + 2 * n * f * p.dtype.itemsize     # resident P (x2 safety)
                  + tm * f * 4                       # f32 accumulator
                  + 2 * tm * f * out_isz             # double-buffered output tile
                  + 4 * f * 4                        # bias
                  + (8 << 20))                       # Mosaic internal headroom
    flops = 2 * n * n * f
    bytes_accessed = (adj.size * adj.dtype.itemsize  # Ahat stream (dominant)
                      + p.size * p.dtype.itemsize    # P read once (resident)
                      + b.size * b.dtype.itemsize
                      + n * f * out_isz)             # output
    return pl.pallas_call(
        _make_aggregate_kernel(apply_relu, tk),
        out_shape=jax.ShapeDtypeStruct((n, f), out_dtype),
        grid=(n // tm, n // tk),
        in_specs=[
            pl.BlockSpec((tm, tk), lambda i, k: (i, k)),
            pl.BlockSpec((n, f), lambda i, k: (0, 0)),   # VMEM-resident P (fetched once)
            pl.BlockSpec((1, f), lambda i, k: (0, 0)),
        ],
        out_specs=pl.BlockSpec((tm, f), lambda i, k: (i, 0)),
        scratch_shapes=[pltpu.VMEM((tm, f), jnp.float32)],
        compiler_params=pltpu.CompilerParams(
            dimension_semantics=("parallel", "arbitrary"),
            vmem_limit_bytes=int(min(vmem_bytes, 56 * 2**20))),
        cost_estimate=pl.CostEstimate(
            flops=int(flops), transcendentals=0, bytes_accessed=int(bytes_accessed)),
    )(adj, p, b)


def gcn_forward_tiled(adj_p, x_p, w1_p, b1_p, w2_p, b2_p, *, out_dtype=jnp.float32):
    n_pad = adj_p.shape[0]
    # Keep >=2 row programs when possible so v7x's 2 TensorCores both get work.
    tm = _divisor_tile(n_pad, 512 if n_pad >= 1024 else max(n_pad // 2, 256))
    tk = _divisor_tile(n_pad, 4096)

    p1 = project(x_p, w1_p, tm=tm)                                  # [n_pad, 128] bf16
    h1 = aggregate(adj_p, p1, b1_p, tm=tm, tk=tk,
                   apply_relu=True, out_dtype=jnp.bfloat16)         # [n_pad, 128] bf16
    # Dropout: identity in eval / inference mode.
    p2 = project(h1, w2_p, tm=tm)                                   # [n_pad, 128] bf16
    return aggregate(adj_p, p2, b2_p, tm=tm, tk=tk,
                     apply_relu=False, out_dtype=out_dtype)         # [n_pad, 128]


# ---------------------------------------------------------------------------
# Dispatch + one-time input preparation
# ---------------------------------------------------------------------------
def gcn_forward(adj_p, x_p, w1_p, b1_p, w2_p, b2_p, *, force_path=None):
    n_pad = adj_p.shape[0]
    f_in = x_p.shape[1]
    if force_path == "fused":
        use_fused = True
    elif force_path == "tiled":
        use_fused = False
    else:
        use_fused = _fused_vmem_estimate(n_pad, f_in) <= FUSE_VMEM_BUDGET
    if use_fused:
        return gcn_forward_fused(adj_p, x_p, w1_p, b1_p, w2_p, b2_p)
    return gcn_forward_tiled(adj_p, x_p, w1_p, b1_p, w2_p, b2_p)


def prepare_gcn_inputs(adj_hat, x, w1, b1, w2, b2):
    """Pad + bf16-cast once per graph (hoisted out of the forward: the O(n^2)
    Ahat pad/cast would otherwise cost ~3x the kernel's own Ahat read per call)."""
    n, f_in = x.shape
    nh = w1.shape[1]
    nc = w2.shape[1]
    assert nh <= LANE and nc <= LANE
    n_pad = _round_up(n, NODE_PAD)
    # Padded COLUMNS of adj_p must remain zero (see invariant at top of file).
    adj_p = jnp.zeros((n_pad, n_pad), jnp.bfloat16).at[:n, :n].set(
        adj_hat.astype(jnp.bfloat16))
    x_p = jnp.zeros((n_pad, f_in), jnp.bfloat16).at[:n, :].set(x.astype(jnp.bfloat16))
    w1_p = jnp.zeros((f_in, LANE), jnp.bfloat16).at[:, :nh].set(w1.astype(jnp.bfloat16))
    b1_p = jnp.zeros((1, LANE), jnp.float32).at[:, :nh].set(
        b1.reshape(1, nh).astype(jnp.float32))
    w2_p = jnp.zeros((LANE, LANE), jnp.bfloat16).at[:nh, :nc].set(w2.astype(jnp.bfloat16))
    b2_p = jnp.zeros((1, LANE), jnp.float32).at[:, :nc].set(
        b2.reshape(1, nc).astype(jnp.float32))
    return adj_p, x_p, w1_p, b1_p, w2_p, b2_p


def build_normalized_adjacency(edge_index, num_nodes):
    """Dense Ahat = D^-1/2 (A + I) D^-1/2, matching PyG GCNConv defaults
    (add_self_loops=True, normalize=True, unit edge weights). Duplicate edges
    are summed (scatter-add), matching PyG's gcn_norm behavior."""
    src, dst = edge_index[0], edge_index[1]
    a = jnp.zeros((num_nodes, num_nodes), jnp.float32)
    a = a.at[src, dst].add(1.0)
    a = a + jnp.eye(num_nodes, dtype=jnp.float32)  # self loops
    deg = a.sum(axis=1)
    d_inv_sqrt = jnp.where(deg > 0, 1.0 / jnp.sqrt(deg), 0.0)
    return d_inv_sqrt[:, None] * a * d_inv_sqrt[None, :]


if __name__ == "__main__":
    # Small synthetic shapes consistent with the module's forward:
    # N nodes, in_channels features, nhidden=16 hidden, num_classes outputs.
    N = 512
    IN_CHANNELS = 32
    NHIDDEN = 16
    NUM_CLASSES = 8
    NUM_EDGES = 2048

    key = jax.random.PRNGKey(0)
    k_x, k_e, k_w1, k_w2 = jax.random.split(key, 4)

    # Node features (Planetoid NormalizeFeatures -> row-normalized, non-negative)
    x = jax.random.uniform(k_x, (N, IN_CHANNELS), jnp.float32)
    x = x / jnp.maximum(x.sum(axis=1, keepdims=True), 1e-12)

    # Random edge_index [2, E] (COO), made symmetric like Cora's undirected graph
    e = jax.random.randint(k_e, (2, NUM_EDGES), 0, N)
    edge_index = jnp.concatenate([e, e[::-1]], axis=1)

    # Deterministic parameter init (glorot-ish weights, zero bias as in GCNConv)
    limit1 = (6.0 / (IN_CHANNELS + NHIDDEN)) ** 0.5
    limit2 = (6.0 / (NHIDDEN + NUM_CLASSES)) ** 0.5
    w1 = jax.random.uniform(k_w1, (IN_CHANNELS, NHIDDEN), jnp.float32, -limit1, limit1)
    b1 = jnp.zeros((NHIDDEN,), jnp.float32)
    w2 = jax.random.uniform(k_w2, (NHIDDEN, NUM_CLASSES), jnp.float32, -limit2, limit2)
    b2 = jnp.zeros((NUM_CLASSES,), jnp.float32)

    adj_hat = build_normalized_adjacency(edge_index, N)

    # One-time (per graph) padding + bf16 cast, hoisted out of the forward.
    padded = prepare_gcn_inputs(adj_hat, x, w1, b1, w2, b2)

    # Default path for N=512 is the fused single-kernel forward; also exercise
    # the tiled (large-graph) path to validate it.
    out_fused = gcn_forward(*padded)[:N, :NUM_CLASSES]
    out_tiled = gcn_forward(*padded, force_path="tiled")[:N, :NUM_CLASSES]
    jax.block_until_ready((out_fused, out_tiled))

    # Pure-JAX f32 reference (kernels stream Ahat/features in bf16 -> loosened tol).
    h_ref = jnp.maximum(adj_hat @ (x @ w1) + b1[None, :], 0.0)
    out_ref = adj_hat @ (h_ref @ w2) + b2[None, :]
    for name, out in (("fused", out_fused), ("tiled", out_tiled)):
        assert out.shape == (N, NUM_CLASSES), (name, out.shape)
        max_err = float(jnp.max(jnp.abs(out - out_ref)))
        assert jnp.allclose(out, out_ref, atol=5e-3, rtol=5e-2), (name, max_err)

    print("KERNEL_OK")
</pallas_src>

<mosaic_0001>
module attributes {stable_mosaic.version = 11 : i64} {
  func.func @_fused_gcn_kernel(%arg0: memref<512x512xbf16, #tpu.memory_space<vmem>>, %arg1: memref<512x32xbf16, #tpu.memory_space<vmem>>, %arg2: memref<32x128xbf16, #tpu.memory_space<vmem>>, %arg3: memref<1x128xf32, #tpu.memory_space<vmem>>, %arg4: memref<128x128xbf16, #tpu.memory_space<vmem>>, %arg5: memref<1x128xf32, #tpu.memory_space<vmem>>, %arg6: memref<512x128xf32, #tpu.memory_space<vmem>>) attributes {dimension_semantics = [], scalar_prefetch = 0 : i64, scratch_operands = 0 : i64, tpu.core_type = #tpu.core_type<tc>} {
    %c0 = arith.constant 0 : index
    %c0_0 = arith.constant 0 : index
    %0 = vector.load %arg0[%c0, %c0_0] : memref<512x512xbf16, #tpu.memory_space<vmem>>, vector<512x512xbf16>
    %c0_1 = arith.constant 0 : index
    %c0_2 = arith.constant 0 : index
    %1 = vector.load %arg1[%c0_1, %c0_2] : memref<512x32xbf16, #tpu.memory_space<vmem>>, vector<512x32xbf16>
    %c0_3 = arith.constant 0 : index
    %c0_4 = arith.constant 0 : index
    %2 = vector.load %arg2[%c0_3, %c0_4] : memref<32x128xbf16, #tpu.memory_space<vmem>>, vector<32x128xbf16>
    %cst = arith.constant dense<0.000000e+00> : vector<512x128xf32>
    %3 = tpu.matmul %1, %2, %cst {dimension_numbers = #tpu.dot_dimension_numbers<[1], [0], [0], [1], [0, 0, 1, 1], [], []>} : vector<512x32xbf16>, vector<32x128xbf16>, vector<512x128xf32> -> vector<512x128xf32>
    %4 = arith.truncf %3 : vector<512x128xf32> to vector<512x128xbf16>
    %cst_5 = arith.constant dense<0.000000e+00> : vector<512x128xf32>
    %5 = tpu.matmul %0, %4, %cst_5 {dimension_numbers = #tpu.dot_dimension_numbers<[1], [0], [0], [1], [0, 0, 1, 1], [], []>} : vector<512x512xbf16>, vector<512x128xbf16>, vector<512x128xf32> -> vector<512x128xf32>
    %c0_6 = arith.constant 0 : index
    %c0_7 = arith.constant 0 : index
    %6 = vector.load %arg3[%c0_6, %c0_7] : memref<1x128xf32, #tpu.memory_space<vmem>>, vector<1x128xf32>
    %7 = vector.broadcast %6 : vector<1x128xf32> to vector<512x128xf32>
    %8 = arith.addf %5, %7 : vector<512x128xf32>
    %cst_8 = arith.constant 0.000000e+00 : f32
    %9 = vector.broadcast %cst_8 : f32 to vector<512x128xf32>
    %10 = arith.maximumf %8, %9 : vector<512x128xf32>
    %11 = arith.truncf %10 : vector<512x128xf32> to vector<512x128xbf16>
    %c0_9 = arith.constant 0 : index
    %c0_10 = arith.constant 0 : index
    %12 = vector.load %arg4[%c0_9, %c0_10] : memref<128x128xbf16, #tpu.memory_space<vmem>>, vector<128x128xbf16>
    %cst_11 = arith.constant dense<0.000000e+00> : vector<512x128xf32>
    %13 = tpu.matmul %11, %12, %cst_11 {dimension_numbers = #tpu.dot_dimension_numbers<[1], [0], [0], [1], [0, 0, 1, 1], [], []>} : vector<512x128xbf16>, vector<128x128xbf16>, vector<512x128xf32> -> vector<512x128xf32>
    %14 = arith.truncf %13 : vector<512x128xf32> to vector<512x128xbf16>
    %cst_12 = arith.constant dense<0.000000e+00> : vector<512x128xf32>
    %15 = tpu.matmul %0, %14, %cst_12 {dimension_numbers = #tpu.dot_dimension_numbers<[1], [0], [0], [1], [0, 0, 1, 1], [], []>} : vector<512x512xbf16>, vector<512x128xbf16>, vector<512x128xf32> -> vector<512x128xf32>
    %c0_13 = arith.constant 0 : index
    %c0_14 = arith.constant 0 : index
    %16 = vector.load %arg5[%c0_13, %c0_14] : memref<1x128xf32, #tpu.memory_space<vmem>>, vector<1x128xf32>
    %17 = vector.broadcast %16 : vector<1x128xf32> to vector<512x128xf32>
    %18 = arith.addf %15, %17 : vector<512x128xf32>
    %c0_15 = arith.constant 0 : index
    %c0_16 = arith.constant 0 : index
    %19 = vector.load %arg6[%c0_15, %c0_16] : memref<512x128xf32, #tpu.memory_space<vmem>>, vector<512x128xf32>
    tpu.vector_store %arg6[%c0_15, %c0_16], %18 {strides = array<i32>} : memref<512x128xf32, #tpu.memory_space<vmem>>, vector<512x128xf32>,
    return
  }
}

</mosaic_0001>

<bundles_post_ra>
// kernel: tpu_custom_call.1
= control target key start
LH: loop header
LB: loop body
LE: loop exit
PB: predicated region body
PF: predicated region fallthrough
CT: control target
= control target key end

     0   :  { %11 = vsyncpa [#allocation3], 0  ;;  %s5639_s0 = inlined_call_operand.hbm [shape: bf16[512,512], index: 0, kind: input, shape index: {}]   ;;  %s5640_s1 = inlined_call_operand.vmem [shape: bf16[512,32], index: 1, kind: input, shape index: {}]   ;;  %s5641_s2 = inlined_call_operand.vmem [shape: bf16[32,128], index: 2, kind: input, shape index: {}]   ;;  %s5642_s3 = inlined_call_operand.vmem [shape: f32[1,128], index: 3, kind: input, shape index: {}]   ;;  %s5643_s4 = inlined_call_operand.vmem [shape: bf16[128,128], index: 4, kind: input, shape index: {}]   ;;  %s5644_s5 = inlined_call_operand.vmem [shape: f32[1,128], index: 5, kind: input, shape index: {}]   ;;  %s5645_s6 = inlined_call_operand.hbm [shape: f32[512,128], index: 6, kind: output, shape index: {}]  }
   0x1   :  { %12 = vsyncpa [#allocation4], 0  ;;  %s17_s23 = sshll.u32 %s5639_s0, 4  ;;  %s4105_s24 = smov [#allocation2]   ;;  %s18_s23 = int_to_ptr.hbm [resolvable:$true] %s17_s23 }
   0x2   :  { %s19_s25 = sshll.u32 %s4105_s24, 4  ;;  %s4106_s26 = smov 256   ;;  %s20_s25 = int_to_ptr.vmem [resolvable:$true] %s19_s25 }
   0x3   :  { %s4107_s27 = smov 16  }
   0x4   :  { %25 = dma.hbm_to_vmem [thread:$0]  %s18_s23, 16384, %s20_s25, [#allocation3], %s4106_s26, %s4106_s26, %s4107_s27  }
   0x5   :  { %4101 = dma.done.wait [#allocation3], 16384  }
   0x6   :  { %4102 = vsyncadd [#allocation3], 4294950912  ;;  %v4024_v0 = vld [vmem:[%s5641_s2 + $0x8] sm:$0xff]  ;;  %v4023_v1 = vld [vmem:[%s5641_s2] sm:$0xff]  ;;  %vm409_vm0 = vcmask 261120   ;;  %s3138_s16 = sshll.u32 %s5645_s6, 4  ;;  %s3139_s16 = int_to_ptr.hbm [resolvable:$true] %s3138_s16 }
   0x7   :  { %512 = vmatpush.bf16.msra.mxu0 %v4024_v0  ;;  %4033 = vmatpush.bf16.msra.mxu3 %v4024_v0  ;;  %v3991_v2 = vld [vmem:[%s5640_s1] sm:$0xff]  ;;  %v4008_v3 = vld [vmem:[%s5640_s1 + $0x88] sm:$0xff]  ;;  %v4009_v5 = vld [vmem:[%s5640_s1 + $0x90] sm:$0xff]  ;;  %s4109_s17 = smov 128  }
   0x8   :  { %v3992_v4 = vld [vmem:[%s5640_s1 + $0x8] sm:$0xff]  ;;  %v3993_v6 = vld [vmem:[%s5640_s1 + $0x10] sm:$0xff]  ;;  %v4010_v7 = vld [vmem:[%s5640_s1 + $0x98] sm:$0xff] }
   0x9   :  { %v3994_v8 = vld [vmem:[%s5640_s1 + $0x18] sm:$0xff]  ;;  %v4011_v9 = vld [vmem:[%s5640_s1 + $0xa0] sm:$0xff]  ;;  %v4012_v11 = vld [vmem:[%s5640_s1 + $0xa8] sm:$0xff] }
   0xa   :  { %v3995_v10 = vld [vmem:[%s5640_s1 + $0x20] sm:$0xff]  ;;  %v3996_v12 = vld [vmem:[%s5640_s1 + $0x28] sm:$0xff]  ;;  %v4013_v13 = vld [vmem:[%s5640_s1 + $0xb0] sm:$0xff] }
   0xb   :  { %513 = vmatpush.bf16.msra.mxu0 %v4023_v1  ;;  %4034 = vmatpush.bf16.msra.mxu3 %v4023_v1  ;;  %v3997_v14 = vld [vmem:[%s5640_s1 + $0x30] sm:$0xff]  ;;  %v4014_v15 = vld [vmem:[%s5640_s1 + $0xb8] sm:$0xff]  ;;  %v4015_v17 = vld [vmem:[%s5640_s1 + $0xc0] sm:$0xff] }
   0xc   :  { %v3998_v16 = vld [vmem:[%s5640_s1 + $0x38] sm:$0xff]  ;;  %v3999_v18 = vld [vmem:[%s5640_s1 + $0x40] sm:$0xff]  ;;  %v4016_v19 = vld [vmem:[%s5640_s1 + $0xc8] sm:$0xff] }
   0xd   :  { %v4000_v25 = vld [vmem:[%s5640_s1 + $0x48] sm:$0xff]  ;;  %v4017_v26 = vld [vmem:[%s5640_s1 + $0xd0] sm:$0xff]  ;;  %v4018_v33 = vld [vmem:[%s5640_s1 + $0xd8] sm:$0xff] }
   0xe   :  { %3287 = vmatmul.msk.bf16.vlgmr.msra.gmra.mxu0 %vm409_vm0, %v3991_v2  ;;  %3304 = vmatmul.msk.bf16.vlgmr.msra.gmra.mxu3 %vm409_vm0, %v4008_v3  ;;  %v4001_v32 = vld [vmem:[%s5640_s1 + $0x50] sm:$0xff]  ;;  %v4002_v39 = vld [vmem:[%s5640_s1 + $0x58] sm:$0xff]  ;;  %v4019_v40 = vld [vmem:[%s5640_s1 + $0xe0] sm:$0xff] }
   0xf   :  { %v4003_v46 = vld [vmem:[%s5640_s1 + $0x60] sm:$0xff]  ;;  %v4020_v47 = vld [vmem:[%s5640_s1 + $0xe8] sm:$0xff]  ;;  %v4021_v53 = vld [vmem:[%s5640_s1 + $0xf0] sm:$0xff] }
  0x10   :  { %v4004_v52 = vld [vmem:[%s5640_s1 + $0x68] sm:$0xff]  ;;  %v4005_v58 = vld [vmem:[%s5640_s1 + $0x70] sm:$0xff]  ;;  %v4022_v59 = vld [vmem:[%s5640_s1 + $0xf8] sm:$0xff] }
  0x11   :  { %v4006_v0 = vld [vmem:[%s5640_s1 + $0x78] sm:$0xff] }
  0x1e   :  { %3288 = vmatmul.msk.bf16.gmra.mxu0 %vm409_vm0, %v3992_v4  ;;  %3305 = vmatmul.msk.bf16.gmra.mxu3 %vm409_vm0, %v4009_v5 }
  0x2e   :  { %3289 = vmatmul.msk.bf16.gmra.mxu0 %vm409_vm0, %v3993_v6  ;;  %3306 = vmatmul.msk.bf16.gmra.mxu3 %vm409_vm0, %v4010_v7 }
  0x3e   :  { %3290 = vmatmul.msk.bf16.gmra.mxu0 %vm409_vm0, %v3994_v8  ;;  %3307 = vmatmul.msk.bf16.gmra.mxu3 %vm409_vm0, %v4011_v9 }
  0x4e   :  { %3291 = vmatmul.msk.bf16.gmra.mxu0 %vm409_vm0, %v3995_v10  ;;  %3308 = vmatmul.msk.bf16.gmra.mxu3 %vm409_vm0, %v4012_v11 }
  0x5e   :  { %3292 = vmatmul.msk.bf16.gmra.mxu0 %vm409_vm0, %v3996_v12  ;;  %3309 = vmatmul.msk.bf16.gmra.mxu3 %vm409_vm0, %v4013_v13 }
  0x6e   :  { %3293 = vmatmul.msk.bf16.gmra.mxu0 %vm409_vm0, %v3997_v14  ;;  %3310 = vmatmul.msk.bf16.gmra.mxu3 %vm409_vm0, %v4014_v15 }
  0x7e   :  { %3294 = vmatmul.msk.bf16.gmra.mxu0 %vm409_vm0, %v3998_v16  ;;  %3311 = vmatmul.msk.bf16.gmra.mxu3 %vm409_vm0, %v4015_v17 }
  0x8b   :  { %v515_v20 = vpop.f32.mrf.mxu0 }
  0x8e   :  { %3295 = vmatmul.msk.bf16.gmra.mxu0 %vm409_vm0, %v3999_v18  ;;  %3312 = vmatmul.msk.bf16.gmra.mxu3 %vm409_vm0, %v4016_v19 }
  0x91   :  { %v4227_v21 = vpop.f32.mrf.mxu3 }
  0x93   :  { %v517_v22 = vpop.f32.mrf.mxu0 }
  0x94   :  { %v4229_v23 = vpack.c.bf16 %v517_v22, %v515_v20  ;;  %v3929_v22 = vld [vmem:[#allocation2 + $0x20c] sm:$0xf0] }
  0x99   :  { %v4231_v24 = vpop.f32.mrf.mxu3 }
  0x9a   :  { %v692_v16 = vpack.c.bf16 %v4231_v24, %v4227_v21  ;;  %v3577_v21 = vld [vmem:[#allocation2 + $0x200] sm:$0xf] }
  0x9b   :  { %v520_v27 = vpop.f32.mrf.mxu0 }
  0x9e   :  { %3296 = vmatmul.msk.bf16.gmra.mxu0 %vm409_vm0, %v4000_v25  ;;  %3313 = vmatmul.msk.bf16.gmra.mxu3 %vm409_vm0, %v4017_v26  ;;  %v4317_v25 = vor.u32 %v3929_v22, %v3577_v21  ;;  %v3689_v21 = vld [vmem:[#allocation2 + $0x2e0] sm:$0xf]  ;;  %v3957_v22 = vld [vmem:[#allocation2 + $0x2ec] sm:$0xf0] }
  0xa0   :  { %5753 = vst [vmem:[#allocation8_spill] sm:$0xff] %v4317_v25 }
  0xa1   :  { %v4241_v28 = vpop.f32.mrf.mxu3 }
  0xa3   :  { %v522_v29 = vpop.f32.mrf.mxu0 }
  0xa4   :  { %v4243_v30 = vpack.c.bf16 %v522_v29, %v520_v27  ;;  %v3593_v29 = vld [vmem:[#allocation2 + $0x220] sm:$0xf] }
  0xa9   :  { %v4245_v31 = vpop.f32.mrf.mxu3 }
  0xaa   :  { %v693_v14 = vpack.c.bf16 %v4245_v31, %v4241_v28 }
  0xab   :  { %v525_v34 = vpop.f32.mrf.mxu0 }
  0xae   :  { %3297 = vmatmul.msk.bf16.gmra.mxu0 %vm409_vm0, %v4001_v32  ;;  %3314 = vmatmul.msk.bf16.gmra.mxu3 %vm409_vm0, %v4018_v33 }
  0xb1   :  { %v610_v35 = vpop.f32.mrf.mxu3 }
  0xb3   :  { %v527_v36 = vpop.f32.mrf.mxu0 }
  0xb4   :  { %v4255_v37 = vpack.c.bf16 %v527_v36, %v525_v34  ;;  %v3937_v36 = vld [vmem:[#allocation2 + $0x24c] sm:$0xf0] }
  0xb9   :  { %v612_v38 = vpop.f32.mrf.mxu3 }
  0xba   :  { %v694_v10 = vpack.c.bf16 %v612_v38, %v610_v35 }
  0xbb   :  { %v530_v41 = vpop.f32.mrf.mxu0 }
  0xbe   :  { %3298 = vmatmul.msk.bf16.gmra.mxu0 %vm409_vm0, %v4002_v39  ;;  %3315 = vmatmul.msk.bf16.gmra.mxu3 %vm409_vm0, %v4019_v40 }
  0xc1   :  { %v615_v42 = vpop.f32.mrf.mxu3 }
  0xc3   :  { %v532_v43 = vpop.f32.mrf.mxu0 }
  0xc4   :  { %v678_v44 = vpack.c.bf16 %v532_v43, %v530_v41  ;;  %v3941_v43 = vld [vmem:[#allocation2 + $0x26c] sm:$0xf0] }
  0xc9   :  { %v617_v45 = vpop.f32.mrf.mxu3 }
  0xca   :  { %v695_v8 = vpack.c.bf16 %v617_v45, %v615_v42  ;;  %v3625_v42 = vld [vmem:[#allocation2 + $0x260] sm:$0xf] }
  0xcb   :  { %v535_v48 = vpop.f32.mrf.mxu0  ;;  %v4340_v45 = vor.u32 %v3941_v43, %v3625_v42  ;;  %v3873_v42 = vld [vmem:[#allocation2 + $0x4c] sm:$0xf0] }
  0xcd   :  { %5756 = vst [vmem:[#allocation11_spill] sm:$0xff] %v4340_v45 }
  0xce   :  { %3299 = vmatmul.msk.bf16.gmra.mxu0 %vm409_vm0, %v4003_v46  ;;  %3316 = vmatmul.msk.bf16.gmra.mxu3 %vm409_vm0, %v4020_v47 }
  0xd1   :  { %v620_v49 = vpop.f32.mrf.mxu3 }
  0xd3   :  { %v537_v50 = vpop.f32.mrf.mxu0 }
  0xd4   :  { %v679_v15 = vpack.c.bf16 %v537_v50, %v535_v48  ;;  %v3945_v50 = vld [vmem:[#allocation2 + $0x28c] sm:$0xf0] }
  0xd9   :  { %v622_v51 = vpop.f32.mrf.mxu3 }
  0xda   :  { %v696_v4 = vpack.c.bf16 %v622_v51, %v620_v49  ;;  %v3641_v49 = vld [vmem:[#allocation2 + $0x280] sm:$0xf] }
  0xdb   :  { %v540_v54 = vpop.f32.mrf.mxu0 }
  0xde   :  { %3300 = vmatmul.msk.bf16.gmra.mxu0 %vm409_vm0, %v4004_v52  ;;  %3317 = vmatmul.msk.bf16.gmra.mxu3 %vm409_vm0, %v4021_v53  ;;  %v4343_v52 = vor.u32 %v3945_v50, %v3641_v49  ;;  %v3877_v49 = vld [vmem:[#allocation2 + $0x6c] sm:$0xf0] }
  0xe0   :  { %5757 = vst [vmem:[#allocation12_spill] sm:$0xff] %v4343_v52 }
  0xe1   :  { %v625_v55 = vpop.f32.mrf.mxu3 }
  0xe3   :  { %v542_v56 = vpop.f32.mrf.mxu0 }
  0xe4   :  { %v680_v13 = vpack.c.bf16 %v542_v56, %v540_v54  ;;  %v3657_v56 = vld [vmem:[#allocation2 + $0x2a0] sm:$0xf] }
  0xe9   :  { %v627_v57 = vpop.f32.mrf.mxu3 }
  0xea   :  { %v697_v3 = vpack.c.bf16 %v627_v57, %v625_v55  ;;  %v3949_v57 = vld [vmem:[#allocation2 + $0x2ac] sm:$0xf0] }
  0xeb   :  { %v545_v60 = vpop.f32.mrf.mxu0 }
  0xee   :  { %3301 = vmatmul.msk.bf16.gmra.mxu0 %vm409_vm0, %v4005_v58  ;;  %3318 = vmatmul.msk.bf16.gmra.mxu3 %vm409_vm0, %v4022_v59  ;;  %v4346_v59 = vor.u32 %v3949_v57, %v3657_v56  ;;  %v3385_v57 = vld [vmem:[#allocation2 + $0x80] sm:$0xf] }
  0xf0   :  { %5758 = vst [vmem:[#allocation13_spill] sm:$0xff] %v4346_v59 }
  0xf1   :  { %v630_v61 = vpop.f32.mrf.mxu3 }
  0xf3   :  { %v547_v62 = vpop.f32.mrf.mxu0 }
  0xf4   :  { %v681_v9 = vpack.c.bf16 %v547_v62, %v545_v60  ;;  %v4007_v60 = vld [vmem:[%s5640_s1 + $0x80] sm:$0xff]  ;;  %s4110_s1 = smov 8  }
  0xf9   :  { %v632_v63 = vpop.f32.mrf.mxu3 }
  0xfa   :  { %v698_v1 = vpack.c.bf16 %v632_v63, %v630_v61 }
  0xfb   :  { %v550_v2 = vpop.f32.mrf.mxu0 }
  0xfc   :  { %1689 = vmatpush.bf16.msrb.mxu3 %v698_v1 }
  0xfe   :  { %3302 = vmatmul.msk.bf16.gmra.mxu0 %vm409_vm0, %v4006_v0 }
 0x100   :  { %1690 = vmatpush.bf16.msrb.mxu3 %v697_v3  ;;  %v3953_v3 = vld [vmem:[#allocation2 + $0x2cc] sm:$0xf0] }
 0x101   :  { %v4293_v5 = vpop.f32.mrf.mxu3 }
 0x103   :  { %v552_v6 = vpop.f32.mrf.mxu0 }
 0x104   :  { %v682_v7 = vpack.c.bf16 %v552_v6, %v550_v2  ;;  %1691 = vmatpush.bf16.msrb.mxu3 %v696_v4  ;;  %v3673_v2 = vld [vmem:[#allocation2 + $0x2c0] sm:$0xf] }
 0x105   :  { %v4353_v6 = vor.u32 %v3953_v3, %v3673_v2  ;;  %v3401_v2 = vld [vmem:[#allocation2 + $0xa0] sm:$0xf]  ;;  %v3885_v3 = vld [vmem:[#allocation2 + $0xac] sm:$0xf0] }
 0x106   :  { %1351 = vmatpush.bf16.msra.mxu1 %v682_v7  ;;  %4035 = vmatpush.bf16.msra.mxu2 %v682_v7 }
 0x107   :  { %5759 = vst [vmem:[#allocation14_spill] sm:$0xff] %v4353_v6 }
 0x108   :  { %1692 = vmatpush.bf16.msrb.mxu3 %v695_v8 }
 0x109   :  { %v4295_v11 = vpop.f32.mrf.mxu3 }
 0x10a   :  { %1352 = vmatpush.bf16.msra.mxu1 %v681_v9  ;;  %4036 = vmatpush.bf16.msra.mxu2 %v681_v9 }
 0x10b   :  { %v4297_v12 = vpop.f32.mrf.mxu0 }
 0x10c   :  { %1693 = vmatpush.bf16.msrb.mxu3 %v694_v10 }
 0x10e   :  { %1353 = vmatpush.bf16.msra.mxu1 %v680_v13  ;;  %4037 = vmatpush.bf16.msra.mxu2 %v680_v13 }
 0x10f   :  { %3303 = vmatmul.msk.bf16.gmra.mxu0 %vm409_vm0, %v4007_v60 }
 0x110   :  { %1694 = vmatpush.bf16.msrb.mxu3 %v693_v14 }
 0x111   :  { %v4303_v17 = vpop.f32.mrf.mxu3 }
 0x112   :  { %1354 = vmatpush.bf16.msra.mxu1 %v679_v15  ;;  %4038 = vmatpush.bf16.msra.mxu2 %v679_v15 }
 0x113   :  { %v4305_v18 = vpop.f32.mrf.mxu0 }
 0x114   :  { %1695 = vmatpush.bf16.msrb.mxu3 %v692_v16 }
 0x116   :  { %1355 = vmatpush.bf16.msra.mxu1 %v678_v44  ;;  %4039 = vmatpush.bf16.msra.mxu2 %v678_v44 }
 0x119   :  { %v4307_v19 = vpop.f32.mrf.mxu3 }
 0x11a   :  { %1356 = vmatpush.bf16.msra.mxu1 %v4255_v37  ;;  %4040 = vmatpush.bf16.msra.mxu2 %v4255_v37 }
 0x11b   :  { %v4311_v20 = vpop.f32.mrf.mxu0 }
 0x11e   :  { %1357 = vmatpush.bf16.msra.mxu1 %v4243_v30  ;;  %4041 = vmatpush.bf16.msra.mxu2 %v4243_v30  ;;  %v3933_v30 = vld [vmem:[#allocation2 + $0x22c] sm:$0xf0] }
 0x11f   :  { %v4328_v32 = vor.u32 %v3933_v30, %v3593_v29  ;;  %v700_v29 = vpack.c.bf16 %v4307_v19, %v4303_v17  ;;  %v3321_v30 = vld [vmem:[#allocation2] sm:$0xf] }
 0x121   :  { %v4315_v24 = vpop.f32.mrf.mxu3  ;;  %5754 = vst [vmem:[#allocation9_spill] sm:$0xff] %v4328_v32 }
 0x122   :  { %1358 = vmatpush.bf16.msra.mxu1 %v4229_v23  ;;  %4042 = vmatpush.bf16.msra.mxu2 %v4229_v23  ;;  %v3609_v23 = vld [vmem:[#allocation2 + $0x240] sm:$0xf] }
 0x123   :  { %v4321_v26 = vpop.f32.mrf.mxu0  ;;  %v4335_v38 = vor.u32 %v3937_v36, %v3609_v23  ;;  %v3865_v23 = vld [vmem:[#allocation2 + $0xc] sm:$0xf0]  ;;  %v4360_v36 = vor.u32 %v3957_v22, %v3689_v21 }
 0x124   :  { %v684_v19 = vpack.c.bf16 %v4321_v26, %v4311_v20  ;;  %v3721_v20 = vld [vmem:[#allocation2 + $0x320] sm:$0xf]  ;;  %v3965_v26 = vld [vmem:[#allocation2 + $0x32c] sm:$0xf0] }
 0x125   :  { %1439 = vmatmul.bf16.vlgmr.msra.gmra.mxu2 %v4317_v25  ;;  %5755 = vst [vmem:[#allocation10_spill] sm:$0xff] %v4335_v38 }
 0x126   :  { %5760 = vst [vmem:[#allocation15_spill] sm:$0xff] %v4360_v36 }
 0x129   :  { %v4324_v27 = vpop.f32.mrf.mxu3 }
 0x12a   :  { %v701_v15 = vpack.c.bf16 %v4324_v27, %v4315_v24  ;;  %v699_v24 = vpack.c.bf16 %v4295_v11, %v4293_v5  ;;  %v3705_v27 = vld [vmem:[#allocation2 + $0x300] sm:$0xf] }
 0x12b   :  { %v4326_v28 = vpop.f32.mrf.mxu0 }
 0x131   :  { %v650_v31 = vpop.f32.mrf.mxu3 }
 0x133   :  { %v4330_v33 = vpop.f32.mrf.mxu0 }
 0x134   :  { %v685_v17 = vpack.c.bf16 %v4330_v33, %v4326_v28 }
 0x135   :  { %1444 = vmatmul.bf16.gmra.mxu2 %v4328_v32 }
 0x139   :  { %v652_v34 = vpop.f32.mrf.mxu3 }
 0x13a   :  { %v702_v13 = vpack.c.bf16 %v652_v34, %v650_v31  ;;  %v3961_v34 = vld [vmem:[#allocation2 + $0x30c] sm:$0xf0] }
 0x13b   :  { %v4333_v35 = vpop.f32.mrf.mxu0  ;;  %v4376_v5 = vor.u32 %v3961_v34, %v3705_v27  ;;  %v3985_v27 = vld [vmem:[#allocation2 + $0x3cc] sm:$0xf0] }
 0x13d   :  { %5761 = vst [vmem:[#allocation16_spill] sm:$0xff] %v4376_v5 }
 0x141   :  { %v655_v37 = vpop.f32.mrf.mxu3 }
 0x143   :  { %v4337_v39 = vpop.f32.mrf.mxu0 }
 0x144   :  { %v686_v31 = vpack.c.bf16 %v4337_v39, %v4333_v35  ;;  %v683_v35 = vpack.c.bf16 %v4305_v18, %v4297_v12  ;;  %v3337_v39 = vld [vmem:[#allocation2 + $0x20] sm:$0xf]  ;;  %v4386_v12 = vor.u32 %v3965_v26, %v3721_v20  ;;  %v3864_v26 = vld [vmem:[#allocation2 + $0xc] sm:$0xf] }
 0x145   :  { %1449 = vmatmul.bf16.gmra.mxu2 %v4335_v38  ;;  %v3886_v38 = vld [vmem:[#allocation2 + $0xb4] sm:$0xf0] }
 0x146   :  { %5763 = vst [vmem:[#allocation18_spill] sm:$0xff] %v4386_v12 }
 0x149   :  { %v657_v40 = vpop.f32.mrf.mxu3 }
 0x14a   :  { %v703_v9 = vpack.c.bf16 %v657_v40, %v655_v37  ;;  %v4362_v37 = vor.u32 %v3865_v23, %v3321_v30  ;;  %v3869_v40 = vld [vmem:[#allocation2 + $0x2c] sm:$0xf0]  ;;  %v3329_v23 = vld [vmem:[#allocation2 + $0x8] sm:$0xf] }
 0x14b   :  { %v575_v41 = vpop.f32.mrf.mxu0  ;;  %v4378_v11 = vor.u32 %v3869_v40, %v3337_v39  ;;  %v3893_v39 = vld [vmem:[#allocation2 + $0xec] sm:$0xf0] }
 0x14c   :  { %1359 = vmatmul.bf16.vlgmr.msra.gmra.mxu1 %v4362_v37 }
 0x14d   :  { %5762 = vst [vmem:[#allocation17_spill] sm:$0xff] %v4378_v11 }
 0x151   :  { %v660_v44 = vpop.f32.mrf.mxu3 }
 0x153   :  { %v577_v46 = vpop.f32.mrf.mxu0 }
 0x154   :  { %v687_v16 = vpack.c.bf16 %v577_v46, %v575_v41  ;;  %v3353_v41 = vld [vmem:[#allocation2 + $0x40] sm:$0xf]  ;;  %v3969_v46 = vld [vmem:[#allocation2 + $0x34c] sm:$0xf0] }
 0x155   :  { %1454 = vmatmul.bf16.gmra.mxu2 %v4340_v45  ;;  %v4388_v18 = vor.u32 %v3873_v42, %v3353_v41  ;;  %v3331_v41 = vld [vmem:[#allocation2 + $0x18] sm:$0xf0]  ;;  %v3409_v45 = vld [vmem:[#allocation2 + $0xa8] sm:$0xf] }
 0x156   :  { %v4445_v42 = vor.u32 %v3864_v26, %v3331_v41  ;;  %v3901_v26 = vld [vmem:[#allocation2 + $0x12c] sm:$0xf0] }
 0x157   :  { %5764 = vst [vmem:[#allocation19_spill] sm:$0xff] %v4388_v18 }
 0x158   :  { %5776 = vst [vmem:[#allocation31_spill] sm:$0xff] %v4445_v42 }
 0x159   :  { %v662_v47 = vpop.f32.mrf.mxu3 }
 0x15a   :  { %v704_v4 = vpack.c.bf16 %v662_v47, %v660_v44  ;;  %v3737_v44 = vld [vmem:[#allocation2 + $0x340] sm:$0xf] }
 0x15b   :  { %v580_v48 = vpop.f32.mrf.mxu0  ;;  %v4396_v50 = vor.u32 %v3969_v46, %v3737_v44  ;;  %v3345_v46 = vld [vmem:[#allocation2 + $0x28] sm:$0xf] }
 0x15c   :  { %1364 = vmatmul.bf16.gmra.mxu1 %v4378_v11  ;;  %v3908_v11 = vld [vmem:[#allocation2 + $0x16c] sm:$0xf] }
 0x15d   :  { %5765 = vst [vmem:[#allocation20_spill] sm:$0xff] %v4396_v50 }
 0x161   :  { %v665_v51 = vpop.f32.mrf.mxu3 }
 0x163   :  { %v582_v53 = vpop.f32.mrf.mxu0 }
 0x164   :  { %v688_v14 = vpack.c.bf16 %v582_v53, %v580_v48  ;;  %v3369_v48 = vld [vmem:[#allocation2 + $0x60] sm:$0xf] }
 0x165   :  { %1459 = vmatmul.bf16.gmra.mxu2 %v4343_v52 }
 0x169   :  { %v667_v54 = vpop.f32.mrf.mxu3 }
 0x16a   :  { %v705_v1 = vpack.c.bf16 %v667_v54, %v665_v51  ;;  %v4398_v51 = vor.u32 %v3877_v49, %v3369_v48  ;;  %v3753_v54 = vld [vmem:[#allocation2 + $0x360] sm:$0xf]  ;;  %v3870_v48 = vld [vmem:[#allocation2 + $0x34] sm:$0xf0] }
 0x16b   :  { %v585_v55 = vpop.f32.mrf.mxu0  ;;  %v4450_v49 = vor.u32 %v3870_v48, %v3345_v46  ;;  %v3872_v48 = vld [vmem:[#allocation2 + $0x4c] sm:$0xf] }
 0x16c   :  { %1369 = vmatmul.bf16.gmra.mxu1 %v4388_v18  ;;  %5766 = vst [vmem:[#allocation21_spill] sm:$0xff] %v4398_v51 }
 0x16d   :  { %5777 = vst [vmem:[#allocation32_spill] sm:$0xff] %v4450_v49 }
 0x171   :  { %v670_v58 = vpop.f32.mrf.mxu3 }
 0x173   :  { %v587_v61 = vpop.f32.mrf.mxu0 }
 0x174   :  { %v689_v10 = vpack.c.bf16 %v587_v61, %v585_v55  ;;  %v3973_v55 = vld [vmem:[#allocation2 + $0x36c] sm:$0xf0] }
 0x175   :  { %1464 = vmatmul.bf16.gmra.mxu2 %v4346_v59  ;;  %v4406_v60 = vor.u32 %v3973_v55, %v3753_v54  ;;  %v3817_v54 = vld [vmem:[#allocation2 + $0x3e0] sm:$0xf]  ;;  %v3989_v55 = vld [vmem:[#allocation2 + $0x3ec] sm:$0xf0]  ;;  %v3395_v59 = vld [vmem:[#allocation2 + $0x98] sm:$0xf0] }
 0x177   :  { %5767 = vst [vmem:[#allocation22_spill] sm:$0xff] %v4406_v60 }
 0x179   :  { %v672_v62 = vpop.f32.mrf.mxu3 }
 0x17a   :  { %v706_v63 = vpack.c.bf16 %v672_v62, %v670_v58  ;;  %v3881_v58 = vld [vmem:[#allocation2 + $0x8c] sm:$0xf0] }
 0x17b   :  { %v590_v0 = vpop.f32.mrf.mxu0  ;;  %v4408_v61 = vor.u32 %v3881_v58, %v3385_v57 }
 0x17c   :  { %1858 = vmatpush.bf16.msrb.mxu0 %v706_v63  ;;  %1374 = vmatmul.bf16.gmra.mxu1 %v4398_v51  ;;  %v3769_v63 = vld [vmem:[#allocation2 + $0x380] sm:$0xf] }
 0x17d   :  { %5768 = vst [vmem:[#allocation23_spill] sm:$0xff] %v4408_v61 }
 0x180   :  { %1859 = vmatpush.bf16.msrb.mxu0 %v705_v1 }
 0x183   :  { %v592_v7 = vpop.f32.mrf.mxu0 }
 0x184   :  { %1860 = vmatpush.bf16.msrb.mxu0 %v704_v4  ;;  %v690_v8 = vpack.c.bf16 %v592_v7, %v590_v0  ;;  %v3977_v0 = vld [vmem:[#allocation2 + $0x38c] sm:$0xf0]  ;;  %v4418_v7 = vor.u32 %v3885_v3, %v3401_v2  ;;  %v4457_v2 = vor.u32 %v3989_v55, %v3817_v54  ;;  %v3363_v54 = vld [vmem:[#allocation2 + $0x58] sm:$0xf0] }
 0x185   :  { %1469 = vmatmul.bf16.gmra.mxu2 %v4353_v6  ;;  %v4416_v4 = vor.u32 %v3977_v0, %v3769_v63  ;;  %v3449_v63 = vld [vmem:[#allocation2 + $0x100] sm:$0xf]  ;;  %v3897_v0 = vld [vmem:[#allocation2 + $0x10c] sm:$0xf0]  ;;  %v4483_v55 = vor.u32 %v3872_v48, %v3363_v54  ;;  %v3880_v6 = vld [vmem:[#allocation2 + $0x8c] sm:$0xf] }
 0x186   :  { %1520 = vmatpush.bf16.msrb.mxu2 %v690_v8  ;;  %5770 = vst [vmem:[#allocation25_spill] sm:$0xff] %v4418_v7  ;;  %v4459_v3 = vor.u32 %v3897_v0, %v3449_v63  ;;  %v3905_v48 = vld [vmem:[#allocation2 + $0x14c] sm:$0xf0] }
 0x187   :  { %5769 = vst [vmem:[#allocation24_spill] sm:$0xff] %v4416_v4 }
 0x188   :  { %1861 = vmatpush.bf16.msrb.mxu0 %v703_v9  ;;  %v3785_v9 = vld [vmem:[#allocation2 + $0x3a0] sm:$0xf]  ;;  %5778 = vst [vmem:[#allocation33_spill] sm:$0xff] %v4457_v2 }
 0x189   :  { %5779 = vst [vmem:[#allocation34_spill] sm:$0xff] %v4459_v3 }
 0x18a   :  { %1521 = vmatpush.bf16.msrb.mxu2 %v689_v10  ;;  %v3981_v10 = vld [vmem:[#allocation2 + $0x3ac] sm:$0xf0]  ;;  %5784 = vst [vmem:[#allocation39_spill] sm:$0xff] %v4483_v55 }
 0x18c   :  { %1862 = vmatpush.bf16.msrb.mxu0 %v702_v13  ;;  %1379 = vmatmul.bf16.gmra.mxu1 %v4408_v61  ;;  %v595_v21 = vpop.f32.mrf.mxu0 }
 0x18e   :  { %1522 = vmatpush.bf16.msrb.mxu2 %v688_v14  ;;  %v3417_v14 = vld [vmem:[#allocation2 + $0xc0] sm:$0xf] }
 0x190   :  { %1863 = vmatpush.bf16.msrb.mxu0 %v701_v15  ;;  %v3889_v15 = vld [vmem:[#allocation2 + $0xcc] sm:$0xf0] }
 0x191   :  { %v4428_v22 = vor.u32 %v3889_v15, %v3417_v14 }
 0x192   :  { %1523 = vmatpush.bf16.msrb.mxu2 %v687_v16  ;;  %v4426_v16 = vor.u32 %v3981_v10, %v3785_v9  ;;  %v3868_v9 = vld [vmem:[#allocation2 + $0x2c] sm:$0xf]  ;;  %v3347_v10 = vld [vmem:[#allocation2 + $0x38] sm:$0xf0] }
 0x193   :  { %5772 = vst [vmem:[#allocation27_spill] sm:$0xff] %v4428_v22  ;;  %v4463_v14 = vor.u32 %v3868_v9, %v3347_v10  ;;  %v3377_v9 = vld [vmem:[#allocation2 + $0x68] sm:$0xf]  ;;  %v3878_v10 = vld [vmem:[#allocation2 + $0x74] sm:$0xf0] }
 0x194   :  { %1864 = vmatpush.bf16.msrb.mxu0 %v700_v29  ;;  %5771 = vst [vmem:[#allocation26_spill] sm:$0xff] %v4426_v16  ;;  %v597_v30 = vpop.f32.mrf.mxu0 }
 0x195   :  { %1474 = vmatmul.bf16.gmra.mxu2 %v4360_v36  ;;  %5780 = vst [vmem:[#allocation35_spill] sm:$0xff] %v4463_v14 }
 0x196   :  { %1524 = vmatpush.bf16.msrb.mxu2 %v686_v31  ;;  %v3866_v31 = vld [vmem:[#allocation2 + $0x14] sm:$0xf0] }
 0x198   :  { %1865 = vmatpush.bf16.msrb.mxu0 %v699_v24  ;;  %v691_v24 = vpack.c.bf16 %v597_v30, %v595_v21  ;;  %v3361_v30 = vld [vmem:[#allocation2 + $0x48] sm:$0xf] }
 0x19a   :  { %1525 = vmatpush.bf16.msrb.mxu2 %v685_v17  ;;  %v4434_v17 = vor.u32 %v3866_v31, %v3329_v23  ;;  %1696 = vmatpush.bf16.msrb.mxu3 %v691_v24  ;;  %v3874_v23 = vld [vmem:[#allocation2 + $0x54] sm:$0xf0]  ;;  %v3863_v24 = vld [vmem:[#allocation2 + $0x4] sm:$0xf] }
 0x19b   :  { %1866 = vmatmul.bf16.vlgmr.msrb.gmra.mxu0 %v4445_v42  ;;  %v4470_v31 = vor.u32 %v3874_v23, %v3361_v30  ;;  %v4490_v30 = vor.u32 %v3878_v10, %v3377_v9  ;;  %v3867_v23 = vld [vmem:[#allocation2 + $0x24] sm:$0xf]  ;;  %v3425_v42 = vld [vmem:[#allocation2 + $0xc8] sm:$0xf] }
 0x19c   :  { %1384 = vmatmul.bf16.gmra.mxu1 %v4418_v7  ;;  %5773 = vst [vmem:[#allocation28_spill] sm:$0xff] %v4434_v17  ;;  %v3900_v7 = vld [vmem:[#allocation2 + $0x12c] sm:$0xf] }
 0x19d   :  { %1697 = vmatmul.bf16.vlgmr.msrb.gmra.mxu3 %v4434_v17  ;;  %5781 = vst [vmem:[#allocation36_spill] sm:$0xff] %v4470_v31  ;;  %v3921_v17 = vld [vmem:[#allocation2 + $0x1cc] sm:$0xf0] }
 0x19e   :  { %1526 = vmatpush.bf16.msrb.mxu2 %v684_v19  ;;  %v3801_v19 = vld [vmem:[#allocation2 + $0x3c0] sm:$0xf]  ;;  %5785 = vst [vmem:[#allocation40_spill] sm:$0xff] %v4490_v30 }
 0x19f   :  { %v4439_v40 = vor.u32 %v3985_v27, %v3801_v19  ;;  %v3323_v19 = vld [vmem:[#allocation2 + $0x10] sm:$0xf0] }
 0x1a0   :  { %v4477_v41 = vor.u32 %v3863_v24, %v3323_v19  ;;  %v3339_v24 = vld [vmem:[#allocation2 + $0x30] sm:$0xf0] }
 0x1a1   :  { %5774 = vst [vmem:[#allocation29_spill] sm:$0xff] %v4439_v40  ;;  %v4497_v54 = vor.u32 %v3867_v23, %v3339_v24  ;;  %v3871_v24 = vld [vmem:[#allocation2 + $0x44] sm:$0xf] }
 0x1a2   :  { %1527 = vmatpush.bf16.msrb.mxu2 %v683_v35  ;;  %v3433_v35 = vld [vmem:[#allocation2 + $0xe0] sm:$0xf]  ;;  %5782 = vst [vmem:[#allocation37_spill] sm:$0xff] %v4477_v41 }
 0x1a3   :  { %v4441_v20 = vor.u32 %v3893_v39, %v3433_v35  ;;  %v3465_v39 = vld [vmem:[#allocation2 + $0x120] sm:$0xf]  ;;  %5787 = vst [vmem:[#allocation42_spill] sm:$0xff] %v4497_v54 }
 0x1a4   :  { %v4479_v46 = vor.u32 %v3901_v26, %v3465_v39  ;;  %v3481_v26 = vld [vmem:[#allocation2 + $0x140] sm:$0xf] }
 0x1a5   :  { %1479 = vmatmul.bf16.gmra.mxu2 %v4376_v5  ;;  %5775 = vst [vmem:[#allocation30_spill] sm:$0xff] %v4441_v20 }
 0x1a6   :  { %5783 = vst [vmem:[#allocation38_spill] sm:$0xff] %v4479_v46 }
 0x1a8   :  { %v4382_v28 = vpop.f32.mrf.mxu2 }
 0x1ab   :  { %1871 = vmatmul.bf16.gmra.mxu0 %v4463_v14 }
 0x1ac   :  { %1389 = vmatmul.bf16.gmra.mxu1 %v4428_v22  ;;  %v3459_v22 = vld [vmem:[#allocation2 + $0x118] sm:$0xf0] }
 0x1ad   :  { %1702 = vmatmul.bf16.gmra.mxu3 %v4450_v49  ;;  %v3441_v49 = vld [vmem:[#allocation2 + $0xe8] sm:$0xf] }
 0x1b0   :  { %v4384_v33 = vpop.f32.mrf.mxu2 }
 0x1b5   :  { %1484 = vmatmul.bf16.gmra.mxu2 %v4386_v12 }
 0x1b8   :  { %v4392_v43 = vpop.f32.mrf.mxu2 }
 0x1bb   :  { %1876 = vmatmul.bf16.gmra.mxu0 %v4483_v55  ;;  %v3411_v55 = vld [vmem:[#allocation2 + $0xb8] sm:$0xf0] }
 0x1bc   :  { %1394 = vmatmul.bf16.gmra.mxu1 %v4441_v20 }
 0x1bd   :  { %1707 = vmatmul.bf16.gmra.mxu3 %v4470_v31  ;;  %v3427_v31 = vld [vmem:[#allocation2 + $0xd8] sm:$0xf0] }
 0x1c0   :  { %v4394_v47 = vpop.f32.mrf.mxu2 }
 0x1c5   :  { %1489 = vmatmul.bf16.gmra.mxu2 %v4396_v50  ;;  %v3882_v50 = vld [vmem:[#allocation2 + $0x94] sm:$0xf0] }
 0x1c8   :  { %v4402_v53 = vpop.f32.mrf.mxu2 }
 0x1c9   :  { %v4455_v58 = vpop.f32.mrf.mxu1 }
 0x1cc   :  { %1399 = vmatmul.bf16.gmra.mxu1 %v4459_v3  ;;  %v3419_v3 = vld [vmem:[#allocation2 + $0xd0] sm:$0xf0] }
 0x1cd   :  { %1712 = vmatmul.bf16.gmra.mxu3 %v4490_v30  ;;  %v3888_v30 = vld [vmem:[#allocation2 + $0xcc] sm:$0xf] }
 0x1d0   :  { %v4404_v56 = vpop.f32.mrf.mxu2 }
 0x1d1   :  { %v4468_v21 = vpop.f32.mrf.mxu1 }
 0x1d5   :  { %1494 = vmatmul.bf16.gmra.mxu2 %v4406_v60  ;;  %v3393_v60 = vld [vmem:[#allocation2 + $0x88] sm:$0xf] }
 0x1d6   :  { %v4510_v23 = vor.u32 %v3882_v50, %v3393_v60  ;;  %v4523_v50 = vor.u32 %v3880_v6, %v3395_v59  ;;  %v3513_v59 = vld [vmem:[#allocation2 + $0x180] sm:$0xf]  ;;  %v3913_v6 = vld [vmem:[#allocation2 + $0x18c] sm:$0xf0] }
 0x1d8   :  { %v4412_v62 = vpop.f32.mrf.mxu2  ;;  %5791 = vst [vmem:[#allocation46_spill] sm:$0xff] %v4510_v23 }
 0x1d9   :  { %v4475_v35 = vpop.f32.mrf.mxu1  ;;  %5795 = vst [vmem:[#allocation50_spill] sm:$0xff] %v4523_v50 }
 0x1dc   :  { %1404 = vmatmul.bf16.gmra.mxu1 %v4479_v46  ;;  %v3443_v46 = vld [vmem:[#allocation2 + $0xf8] sm:$0xf0] }
 0x1dd   :  { %1717 = vmatmul.bf16.gmra.mxu3 %v4510_v23 }
 0x1e0   :  { %v4414_v1 = vpop.f32.mrf.mxu2 }
 0x1e1   :  { %v4488_v0 = vpop.f32.mrf.mxu1 }
 0x1e5   :  { %1499 = vmatmul.bf16.gmra.mxu2 %v4416_v4 }
 0x1e8   :  { %v4422_v8 = vpop.f32.mrf.mxu2 }
 0x1e9   :  { %v4495_v39 = vpop.f32.mrf.mxu1 }
 0x1f0   :  { %v4424_v13 = vpop.f32.mrf.mxu2 }
 0x1f1   :  { %v4508_v4 = vpop.f32.mrf.mxu1 }
 0x1f5   :  { %1504 = vmatmul.bf16.gmra.mxu2 %v4426_v16  ;;  %v3379_v16 = vld [vmem:[#allocation2 + $0x78] sm:$0xf0] }
 0x1f8   :  { %v4432_v29 = vpop.f32.mrf.mxu2 }
 0x1f9   :  { %v4515_v12 = vpop.f32.mrf.mxu1 }
 0x200   :  { %v4437_v34 = vpop.f32.mrf.mxu2 }
 0x201   :  { %v4528_v52 = vpop.f32.mrf.mxu1 }
 0x205   :  { %1509 = vmatmul.bf16.gmra.mxu2 %v4439_v40  ;;  %v3876_v40 = vld [vmem:[#allocation2 + $0x6c] sm:$0xf] }
 0x206   :  { %v4503_v9 = vor.u32 %v3876_v40, %v3379_v16  ;;  %v3497_v16 = vld [vmem:[#allocation2 + $0x160] sm:$0xf]  ;;  %v3909_v40 = vld [vmem:[#allocation2 + $0x16c] sm:$0xf0] }
 0x207   :  { %v4519_v36 = vor.u32 %v3909_v40, %v3497_v16  ;;  %v3371_v16 = vld [vmem:[#allocation2 + $0x70] sm:$0xf0] }
 0x208   :  { %v4448_v44 = vpop.f32.mrf.mxu2  ;;  %5789 = vst [vmem:[#allocation44_spill] sm:$0xff] %v4503_v9  ;;  %1881 = vmatmul.bf16.gmra.mxu0 %v4503_v9  ;;  %v3884_v9 = vld [vmem:[#allocation2 + $0xac] sm:$0xf] }
 0x209   :  { %5794 = vst [vmem:[#allocation49_spill] sm:$0xff] %v4519_v36  ;;  %v4535_v32 = vpop.f32.mrf.mxu1 }
 0x210   :  { %v4453_v57 = vpop.f32.mrf.mxu2 }
 0x211   :  { %v4548_v14 = vpop.f32.mrf.mxu1 }
 0x215   :  { %1514 = vmatmul.bf16.gmra.mxu2 %v4457_v2  ;;  %v4499_v2 = vor.u32 %v3905_v48, %v3481_v26  ;;  %v3355_v26 = vld [vmem:[#allocation2 + $0x50] sm:$0xf0] }
 0x216   :  { %v4517_v5 = vor.u32 %v3871_v24, %v3355_v26  ;;  %v4530_v24 = vor.u32 %v3886_v38, %v3409_v45  ;;  %v3875_v26 = vld [vmem:[#allocation2 + $0x64] sm:$0xf]  ;;  %v4543_v38 = vor.u32 %v3884_v9, %v3411_v55  ;;  %v3529_v55 = vld [vmem:[#allocation2 + $0x1a0] sm:$0xf]  ;;  %v3917_v9 = vld [vmem:[#allocation2 + $0x1ac] sm:$0xf0] }
 0x217   :  { %5788 = vst [vmem:[#allocation43_spill] sm:$0xff] %v4499_v2  ;;  %1409 = vmatmul.bf16.gmra.mxu1 %v4499_v2  ;;  %v4537_v25 = vor.u32 %v3875_v26, %v3371_v16  ;;  %v3879_v16 = vld [vmem:[#allocation2 + $0x84] sm:$0xf]  ;;  %v3892_v2 = vld [vmem:[#allocation2 + $0xec] sm:$0xf] }
 0x218   :  { %v4466_v15 = vpop.f32.mrf.mxu2  ;;  %5793 = vst [vmem:[#allocation48_spill] sm:$0xff] %v4517_v5  ;;  %1886 = vmatmul.bf16.gmra.mxu0 %v4523_v50  ;;  %1722 = vmatmul.bf16.gmra.mxu3 %v4530_v24  ;;  %v4539_v50 = vor.u32 %v3913_v6, %v3513_v59  ;;  %v3387_v59 = vld [vmem:[#allocation2 + $0x90] sm:$0xf0] }
 0x219   :  { %5797 = vst [vmem:[#allocation52_spill] sm:$0xff] %v4530_v24  ;;  %v3890_v24 = vld [vmem:[#allocation2 + $0xd4] sm:$0xf0]  ;;  %v4557_v23 = vor.u32 %v3879_v16, %v3387_v59  ;;  %v3883_v59 = vld [vmem:[#allocation2 + $0xa4] sm:$0xf] }
 0x21a   :  { %5799 = vst [vmem:[#allocation54_spill] sm:$0xff] %v4537_v25  ;;  %v4550_v26 = vor.u32 %v3890_v24, %v3425_v42  ;;  %v4563_v42 = vor.u32 %v3888_v30, %v3427_v31 }
 0x21b   :  { %5800 = vst [vmem:[#allocation55_spill] sm:$0xff] %v4539_v50 }
 0x21c   :  { %5801 = vst [vmem:[#allocation56_spill] sm:$0xff] %v4543_v38 }
 0x21d   :  { %5803 = vst [vmem:[#allocation58_spill] sm:$0xff] %v4550_v26 }
 0x21e   :  { %5805 = vst [vmem:[#allocation60_spill] sm:$0xff] %v4557_v23 }
 0x21f   :  { %5807 = vst [vmem:[#allocation62_spill] sm:$0xff] %v4563_v42 }
 0x220   :  { %v4473_v27 = vpop.f32.mrf.mxu2 }
 0x225   :  { %1528 = vmatmul.bf16.vlgmr.msrb.gmra.mxu2 %v4477_v41  ;;  %v3505_v41 = vld [vmem:[#allocation2 + $0x168] sm:$0xf] }
 0x227   :  { %1414 = vmatmul.bf16.gmra.mxu1 %v4519_v36  ;;  %v3894_v36 = vld [vmem:[#allocation2 + $0xf4] sm:$0xf0] }
 0x228   :  { %v4486_v63 = vpop.f32.mrf.mxu2  ;;  %1891 = vmatmul.bf16.gmra.mxu0 %v4543_v38  ;;  %1727 = vmatmul.bf16.gmra.mxu3 %v4550_v26  ;;  %v4559_v38 = vor.u32 %v3917_v9, %v3529_v55  ;;  %v4570_v16 = vor.u32 %v3894_v36, %v3441_v49  ;;  %v3403_v55 = vld [vmem:[#allocation2 + $0xb0] sm:$0xf0]  ;;  %v4583_v36 = vor.u32 %v3892_v2, %v3443_v46 }
 0x229   :  { %v4575_v31 = vor.u32 %v3883_v59, %v3403_v55  ;;  %v4032_v59 = vld [vmem:[%s5643_s4 + $0x38] sm:$0xff]  ;;  %v4031_v2 = vld [vmem:[%s5643_s4 + $0x30] sm:$0xff] }
 0x22a   :  { %5806 = vst [vmem:[#allocation61_spill] sm:$0xff] %v4559_v38  ;;  %2187 = vmatpush.bf16.msrb.mxu1 %v4032_v59 }
 0x22b   :  { %5809 = vst [vmem:[#allocation64_spill] sm:$0xff] %v4570_v16 }
 0x22c   :  { %5811 = vst [vmem:[#allocation66_spill] sm:$0xff] %v4575_v31 }
 0x22d   :  { %5813 = vst [vmem:[#allocation68_spill] sm:$0xff] %v4583_v36 }
 0x22e   :  { %2188 = vmatpush.bf16.msrb.mxu1 %v4031_v2 }
 0x230   :  { %v4493_v19 = vpop.f32.mrf.mxu2 }
 0x231   :  { %5786 = vst [vmem:[#allocation41_spill] sm:$0xff] %v4493_v19  ;;  %v3507_v19 = vld [vmem:[#allocation2 + $0x178] sm:$0xf0] }
 0x235   :  { %1533 = vmatmul.bf16.gmra.mxu2 %v4497_v54 }
 0x237   :  { %1419 = vmatmul.bf16.gmra.mxu1 %v4539_v50  ;;  %v4555_v50 = vpop.f32.mrf.mxu1 }
 0x238   :  { %v4506_v10 = vpop.f32.mrf.mxu2  ;;  %1896 = vmatmul.bf16.gmra.mxu0 %v4563_v42  ;;  %1732 = vmatmul.bf16.gmra.mxu3 %v4570_v16  ;;  %v3887_v16 = vld [vmem:[#allocation2 + $0xc4] sm:$0xf] }
 0x239   :  { %5790 = vst [vmem:[#allocation45_spill] sm:$0xff] %v4506_v10  ;;  %v4601_v20 = vor.u32 %v3887_v16, %v3419_v3  ;;  %v4029_v16 = vld [vmem:[%s5643_s4 + $0x20] sm:$0xff] }
 0x23b   :  { %5817 = vst [vmem:[#allocation72_spill] sm:$0xff] %v4601_v20 }
 0x23f   :  { %v4568_v26 = vpop.f32.mrf.mxu1 }
 0x240   :  { %v4513_v48 = vpop.f32.mrf.mxu2 }
 0x241   :  { %5792 = vst [vmem:[#allocation47_spill] sm:$0xff] %v4513_v48 }
 0x245   :  { %1538 = vmatmul.bf16.gmra.mxu2 %v4517_v5  ;;  %v3475_v5 = vld [vmem:[#allocation2 + $0x138] sm:$0xf0] }
 0x247   :  { %1424 = vmatmul.bf16.gmra.mxu1 %v4559_v38  ;;  %v3545_v38 = vld [vmem:[#allocation2 + $0x1c0] sm:$0xf]  ;;  %v4579_v42 = vpop.f32.mrf.mxu1 }
 0x248   :  { %v4526_v60 = vpop.f32.mrf.mxu2  ;;  %v4577_v30 = vor.u32 %v3921_v17, %v3545_v38  ;;  %1901 = vmatmul.bf16.gmra.mxu0 %v4583_v36  ;;  %v3457_v17 = vld [vmem:[#allocation2 + $0x108] sm:$0xf]  ;;  %v3898_v38 = vld [vmem:[#allocation2 + $0x114] sm:$0xf0]  ;;  %v3561_v36 = vld [vmem:[#allocation2 + $0x1e0] sm:$0xf] }
 0x249   :  { %5796 = vst [vmem:[#allocation51_spill] sm:$0xff] %v4526_v60  ;;  %v4591_v55 = vor.u32 %v3898_v38, %v3457_v17  ;;  %v4030_v17 = vld [vmem:[%s5643_s4 + $0x28] sm:$0xff]  ;;  %v4608_v38 = vpop.f32.mrf.mxu3 }
 0x24a   :  { %5812 = vst [vmem:[#allocation67_spill] sm:$0xff] %v4577_v30  ;;  %2189 = vmatpush.bf16.msrb.mxu1 %v4030_v17  ;;  %v4028_v17 = vld [vmem:[%s5643_s4 + $0x18] sm:$0xff] }
 0x24b   :  { %5815 = vst [vmem:[#allocation70_spill] sm:$0xff] %v4591_v55  ;;  %1737 = vmatmul.bf16.gmra.mxu3 %v4591_v55  ;;  %v3896_v55 = vld [vmem:[#allocation2 + $0x10c] sm:$0xf] }
 0x24c   :  { %v4614_v2 = vor.u32 %v3896_v55, %v3459_v22  ;;  %v3473_v22 = vld [vmem:[#allocation2 + $0x128] sm:$0xf]  ;;  %v3902_v55 = vld [vmem:[#allocation2 + $0x134] sm:$0xf0] }
 0x24e   :  { %5819 = vst [vmem:[#allocation74_spill] sm:$0xff] %v4614_v2  ;;  %2190 = vmatpush.bf16.msrb.mxu1 %v4029_v16 }
 0x250   :  { %v4533_v40 = vpop.f32.mrf.mxu2 }
 0x251   :  { %5798 = vst [vmem:[#allocation53_spill] sm:$0xff] %v4533_v40  ;;  %v3467_v40 = vld [vmem:[#allocation2 + $0x130] sm:$0xf0] }
 0x252   :  { %2191 = vmatpush.bf16.msrb.mxu1 %v4028_v17 }
 0x255   :  { %1543 = vmatmul.bf16.gmra.mxu2 %v4537_v25  ;;  %v3891_v25 = vld [vmem:[#allocation2 + $0xe4] sm:$0xf] }
 0x257   :  { %1429 = vmatmul.bf16.gmra.mxu1 %v4577_v30  ;;  %v4593_v30 = vpop.f32.mrf.mxu1 }
 0x258   :  { %v4546_v45 = vpop.f32.mrf.mxu2  ;;  %1906 = vmatmul.bf16.gmra.mxu0 %v4614_v2  ;;  %v4027_v2 = vld [vmem:[%s5643_s4 + $0x10] sm:$0xff] }
 0x259   :  { %5802 = vst [vmem:[#allocation57_spill] sm:$0xff] %v4546_v45  ;;  %2192 = vmatpush.bf16.msrb.mxu1 %v4027_v2  ;;  %v3491_v45 = vld [vmem:[#allocation2 + $0x158] sm:$0xf0] }
 0x25f   :  { %v4616_v3 = vpop.f32.mrf.mxu1 }
 0x260   :  { %v4553_v6 = vpop.f32.mrf.mxu2 }
 0x261   :  { %5804 = vst [vmem:[#allocation59_spill] sm:$0xff] %v4553_v6  ;;  %v3904_v6 = vld [vmem:[#allocation2 + $0x14c] sm:$0xf] }
 0x265   :  { %1548 = vmatmul.bf16.gmra.mxu2 %v4557_v23  ;;  %v4611_v23 = vpop.f32.mrf.mxu0 }
 0x268   :  { %v4566_v24 = vpop.f32.mrf.mxu2 }
 0x269   :  { %5808 = vst [vmem:[#allocation63_spill] sm:$0xff] %v4566_v24  ;;  %v3906_v24 = vld [vmem:[#allocation2 + $0x154] sm:$0xf0] }
 0x270   :  { %v4573_v9 = vpop.f32.mrf.mxu2 }
 0x271   :  { %5810 = vst [vmem:[#allocation65_spill] sm:$0xff] %v4573_v9  ;;  %v3489_v9 = vld [vmem:[#allocation2 + $0x148] sm:$0xf] }
 0x275   :  { %1553 = vmatmul.bf16.gmra.mxu2 %v4575_v31  ;;  %v3925_v31 = vld [vmem:[#allocation2 + $0x1ec] sm:$0xf0] }
 0x276   :  { %v4603_v59 = vor.u32 %v3925_v31, %v3561_v36  ;;  %v4624_v36 = vpop.f32.mrf.mxu3 }
 0x278   :  { %v4586_v49 = vpop.f32.mrf.mxu2  ;;  %5818 = vst [vmem:[#allocation73_spill] sm:$0xff] %v4603_v59  ;;  %1434 = vmatmul.bf16.gmra.mxu1 %v4603_v59  ;;  %v4629_v59 = vpop.f32.mrf.mxu0 }
 0x279   :  { %5814 = vst [vmem:[#allocation69_spill] sm:$0xff] %v4586_v49 }
 0x27e   :  { %v4643_v17 = vpop.f32.mrf.mxu3 }
 0x280   :  { %v4599_v46 = vpop.f32.mrf.mxu2 }
 0x281   :  { %5816 = vst [vmem:[#allocation71_spill] sm:$0xff] %v4599_v46  ;;  %v3435_v46 = vld [vmem:[#allocation2 + $0xf0] sm:$0xf0] }
 0x282   :  { %v4641_v49 = vor.u32 %v3891_v25, %v3435_v46  ;;  %v4025_v25 = vld [vmem:[%s5643_s4] sm:$0xff] }
 0x284   :  { %5823 = vst [vmem:[#allocation78_spill] sm:$0xff] %v4641_v49 }
 0x285   :  { %1558 = vmatmul.bf16.gmra.mxu2 %v4601_v20  ;;  %v4631_v20 = vor.u32 %v3902_v55, %v3473_v22  ;;  %v4026_v22 = vld [vmem:[%s5643_s4 + $0x8] sm:$0xff]  ;;  %v4648_v55 = vpop.f32.mrf.mxu0 }
 0x286   :  { %2193 = vmatpush.bf16.msrb.mxu1 %v4026_v22 }
 0x287   :  { %5821 = vst [vmem:[#allocation76_spill] sm:$0xff] %v4631_v20  ;;  %1742 = vmatmul.bf16.gmra.mxu3 %v4631_v20  ;;  %v4651_v20 = vor.u32 %v3900_v7, %v3475_v5  ;;  %v3895_v5 = vld [vmem:[#allocation2 + $0x104] sm:$0xf]  ;;  %v3451_v7 = vld [vmem:[#allocation2 + $0x110] sm:$0xf0] }
 0x288   :  { %v4622_v31 = vpop.f32.mrf.mxu2 }
 0x289   :  { %5820 = vst [vmem:[#allocation75_spill] sm:$0xff] %v4622_v31  ;;  %v4639_v31 = vpop.f32.mrf.mxu1  ;;  %1911 = vmatmul.bf16.gmra.mxu0 %v4651_v20 }
 0x28a   :  { %5824 = vst [vmem:[#allocation79_spill] sm:$0xff] %v4651_v20  ;;  %2194 = vmatpush.bf16.msrb.mxu1 %v4025_v25  ;;  %v4670_v20 = vor.u32 %v3895_v5, %v3451_v7 }
 0x28c   :  { %5828 = vst [vmem:[#allocation83_spill] sm:$0xff] %v4670_v20 }
 0x28d   :  { %v4663_v22 = vpop.f32.mrf.mxu0 }
 0x290   :  { %v4637_v16 = vpop.f32.mrf.mxu2 }
 0x291   :  { %5822 = vst [vmem:[#allocation77_spill] sm:$0xff] %v4637_v16  ;;  %v4659_v2 = vpop.f32.mrf.mxu1  ;;  %v4661_v16 = vpop.f32.mrf.mxu3 }
 0x295   :  { %1563 = vmatmul.bf16.gmra.mxu2 %v4641_v49  ;;  %v4665_v49 = vor.u32 %v3906_v24, %v3489_v9  ;;  %v4676_v54 = vpop.f32.mrf.mxu0  ;;  %v4679_v24 = vor.u32 %v3904_v6, %v3491_v45  ;;  %v4684_v9 = vld [vmem:[%s5642_s3] ss:$0 sm:$0xff]  ;;  %v3899_v6 = vld [vmem:[#allocation2 + $0x124] sm:$0xf] }
 0x296   :  { %v1361_v7 = vadd.f32 %v4684_v9, %v4455_v58 }
 0x297   :  { %5826 = vst [vmem:[#allocation81_spill] sm:$0xff] %v4665_v49  ;;  %1747 = vmatmul.bf16.gmra.mxu3 %v4665_v49 }
 0x298   :  { %v4657_v46 = vpop.f32.mrf.mxu2  ;;  %5829 = vst [vmem:[#allocation84_spill] sm:$0xff] %v4679_v24 }
 0x299   :  { %5825 = vst [vmem:[#allocation80_spill] sm:$0xff] %v4657_v46  ;;  %v4672_v46 = vpop.f32.mrf.mxu3  ;;  %v4674_v25 = vpop.f32.mrf.mxu1  ;;  %1916 = vmatmul.bf16.gmra.mxu0 %v4679_v24  ;;  %v1363_v24 = vadd.f32 %v4684_v9, %v4468_v21 }
 0x29d   :  { %v4691_v51 = vpop.f32.mrf.mxu0 }
 0x2a0   :  { %v4668_v61 = vpop.f32.mrf.mxu2 }
 0x2a1   :  { %5827 = vst [vmem:[#allocation82_spill] sm:$0xff] %v4668_v61  ;;  %v4689_v49 = vpop.f32.mrf.mxu3  ;;  %v4695_v60 = vpop.f32.mrf.mxu1 }
 0x2a5   :  { %1568 = vmatmul.bf16.gmra.mxu2 %v4670_v20  ;;  %v3910_v20 = vld [vmem:[#allocation2 + $0x174] sm:$0xf0]  ;;  %v4707_v10 = vpop.f32.mrf.mxu0 }
 0x2a6   :  { %v4693_v45 = vor.u32 %v3910_v20, %v3505_v41 }
 0x2a8   :  { %v1529_v5 = vpop.f32.mrf.mxu2  ;;  %5830 = vst [vmem:[#allocation85_spill] sm:$0xff] %v4693_v45  ;;  %1752 = vmatmul.bf16.gmra.mxu3 %v4693_v45  ;;  %v3912_v45 = vld [vmem:[#allocation2 + $0x18c] sm:$0xf] }
 0x2a9   :  { %v1530_v61 = vadd.f32 %v1529_v5, %v1361_v7  ;;  %v4701_v5 = vor.u32 %v3899_v6, %v3467_v40  ;;  %v4703_v7 = vpop.f32.mrf.mxu3  ;;  %v4714_v6 = vpop.f32.mrf.mxu1 }
 0x2ab   :  { %v1699_v18 = vadd.f32 %v4608_v38, %v1530_v61  ;;  %v4711_v61 = vor.u32 %v3908_v11, %v3507_v19  ;;  %v3914_v11 = vld [vmem:[#allocation2 + $0x194] sm:$0xf0] }
 0x2ad   :  { %v1868_v20 = vadd.f32 %v4611_v23, %v1699_v18  ;;  %5831 = vst [vmem:[#allocation86_spill] sm:$0xff] %v4711_v61  ;;  %1921 = vmatmul.bf16.gmra.mxu0 %v4711_v61  ;;  %v1366_v18 = vadd.f32 %v4684_v9, %v4475_v35 }
 0x2af   :  { %v2027_v38 = vmax.f32 %v1868_v20, 0.0  ;;  %v3903_v20 = vld [vmem:[#allocation2 + $0x144] sm:$0xf] }
 0x2b0   :  { %v1531_v58 = vpop.f32.mrf.mxu2 }
 0x2b1   :  { %v1532_v48 = vadd.f32 %v1531_v58, %v1363_v24  ;;  %v3521_v58 = vld [vmem:[#allocation2 + $0x188] sm:$0xf] }
 0x2b2   :  { %v4722_v19 = vor.u32 %v3914_v11, %v3521_v58 }
 0x2b3   :  { %v1701_v41 = vadd.f32 %v4624_v36, %v1532_v48  ;;  %v4718_v48 = vpop.f32.mrf.mxu3 }
 0x2b4   :  { %5832 = vst [vmem:[#allocation87_spill] sm:$0xff] %v4722_v19 }
 0x2b5   :  { %v1870_v21 = vadd.f32 %v4629_v59, %v1701_v41  ;;  %1573 = vmatmul.bf16.gmra.mxu2 %v4701_v5  ;;  %v4720_v59 = vpop.f32.mrf.mxu0  ;;  %v3483_v41 = vld [vmem:[#allocation2 + $0x150] sm:$0xf0] }
 0x2b7   :  { %v2028_v24 = vmax.f32 %v1870_v21, 0.0  ;;  %v1368_v21 = vadd.f32 %v4684_v9, %v4488_v0  ;;  %v3523_v0 = vld [vmem:[#allocation2 + $0x198] sm:$0xf0] }
 0x2b8   :  { %v1534_v40 = vpop.f32.mrf.mxu2  ;;  %1757 = vmatmul.bf16.gmra.mxu3 %v4722_v19  ;;  %v3916_v19 = vld [vmem:[#allocation2 + $0x1ac] sm:$0xf] }
 0x2b9   :  { %v2091_v23 = vpack.c.bf16 %v2028_v24, %v2027_v38  ;;  %v1535_v36 = vadd.f32 %v1534_v40, %v1366_v18  ;;  %v4728_v24 = vor.u32 %v3903_v20, %v3483_v41  ;;  %v4730_v40 = vpop.f32.mrf.mxu1 }
 0x2bb   :  { %2195 = vmatmul.bf16.vlgmr.msrb.gmra.mxu1 %v2091_v23  ;;  %v1704_v61 = vadd.f32 %v4643_v17, %v1535_v36  ;;  %5833 = vst [vmem:[#allocation88_spill] sm:$0xff] %v4728_v24  ;;  %v4732_v18 = vpop.f32.mrf.mxu3  ;;  %v4740_v36 = vor.u32 %v3912_v45, %v3523_v0  ;;  %v3918_v45 = vld [vmem:[#allocation2 + $0x1b4] sm:$0xf0] }
 0x2bd   :  { %v1873_v23 = vadd.f32 %v4648_v55, %v1704_v61  ;;  %v4736_v11 = vpop.f32.mrf.mxu0  ;;  %5834 = vst [vmem:[#allocation89_spill] sm:$0xff] %v4740_v36  ;;  %1926 = vmatmul.bf16.gmra.mxu0 %v4740_v36  ;;  %v1371_v55 = vadd.f32 %v4684_v9, %v4495_v39  ;;  %v1373_v36 = vadd.f32 %v4684_v9, %v4508_v4 }
 0x2bf   :  { %v2029_v20 = vmax.f32 %v1873_v23, 0.0  ;;  %v3907_v23 = vld [vmem:[#allocation2 + $0x164] sm:$0xf] }
 0x2c0   :  { %v1536_v35 = vpop.f32.mrf.mxu2 }
 0x2c1   :  { %v1537_v38 = vadd.f32 %v1536_v35, %v1368_v21 }
 0x2c3   :  { %v1706_v58 = vadd.f32 %v4661_v16, %v1537_v38  ;;  %v4745_v16 = vpop.f32.mrf.mxu3  ;;  %v4747_v38 = vpop.f32.mrf.mxu1 }
 0x2c5   :  { %v1875_v17 = vadd.f32 %v4663_v22, %v1706_v58  ;;  %1578 = vmatmul.bf16.gmra.mxu2 %v4728_v24  ;;  %v4749_v22 = vpop.f32.mrf.mxu0  ;;  %v3537_v58 = vld [vmem:[#allocation2 + $0x1a8] sm:$0xf]  ;;  %v3539_v24 = vld [vmem:[#allocation2 + $0x1b8] sm:$0xf0] }
 0x2c6   :  { %v4751_v0 = vor.u32 %v3918_v45, %v3537_v58 }
 0x2c7   :  { %v2030_v41 = vmax.f32 %v1875_v17, 0.0  ;;  %v3499_v17 = vld [vmem:[#allocation2 + $0x170] sm:$0xf0] }
 0x2c8   :  { %v1539_v21 = vpop.f32.mrf.mxu2  ;;  %5835 = vst [vmem:[#allocation90_spill] sm:$0xff] %v4751_v0  ;;  %1762 = vmatmul.bf16.gmra.mxu3 %v4751_v0  ;;  %v3920_v0 = vld [vmem:[#allocation2 + $0x1cc] sm:$0xf] }
 0x2c9   :  { %v2092_v61 = vpack.c.bf16 %v2030_v41, %v2029_v20  ;;  %v1540_v35 = vadd.f32 %v1539_v21, %v1371_v55  ;;  %v4757_v21 = vor.u32 %v3907_v23, %v3499_v17 }
 0x2cb   :  { %2200 = vmatmul.bf16.gmra.mxu1 %v2092_v61  ;;  %v1709_v39 = vadd.f32 %v4672_v46, %v1540_v35  ;;  %v4759_v55 = vpop.f32.mrf.mxu3  ;;  %v4767_v46 = vor.u32 %v3916_v19, %v3539_v24  ;;  %v4769_v35 = vpop.f32.mrf.mxu1  ;;  %v3922_v19 = vld [vmem:[#allocation2 + $0x1d4] sm:$0xf0] }
 0x2cd   :  { %v1878_v61 = vadd.f32 %v4676_v54, %v1709_v39  ;;  %v4763_v45 = vpop.f32.mrf.mxu0  ;;  %5836 = vst [vmem:[#allocation91_spill] sm:$0xff] %v4767_v46  ;;  %1931 = vmatmul.bf16.gmra.mxu0 %v4767_v46  ;;  %v1376_v54 = vadd.f32 %v4684_v9, %v4515_v12 }
 0x2d0   :  { %v1541_v20 = vpop.f32.mrf.mxu2 }
 0x2d1   :  { %v1542_v41 = vadd.f32 %v1541_v20, %v1373_v36  ;;  %v2031_v36 = vmax.f32 %v1878_v61, 0.0  ;;  %v3515_v61 = vld [vmem:[#allocation2 + $0x190] sm:$0xf0] }
 0x2d3   :  { %v1711_v58 = vadd.f32 %v4689_v49, %v1542_v41  ;;  %v4774_v39 = vpop.f32.mrf.mxu3  ;;  %v3553_v41 = vld [vmem:[#allocation2 + $0x1c8] sm:$0xf] }
 0x2d4   :  { %v4778_v24 = vor.u32 %v3922_v19, %v3553_v41 }
 0x2d5   :  { %v1880_v4 = vadd.f32 %v4691_v51, %v1711_v58  ;;  %1583 = vmatmul.bf16.gmra.mxu2 %v4757_v21  ;;  %v4776_v51 = vpop.f32.mrf.mxu0  ;;  %v3911_v58 = vld [vmem:[#allocation2 + $0x184] sm:$0xf] }
 0x2d6   :  { %5837 = vst [vmem:[#allocation92_spill] sm:$0xff] %v4778_v24 }
 0x2d7   :  { %v2032_v23 = vmax.f32 %v1880_v4, 0.0  ;;  %v1378_v4 = vadd.f32 %v4684_v9, %v4528_v52  ;;  %v3555_v52 = vld [vmem:[#allocation2 + $0x1d8] sm:$0xf0] }
 0x2d8   :  { %v1544_v17 = vpop.f32.mrf.mxu2  ;;  %1767 = vmatmul.bf16.gmra.mxu3 %v4778_v24 }
 0x2d9   :  { %v2093_v49 = vpack.c.bf16 %v2032_v23, %v2031_v36  ;;  %v1545_v20 = vadd.f32 %v1544_v17, %v1376_v54  ;;  %v4784_v36 = vpop.f32.mrf.mxu1  ;;  %v4786_v17 = vor.u32 %v3911_v58, %v3515_v61 }
 0x2db   :  { %2205 = vmatmul.bf16.gmra.mxu1 %v2093_v49  ;;  %v1714_v46 = vadd.f32 %v4703_v7, %v1545_v20  ;;  %5838 = vst [vmem:[#allocation93_spill] sm:$0xff] %v4786_v17  ;;  %v4788_v54 = vpop.f32.mrf.mxu3  ;;  %v4796_v20 = vor.u32 %v3920_v0, %v3555_v52  ;;  %v3926_v0 = vld [vmem:[#allocation2 + $0x1f4] sm:$0xf0]  ;;  %v3531_v52 = vld [vmem:[#allocation2 + $0x1b0] sm:$0xf0] }
 0x2dd   :  { %v1883_v49 = vadd.f32 %v4707_v10, %v1714_v46  ;;  %v4792_v19 = vpop.f32.mrf.mxu0  ;;  %5839 = vst [vmem:[#allocation94_spill] sm:$0xff] %v4796_v20  ;;  %1936 = vmatmul.bf16.gmra.mxu0 %v4796_v20  ;;  %v1381_v10 = vadd.f32 %v4684_v9, %v4535_v32 }
 0x2df   :  { %v2033_v24 = vmax.f32 %v1883_v49, 0.0  ;;  %v3915_v49 = vld [vmem:[#allocation2 + $0x1a4] sm:$0xf] }
 0x2e0   :  { %v1546_v12 = vpop.f32.mrf.mxu2  ;;  %v4813_v20 = vor.u32 %v3915_v49, %v3531_v52 }
 0x2e1   :  { %v1547_v23 = vadd.f32 %v1546_v12, %v1378_v4 }
 0x2e2   :  { %5841 = vst [vmem:[#allocation96_spill] sm:$0xff] %v4813_v20 }
 0x2e3   :  { %v1716_v41 = vadd.f32 %v4718_v48, %v1547_v23  ;;  %v4801_v48 = vpop.f32.mrf.mxu1  ;;  %v4803_v61 = vpop.f32.mrf.mxu3  ;;  %v3569_v23 = vld [vmem:[#allocation2 + $0x1e8] sm:$0xf] }
 0x2e5   :  { %v1885_v7 = vadd.f32 %v4720_v59, %v1716_v41  ;;  %1588 = vmatmul.bf16.gmra.mxu2 %v4786_v17  ;;  %v4805_v59 = vpop.f32.mrf.mxu0  ;;  %v4807_v41 = vor.u32 %v3926_v0, %v3569_v23  ;;  %v3924_v17 = vld [vmem:[#allocation2 + $0x1ec] sm:$0xf] }
 0x2e7   :  { %v2034_v4 = vmax.f32 %v1885_v7, 0.0  ;;  %5840 = vst [vmem:[#allocation95_spill] sm:$0xff] %v4807_v41  ;;  %v1383_v7 = vadd.f32 %v4684_v9, %v4548_v14  ;;  %v3571_v14 = vld [vmem:[#allocation2 + $0x1f8] sm:$0xf0] }
 0x2e8   :  { %v1549_v58 = vpop.f32.mrf.mxu2  ;;  %1772 = vmatmul.bf16.gmra.mxu3 %v4807_v41 }
 0x2e9   :  { %v2094_v46 = vpack.c.bf16 %v2034_v4, %v2033_v24  ;;  %v1550_v12 = vadd.f32 %v1549_v58, %v1381_v10 }
 0x2eb   :  { %2210 = vmatmul.bf16.gmra.mxu1 %v2094_v46  ;;  %v1719_v32 = vadd.f32 %v4732_v18, %v1550_v12  ;;  %v4815_v58 = vpop.f32.mrf.mxu3  ;;  %v4819_v23 = vpop.f32.mrf.mxu1  ;;  %v4825_v12 = vor.u32 %v3924_v17, %v3571_v14  ;;  %v3547_v14 = vld [vmem:[#allocation2 + $0x1d0] sm:$0xf0] }
 0x2ed   :  { %v1888_v10 = vadd.f32 %v4736_v11, %v1719_v32  ;;  %v4821_v0 = vpop.f32.mrf.mxu0  ;;  %5842 = vst [vmem:[#allocation97_spill] sm:$0xff] %v4825_v12  ;;  %1941 = vmatmul.bf16.gmra.mxu0 %v4825_v12  ;;  %v1386_v11 = vadd.f32 %v4684_v9, %v4555_v50  ;;  %v3928_v12 = vld [vmem:[#allocation2 + $0x20c] sm:$0xf] }
 0x2ef   :  { %v2035_v49 = vmax.f32 %v1888_v10, 0.0  ;;  %v3919_v10 = vld [vmem:[#allocation2 + $0x1c4] sm:$0xf] }
 0x2f0   :  { %v1551_v24 = vpop.f32.mrf.mxu2 }
 0x2f1   :  { %v1552_v4 = vadd.f32 %v1551_v24, %v1383_v7 }
 0x2f3   :  { %v1721_v46 = vadd.f32 %v4745_v16, %v1552_v4  ;;  %v4830_v32 = vpop.f32.mrf.mxu3  ;;  %v4836_v17 = vpop.f32.mrf.mxu1 }
 0x2f5   :  { %v1890_v18 = vadd.f32 %v4749_v22, %v1721_v46  ;;  %1593 = vmatmul.bf16.gmra.mxu2 %v4813_v20  ;;  %v4832_v4 = vpop.f32.mrf.mxu0  ;;  %v3585_v22 = vld [vmem:[#allocation2 + $0x208] sm:$0xf]  ;;  %v3930_v46 = vld [vmem:[#allocation2 + $0x214] sm:$0xf0]  ;;  %v3587_v20 = vld [vmem:[#allocation2 + $0x218] sm:$0xf0] }
 0x2f6   :  { %v4834_v41 = vor.u32 %v3930_v46, %v3585_v22 }
 0x2f7   :  { %v2036_v52 = vmax.f32 %v1890_v18, 0.0  ;;  %v1388_v18 = vadd.f32 %v4684_v9, %v4568_v26 }
 0x2f8   :  { %v1554_v7 = vpop.f32.mrf.mxu2  ;;  %5843 = vst [vmem:[#allocation98_spill] sm:$0xff] %v4834_v41  ;;  %1777 = vmatmul.bf16.gmra.mxu3 %v4834_v41  ;;  %v3932_v41 = vld [vmem:[#allocation2 + $0x22c] sm:$0xf] }
 0x2f9   :  { %v2095_v16 = vpack.c.bf16 %v2036_v52, %v2035_v49  ;;  %v1555_v24 = vadd.f32 %v1554_v7, %v1386_v11  ;;  %v4842_v7 = vor.u32 %v3919_v10, %v3547_v14 }
 0x2fb   :  { %2215 = vmatmul.bf16.gmra.mxu1 %v2095_v16  ;;  %v1724_v50 = vadd.f32 %v4759_v55, %v1555_v24  ;;  %v4844_v11 = vpop.f32.mrf.mxu3  ;;  %v4852_v55 = vor.u32 %v3928_v12, %v3587_v20  ;;  %v4855_v10 = vpop.f32.mrf.mxu1  ;;  %v3934_v20 = vld [vmem:[#allocation2 + $0x234] sm:$0xf0] }
 0x2fd   :  { %v1893_v16 = vadd.f32 %v4763_v45, %v1724_v50  ;;  %v4848_v46 = vpop.f32.mrf.mxu0  ;;  %5844 = vst [vmem:[#allocation99_spill] sm:$0xff] %v4852_v55  ;;  %1946 = vmatmul.bf16.gmra.mxu0 %v4852_v55  ;;  %v1391_v45 = vadd.f32 %v4684_v9, %v4579_v42 }
 0x2ff   :  { %v2037_v24 = vmax.f32 %v1893_v16, 0.0  ;;  %v3923_v16 = vld [vmem:[#allocation2 + $0x1e4] sm:$0xf] }
 0x300   :  { %v1556_v49 = vpop.f32.mrf.mxu2 }
 0x301   :  { %v1557_v52 = vadd.f32 %v1556_v49, %v1388_v18 }
 0x303   :  { %v1726_v22 = vadd.f32 %v4774_v39, %v1557_v52  ;;  %v4859_v50 = vpop.f32.mrf.mxu3  ;;  %v3601_v52 = vld [vmem:[#allocation2 + $0x228] sm:$0xf] }
 0x304   :  { %v4863_v12 = vor.u32 %v3934_v20, %v3601_v52 }
 0x305   :  { %v1895_v26 = vadd.f32 %v4776_v51, %v1726_v22  ;;  %1598 = vmatmul.bf16.gmra.mxu2 %v4842_v7  ;;  %v4861_v51 = vpop.f32.mrf.mxu0  ;;  %v3563_v22 = vld [vmem:[#allocation2 + $0x1f0] sm:$0xf0] }
 0x306   :  { %5845 = vst [vmem:[#allocation100_spill] sm:$0xff] %v4863_v12 }
 0x307   :  { %v2038_v18 = vmax.f32 %v1895_v26, 0.0  ;;  %v1393_v26 = vadd.f32 %v4684_v9, %v4593_v30  ;;  %v3603_v30 = vld [vmem:[#allocation2 + $0x238] sm:$0xf0] }
 0x308   :  { %v1559_v14 = vpop.f32.mrf.mxu2  ;;  %1782 = vmatmul.bf16.gmra.mxu3 %v4863_v12  ;;  %v3936_v12 = vld [vmem:[#allocation2 + $0x24c] sm:$0xf] }
 0x309   :  { %v2096_v39 = vpack.c.bf16 %v2038_v18, %v2037_v24  ;;  %v1560_v49 = vadd.f32 %v1559_v14, %v1391_v45  ;;  %v4869_v18 = vor.u32 %v3923_v16, %v3563_v22  ;;  %v4871_v14 = vpop.f32.mrf.mxu1 }
 0x30b   :  { %2220 = vmatmul.bf16.gmra.mxu1 %v2096_v39  ;;  %v1729_v55 = vadd.f32 %v4788_v54, %v1560_v49  ;;  %5846 = vst [vmem:[#allocation101_spill] sm:$0xff] %v4869_v18  ;;  %v4873_v45 = vpop.f32.mrf.mxu3  ;;  %v4881_v49 = vor.u32 %v3932_v41, %v3603_v30  ;;  %v3938_v41 = vld [vmem:[#allocation2 + $0x254] sm:$0xf0] }
 0x30d   :  { %v1898_v39 = vadd.f32 %v4792_v19, %v1729_v55  ;;  %v4877_v20 = vpop.f32.mrf.mxu0  ;;  %5847 = vst [vmem:[#allocation102_spill] sm:$0xff] %v4881_v49  ;;  %1951 = vmatmul.bf16.gmra.mxu0 %v4881_v49  ;;  %v1396_v19 = vadd.f32 %v4684_v9, %v4616_v3  ;;  %v1398_v49 = vadd.f32 %v4684_v9, %v4639_v31 }
 0x30f   :  { %v2039_v16 = vmax.f32 %v1898_v39, 0.0  ;;  %v3927_v39 = vld [vmem:[#allocation2 + $0x204] sm:$0xf] }
 0x310   :  { %v1561_v42 = vpop.f32.mrf.mxu2 }
 0x311   :  { %v1562_v24 = vadd.f32 %v1561_v42, %v1393_v26 }
 0x313   :  { %v1731_v52 = vadd.f32 %v4803_v61, %v1562_v24  ;;  %v4886_v61 = vpop.f32.mrf.mxu3  ;;  %v4888_v24 = vpop.f32.mrf.mxu1 }
 0x315   :  { %v1900_v54 = vadd.f32 %v4805_v59, %v1731_v52  ;;  %1603 = vmatmul.bf16.gmra.mxu2 %v4869_v18  ;;  %v4890_v59 = vpop.f32.mrf.mxu0  ;;  %v3617_v52 = vld [vmem:[#allocation2 + $0x248] sm:$0xf]  ;;  %v3619_v18 = vld [vmem:[#allocation2 + $0x258] sm:$0xf0] }
 0x316   :  { %v4892_v30 = vor.u32 %v3938_v41, %v3617_v52 }
 0x317   :  { %v2040_v22 = vmax.f32 %v1900_v54, 0.0  ;;  %v3579_v54 = vld [vmem:[#allocation2 + $0x210] sm:$0xf0] }
 0x318   :  { %v1564_v26 = vpop.f32.mrf.mxu2  ;;  %5848 = vst [vmem:[#allocation103_spill] sm:$0xff] %v4892_v30  ;;  %1787 = vmatmul.bf16.gmra.mxu3 %v4892_v30  ;;  %v3940_v30 = vld [vmem:[#allocation2 + $0x26c] sm:$0xf] }
 0x319   :  { %v2097_v55 = vpack.c.bf16 %v2040_v22, %v2039_v16  ;;  %v1565_v42 = vadd.f32 %v1564_v26, %v1396_v19  ;;  %v4898_v26 = vor.u32 %v3927_v39, %v3579_v54 }
 0x31b   :  { %2225 = vmatmul.bf16.gmra.mxu1 %v2097_v55  ;;  %v1734_v3 = vadd.f32 %v4815_v58, %v1565_v42  ;;  %5849 = vst [vmem:[#allocation104_spill] sm:$0xff] %v4898_v26  ;;  %v4900_v19 = vpop.f32.mrf.mxu3  ;;  %v4908_v58 = vor.u32 %v3936_v12, %v3619_v18  ;;  %v4910_v42 = vpop.f32.mrf.mxu1  ;;  %v3942_v12 = vld [vmem:[#allocation2 + $0x274] sm:$0xf0] }
 0x31d   :  { %v1903_v55 = vadd.f32 %v4821_v0, %v1734_v3  ;;  %v4904_v41 = vpop.f32.mrf.mxu0  ;;  %5850 = vst [vmem:[#allocation105_spill] sm:$0xff] %v4908_v58  ;;  %1956 = vmatmul.bf16.gmra.mxu0 %v4908_v58  ;;  %v1401_v0 = vadd.f32 %v4684_v9, %v4659_v2 }
 0x320   :  { %v1566_v16 = vpop.f32.mrf.mxu2 }
 0x321   :  { %v1567_v22 = vadd.f32 %v1566_v16, %v1398_v49  ;;  %v2041_v49 = vmax.f32 %v1903_v55, 0.0  ;;  %v3595_v55 = vld [vmem:[#allocation2 + $0x230] sm:$0xf0] }
 0x323   :  { %v1736_v52 = vadd.f32 %v4830_v32, %v1567_v22  ;;  %v4915_v3 = vpop.f32.mrf.mxu3  ;;  %v3633_v22 = vld [vmem:[#allocation2 + $0x268] sm:$0xf]  ;;  %v4925_v2 = vpop.f32.mrf.mxu1 }
 0x324   :  { %v4919_v18 = vor.u32 %v3942_v12, %v3633_v22 }
 0x325   :  { %v1905_v31 = vadd.f32 %v4832_v4, %v1736_v52  ;;  %1608 = vmatmul.bf16.gmra.mxu2 %v4898_v26  ;;  %v4917_v4 = vpop.f32.mrf.mxu0  ;;  %v3931_v52 = vld [vmem:[#allocation2 + $0x224] sm:$0xf]  ;;  %v3747_v26 = vld [vmem:[#allocation2 + $0x358] sm:$0xf0] }
 0x326   :  { %5851 = vst [vmem:[#allocation106_spill] sm:$0xff] %v4919_v18 }
 0x327   :  { %v2042_v39 = vmax.f32 %v1905_v31, 0.0  ;;  %v1403_v31 = vadd.f32 %v4684_v9, %v4674_v25  ;;  %v3635_v25 = vld [vmem:[#allocation2 + $0x278] sm:$0xf0] }
 0x328   :  { %v1569_v54 = vpop.f32.mrf.mxu2  ;;  %1792 = vmatmul.bf16.gmra.mxu3 %v4919_v18 }
 0x329   :  { %v2098_v32 = vpack.c.bf16 %v2042_v39, %v2041_v49  ;;  %v1570_v16 = vadd.f32 %v1569_v54, %v1401_v0  ;;  %v4927_v54 = vor.u32 %v3931_v52, %v3595_v55 }
 0x32b   :  { %2230 = vmatmul.bf16.gmra.mxu1 %v2098_v32  ;;  %v1739_v58 = vadd.f32 %v4844_v11, %v1570_v16  ;;  %5852 = vst [vmem:[#allocation107_spill] sm:$0xff] %v4927_v54  ;;  %v4929_v0 = vpop.f32.mrf.mxu3  ;;  %v4937_v16 = vor.u32 %v3940_v30, %v3635_v25  ;;  %v3946_v30 = vld [vmem:[#allocation2 + $0x294] sm:$0xf0]  ;;  %v3611_v25 = vld [vmem:[#allocation2 + $0x250] sm:$0xf0] }
 0x32d   :  { %v1908_v32 = vadd.f32 %v4848_v46, %v1739_v58  ;;  %v4933_v12 = vpop.f32.mrf.mxu0  ;;  %5853 = vst [vmem:[#allocation108_spill] sm:$0xff] %v4937_v16  ;;  %1961 = vmatmul.bf16.gmra.mxu0 %v4937_v16  ;;  %v1406_v46 = vadd.f32 %v4684_v9, %v4695_v60 }
 0x32f   :  { %v2043_v18 = vmax.f32 %v1908_v32, 0.0  ;;  %v3935_v32 = vld [vmem:[#allocation2 + $0x244] sm:$0xf] }
 0x330   :  { %v1571_v49 = vpop.f32.mrf.mxu2 }
 0x331   :  { %v1572_v39 = vadd.f32 %v1571_v49, %v1403_v31 }
 0x333   :  { %v1741_v22 = vadd.f32 %v4859_v50, %v1572_v39  ;;  %v4944_v58 = vpop.f32.mrf.mxu3  ;;  %v3649_v39 = vld [vmem:[#allocation2 + $0x288] sm:$0xf] }
 0x335   :  { %v1910_v11 = vadd.f32 %v4861_v51, %v1741_v22  ;;  %1613 = vmatmul.bf16.gmra.mxu2 %v4927_v54  ;;  %v4946_v51 = vpop.f32.mrf.mxu0  ;;  %v4948_v22 = vor.u32 %v3946_v30, %v3649_v39  ;;  %v3960_v54 = vld [vmem:[#allocation2 + $0x30c] sm:$0xf] }
 0x337   :  { %v2044_v31 = vmax.f32 %v1910_v11, 0.0  ;;  %5854 = vst [vmem:[#allocation109_spill] sm:$0xff] %v4948_v22  ;;  %v1408_v11 = vadd.f32 %v4684_v9, %v4714_v6 }
 0x338   :  { %v1574_v52 = vpop.f32.mrf.mxu2  ;;  %v4940_v55 = vpop.f32.mrf.mxu1  ;;  %1797 = vmatmul.bf16.gmra.mxu3 %v4948_v22 }
 0x339   :  { %v2099_v50 = vpack.c.bf16 %v2044_v31, %v2043_v18  ;;  %v1575_v49 = vadd.f32 %v1574_v52, %v1406_v46  ;;  %v4958_v46 = vor.u32 %v3935_v32, %v3611_v25 }
 0x33b   :  { %2235 = vmatmul.bf16.gmra.mxu1 %v2099_v50  ;;  %v1744_v16 = vadd.f32 %v4873_v45, %v1575_v49  ;;  %5855 = vst [vmem:[#allocation110_spill] sm:$0xff] %v4958_v46  ;;  %v4960_v50 = vpop.f32.mrf.mxu3  ;;  %v3944_v45 = vld [vmem:[#allocation2 + $0x28c] sm:$0xf]  ;;  %v3651_v49 = vld [vmem:[#allocation2 + $0x298] sm:$0xf0] }
 0x33d   :  { %v1913_v39 = vadd.f32 %v4877_v20, %v1744_v16  ;;  %v4964_v6 = vpop.f32.mrf.mxu0  ;;  %v1411_v20 = vadd.f32 %v4684_v9, %v4730_v40 }
 0x340   :  { %v1576_v60 = vpop.f32.mrf.mxu2  ;;  %v4954_v18 = vpop.f32.mrf.mxu1 }
 0x341   :  { %v1577_v31 = vadd.f32 %v1576_v60, %v1408_v11  ;;  %v4968_v11 = vor.u32 %v3944_v45, %v3651_v49  ;;  %v2045_v60 = vmax.f32 %v1913_v39, 0.0  ;;  %v3950_v45 = vld [vmem:[#allocation2 + $0x2b4] sm:$0xf0]  ;;  %v3627_v39 = vld [vmem:[#allocation2 + $0x270] sm:$0xf0] }
 0x343   :  { %v1746_v30 = vadd.f32 %v4886_v61, %v1577_v31  ;;  %5856 = vst [vmem:[#allocation111_spill] sm:$0xff] %v4968_v11  ;;  %1966 = vmatmul.bf16.gmra.mxu0 %v4968_v11  ;;  %v4975_v16 = vpop.f32.mrf.mxu3  ;;  %v1413_v11 = vadd.f32 %v4684_v9, %v4747_v38 }
 0x345   :  { %v1915_v22 = vadd.f32 %v4890_v59, %v1746_v30  ;;  %1618 = vmatmul.bf16.gmra.mxu2 %v4958_v46  ;;  %v4977_v59 = vpop.f32.mrf.mxu0  ;;  %v3665_v30 = vld [vmem:[#allocation2 + $0x2a8] sm:$0xf] }
 0x346   :  { %v4979_v49 = vor.u32 %v3950_v45, %v3665_v30 }
 0x347   :  { %v2046_v52 = vmax.f32 %v1915_v22, 0.0  ;;  %v3939_v22 = vld [vmem:[#allocation2 + $0x264] sm:$0xf] }
 0x348   :  { %v1579_v32 = vpop.f32.mrf.mxu2  ;;  %v4971_v25 = vpop.f32.mrf.mxu1  ;;  %5857 = vst [vmem:[#allocation112_spill] sm:$0xff] %v4979_v49  ;;  %1802 = vmatmul.bf16.gmra.mxu3 %v4979_v49 }
 0x349   :  { %v2100_v61 = vpack.c.bf16 %v2046_v52, %v2045_v60  ;;  %v1580_v31 = vadd.f32 %v1579_v32, %v1411_v20  ;;  %v4989_v20 = vor.u32 %v3939_v22, %v3627_v39 }
 0x34b   :  { %2240 = vmatmul.bf16.gmra.mxu1 %v2100_v61  ;;  %v1749_v46 = vadd.f32 %v4900_v19, %v1580_v31  ;;  %5858 = vst [vmem:[#allocation113_spill] sm:$0xff] %v4989_v20  ;;  %v4991_v61 = vpop.f32.mrf.mxu3  ;;  %v3948_v19 = vld [vmem:[#allocation2 + $0x2ac] sm:$0xf]  ;;  %v3667_v31 = vld [vmem:[#allocation2 + $0x2b8] sm:$0xf0] }
 0x34d   :  { %v1918_v30 = vadd.f32 %v4904_v41, %v1749_v46  ;;  %v4995_v38 = vpop.f32.mrf.mxu0  ;;  %v1416_v41 = vadd.f32 %v4684_v9, %v4769_v35 }
 0x350   :  { %v1581_v40 = vpop.f32.mrf.mxu2  ;;  %v4985_v52 = vpop.f32.mrf.mxu1 }
 0x351   :  { %v1582_v60 = vadd.f32 %v1581_v40, %v1413_v11  ;;  %v4999_v11 = vor.u32 %v3948_v19, %v3667_v31  ;;  %v2047_v40 = vmax.f32 %v1918_v30, 0.0  ;;  %v3954_v19 = vld [vmem:[#allocation2 + $0x2d4] sm:$0xf0]  ;;  %v3643_v30 = vld [vmem:[#allocation2 + $0x290] sm:$0xf0] }
 0x353   :  { %v1751_v45 = vadd.f32 %v4915_v3, %v1582_v60  ;;  %5859 = vst [vmem:[#allocation114_spill] sm:$0xff] %v4999_v11  ;;  %1971 = vmatmul.bf16.gmra.mxu0 %v4999_v11  ;;  %v5006_v46 = vpop.f32.mrf.mxu3  ;;  %v1418_v11 = vadd.f32 %v4684_v9, %v4784_v36 }
 0x355   :  { %v1920_v49 = vadd.f32 %v4917_v4, %v1751_v45  ;;  %1623 = vmatmul.bf16.gmra.mxu2 %v4989_v20  ;;  %v5008_v4 = vpop.f32.mrf.mxu0  ;;  %v3681_v45 = vld [vmem:[#allocation2 + $0x2c8] sm:$0xf] }
 0x356   :  { %v5010_v31 = vor.u32 %v3954_v19, %v3681_v45 }
 0x357   :  { %v2048_v32 = vmax.f32 %v1920_v49, 0.0  ;;  %v3943_v49 = vld [vmem:[#allocation2 + $0x284] sm:$0xf] }
 0x358   :  { %v1584_v22 = vpop.f32.mrf.mxu2  ;;  %v5002_v39 = vpop.f32.mrf.mxu1  ;;  %5860 = vst [vmem:[#allocation115_spill] sm:$0xff] %v5010_v31  ;;  %1807 = vmatmul.bf16.gmra.mxu3 %v5010_v31 }
 0x359   :  { %v2101_v3 = vpack.c.bf16 %v2048_v32, %v2047_v40  ;;  %v1585_v60 = vadd.f32 %v1584_v22, %v1416_v41  ;;  %v5020_v41 = vor.u32 %v3943_v49, %v3643_v30 }
 0x35b   :  { %2245 = vmatmul.bf16.gmra.mxu1 %v2101_v3  ;;  %v1754_v20 = vadd.f32 %v4929_v0, %v1585_v60  ;;  %5861 = vst [vmem:[#allocation116_spill] sm:$0xff] %v5020_v41  ;;  %v5022_v3 = vpop.f32.mrf.mxu3  ;;  %v3952_v0 = vld [vmem:[#allocation2 + $0x2cc] sm:$0xf]  ;;  %v3683_v60 = vld [vmem:[#allocation2 + $0x2d8] sm:$0xf0] }
 0x35d   :  { %v1923_v45 = vadd.f32 %v4933_v12, %v1754_v20  ;;  %v5026_v36 = vpop.f32.mrf.mxu0  ;;  %v1421_v12 = vadd.f32 %v4684_v9, %v4801_v48 }
 0x360   :  { %v1586_v35 = vpop.f32.mrf.mxu2  ;;  %v5016_v32 = vpop.f32.mrf.mxu1 }
 0x361   :  { %v1587_v40 = vadd.f32 %v1586_v35, %v1418_v11  ;;  %v5030_v11 = vor.u32 %v3952_v0, %v3683_v60  ;;  %v2049_v35 = vmax.f32 %v1923_v45, 0.0  ;;  %v3958_v0 = vld [vmem:[#allocation2 + $0x2f4] sm:$0xf0]  ;;  %v3659_v45 = vld [vmem:[#allocation2 + $0x2b0] sm:$0xf0] }
 0x363   :  { %v1756_v19 = vadd.f32 %v4944_v58, %v1587_v40  ;;  %5862 = vst [vmem:[#allocation117_spill] sm:$0xff] %v5030_v11  ;;  %1976 = vmatmul.bf16.gmra.mxu0 %v5030_v11  ;;  %v5037_v20 = vpop.f32.mrf.mxu3  ;;  %v1423_v11 = vadd.f32 %v4684_v9, %v4819_v23 }
 0x365   :  { %v1925_v31 = vadd.f32 %v4946_v51, %v1756_v19  ;;  %1628 = vmatmul.bf16.gmra.mxu2 %v5020_v41  ;;  %v5039_v51 = vpop.f32.mrf.mxu0  ;;  %v3697_v19 = vld [vmem:[#allocation2 + $0x2e8] sm:$0xf] }
 0x366   :  { %v5041_v60 = vor.u32 %v3958_v0, %v3697_v19 }
 0x367   :  { %v2050_v22 = vmax.f32 %v1925_v31, 0.0  ;;  %v3947_v31 = vld [vmem:[#allocation2 + $0x2a4] sm:$0xf] }
 0x368   :  { %v1589_v49 = vpop.f32.mrf.mxu2  ;;  %v5033_v30 = vpop.f32.mrf.mxu1  ;;  %5863 = vst [vmem:[#allocation118_spill] sm:$0xff] %v5041_v60  ;;  %1812 = vmatmul.bf16.gmra.mxu3 %v5041_v60 }
 0x369   :  { %v2102_v58 = vpack.c.bf16 %v2050_v22, %v2049_v35  ;;  %v1590_v40 = vadd.f32 %v1589_v49, %v1421_v12  ;;  %v5051_v12 = vor.u32 %v3947_v31, %v3659_v45 }
 0x36b   :  { %2250 = vmatmul.bf16.gmra.mxu1 %v2102_v58  ;;  %v1759_v41 = vadd.f32 %v4960_v50, %v1590_v40  ;;  %5864 = vst [vmem:[#allocation119_spill] sm:$0xff] %v5051_v12  ;;  %v5053_v58 = vpop.f32.mrf.mxu3  ;;  %v3956_v50 = vld [vmem:[#allocation2 + $0x2ec] sm:$0xf]  ;;  %v3699_v40 = vld [vmem:[#allocation2 + $0x2f8] sm:$0xf0] }
 0x36d   :  { %v1928_v19 = vadd.f32 %v4964_v6, %v1759_v41  ;;  %v5057_v23 = vpop.f32.mrf.mxu0  ;;  %v1426_v6 = vadd.f32 %v4684_v9, %v4836_v17 }
 0x370   :  { %v1591_v48 = vpop.f32.mrf.mxu2  ;;  %v5047_v22 = vpop.f32.mrf.mxu1 }
 0x371   :  { %v1592_v35 = vadd.f32 %v1591_v48, %v1423_v11  ;;  %v5061_v11 = vor.u32 %v3956_v50, %v3699_v40  ;;  %v2051_v48 = vmax.f32 %v1928_v19, 0.0  ;;  %v3962_v50 = vld [vmem:[#allocation2 + $0x314] sm:$0xf0]  ;;  %v3675_v19 = vld [vmem:[#allocation2 + $0x2d0] sm:$0xf0] }
 0x373   :  { %v1761_v0 = vadd.f32 %v4975_v16, %v1592_v35  ;;  %5865 = vst [vmem:[#allocation120_spill] sm:$0xff] %v5061_v11  ;;  %1981 = vmatmul.bf16.gmra.mxu0 %v5061_v11  ;;  %v5068_v41 = vpop.f32.mrf.mxu3  ;;  %v1428_v11 = vadd.f32 %v4684_v9, %v4855_v10  ;;  %v3715_v10 = vld [vmem:[#allocation2 + $0x318] sm:$0xf0] }
 0x375   :  { %v1930_v60 = vadd.f32 %v4977_v59, %v1761_v0  ;;  %1633 = vmatmul.bf16.gmra.mxu2 %v5051_v12  ;;  %v5070_v59 = vpop.f32.mrf.mxu0  ;;  %v3713_v0 = vld [vmem:[#allocation2 + $0x308] sm:$0xf] }
 0x376   :  { %v5072_v40 = vor.u32 %v3962_v50, %v3713_v0 }
 0x377   :  { %v2052_v49 = vmax.f32 %v1930_v60, 0.0  ;;  %v3951_v60 = vld [vmem:[#allocation2 + $0x2c4] sm:$0xf] }
 0x378   :  { %v1594_v31 = vpop.f32.mrf.mxu2  ;;  %v5064_v45 = vpop.f32.mrf.mxu1  ;;  %5866 = vst [vmem:[#allocation121_spill] sm:$0xff] %v5072_v40  ;;  %1817 = vmatmul.bf16.gmra.mxu3 %v5072_v40 }
 0x379   :  { %v2103_v16 = vpack.c.bf16 %v2052_v49, %v2051_v48  ;;  %v1595_v35 = vadd.f32 %v1594_v31, %v1426_v6  ;;  %v5080_v31 = vor.u32 %v3951_v60, %v3675_v19 }
 0x37b   :  { %2255 = vmatmul.bf16.gmra.mxu1 %v2103_v16  ;;  %v1764_v12 = vadd.f32 %v4991_v61, %v1595_v35  ;;  %5867 = vst [vmem:[#allocation122_spill] sm:$0xff] %v5080_v31  ;;  %v5082_v6 = vpop.f32.mrf.mxu3  ;;  %v5090_v35 = vor.u32 %v3960_v54, %v3715_v10  ;;  %v3966_v54 = vld [vmem:[#allocation2 + $0x334] sm:$0xf0]  ;;  %v3691_v10 = vld [vmem:[#allocation2 + $0x2f0] sm:$0xf0] }
 0x37d   :  { %v1933_v16 = vadd.f32 %v4995_v38, %v1764_v12  ;;  %v5086_v50 = vpop.f32.mrf.mxu0  ;;  %5868 = vst [vmem:[#allocation123_spill] sm:$0xff] %v5090_v35  ;;  %v1431_v38 = vadd.f32 %v4684_v9, %v4871_v14 }
 0x37f   :  { %v2053_v40 = vmax.f32 %v1933_v16, 0.0  ;;  %v3955_v16 = vld [vmem:[#allocation2 + $0x2e4] sm:$0xf] }
 0x380   :  { %v1596_v17 = vpop.f32.mrf.mxu2  ;;  %v5078_v49 = vpop.f32.mrf.mxu1 }
 0x381   :  { %v1597_v48 = vadd.f32 %v1596_v17, %v1428_v11 }
 0x383   :  { %v1766_v0 = vadd.f32 %v5006_v46, %v1597_v48  ;;  %1986 = vmatmul.bf16.gmra.mxu0 %v5090_v35  ;;  %v5097_v12 = vpop.f32.mrf.mxu3  ;;  %v3729_v48 = vld [vmem:[#allocation2 + $0x328] sm:$0xf] }
 0x385   :  { %v1935_v61 = vadd.f32 %v5008_v4, %v1766_v0  ;;  %1638 = vmatmul.bf16.gmra.mxu2 %v5080_v31  ;;  %v5099_v4 = vpop.f32.mrf.mxu0  ;;  %v5101_v0 = vor.u32 %v3966_v54, %v3729_v48  ;;  %v3964_v31 = vld [vmem:[#allocation2 + $0x32c] sm:$0xf] }
 0x387   :  { %v2054_v11 = vmax.f32 %v1935_v61, 0.0  ;;  %5869 = vst [vmem:[#allocation124_spill] sm:$0xff] %v5101_v0  ;;  %v1433_v61 = vadd.f32 %v4684_v9, %v4888_v24  ;;  %v3731_v24 = vld [vmem:[#allocation2 + $0x338] sm:$0xf0] }
 0x388   :  { %v1599_v60 = vpop.f32.mrf.mxu2  ;;  %v5093_v19 = vpop.f32.mrf.mxu1  ;;  %1822 = vmatmul.bf16.gmra.mxu3 %v5101_v0 }
 0x389   :  { %v2104_v46 = vpack.c.bf16 %v2054_v11, %v2053_v40  ;;  %v1600_v17 = vadd.f32 %v1599_v60, %v1431_v38  ;;  %v5109_v60 = vor.u32 %v3955_v16, %v3691_v10 }
 0x38b   :  { %2260 = vmatmul.bf16.gmra.mxu1 %v2104_v46  ;;  %v1769_v35 = vadd.f32 %v5022_v3, %v1600_v17  ;;  %5870 = vst [vmem:[#allocation125_spill] sm:$0xff] %v5109_v60  ;;  %v5111_v38 = vpop.f32.mrf.mxu3  ;;  %v5119_v17 = vor.u32 %v3964_v31, %v3731_v24  ;;  %v3970_v31 = vld [vmem:[#allocation2 + $0x354] sm:$0xf0]  ;;  %v3707_v24 = vld [vmem:[#allocation2 + $0x310] sm:$0xf0] }
 0x38d   :  { %v1938_v46 = vadd.f32 %v5026_v36, %v1769_v35  ;;  %v5115_v54 = vpop.f32.mrf.mxu0  ;;  %5871 = vst [vmem:[#allocation126_spill] sm:$0xff] %v5119_v17  ;;  %v1436_v36 = vadd.f32 %v4684_v9, %v4910_v42 }
 0x38f   :  { %v2055_v0 = vmax.f32 %v1938_v46, 0.0  ;;  %v3959_v46 = vld [vmem:[#allocation2 + $0x304] sm:$0xf] }
 0x390   :  { %v1601_v14 = vpop.f32.mrf.mxu2  ;;  %v5107_v40 = vpop.f32.mrf.mxu1 }
 0x391   :  { %v1602_v11 = vadd.f32 %v1601_v14, %v1433_v61 }
 0x393   :  { %v1771_v48 = vadd.f32 %v5037_v20, %v1602_v11  ;;  %1991 = vmatmul.bf16.gmra.mxu0 %v5119_v17  ;;  %v5126_v35 = vpop.f32.mrf.mxu3  ;;  %v3745_v11 = vld [vmem:[#allocation2 + $0x348] sm:$0xf] }
 0x395   :  { %v1940_v3 = vadd.f32 %v5039_v51, %v1771_v48  ;;  %1643 = vmatmul.bf16.gmra.mxu2 %v5109_v60  ;;  %v5128_v51 = vpop.f32.mrf.mxu0  ;;  %v5130_v48 = vor.u32 %v3970_v31, %v3745_v11  ;;  %v3968_v60 = vld [vmem:[#allocation2 + $0x34c] sm:$0xf] }
 0x397   :  { %v2056_v61 = vmax.f32 %v1940_v3, 0.0  ;;  %5872 = vst [vmem:[#allocation127_spill] sm:$0xff] %v5130_v48  ;;  %v1438_v3 = vadd.f32 %v4684_v9, %v4925_v2  ;;  %v5146_v2 = vor.u32 %v3968_v60, %v3747_v26  ;;  %v3761_v60 = vld [vmem:[#allocation2 + $0x368] sm:$0xf] }
 0x398   :  { %v1604_v16 = vpop.f32.mrf.mxu2  ;;  %v5122_v10 = vpop.f32.mrf.mxu1  ;;  %1827 = vmatmul.bf16.gmra.mxu3 %v5130_v48 }
 0x399   :  { %v2105_v20 = vpack.c.bf16 %v2056_v61, %v2055_v0  ;;  %v1605_v14 = vadd.f32 %v1604_v16, %v1436_v36  ;;  %v5136_v16 = vor.u32 %v3959_v46, %v3707_v24  ;;  %5874 = vst [vmem:[#allocation129_spill] sm:$0xff] %v5146_v2 }
 0x39b   :  { %2265 = vmatmul.bf16.gmra.mxu1 %v2105_v20  ;;  %v1774_v17 = vadd.f32 %v5053_v58, %v1605_v14  ;;  %5873 = vst [vmem:[#allocation128_spill] sm:$0xff] %v5136_v16  ;;  %v5138_v36 = vpop.f32.mrf.mxu3 }
 0x39d   :  { %v1943_v20 = vadd.f32 %v5057_v23, %v1774_v17  ;;  %v5142_v31 = vpop.f32.mrf.mxu0  ;;  %v5152_v23 = vld [vmem:[%s5642_s3] ss:$0 sm:$0xff] }
 0x39f   :  { %v2057_v58 = vmax.f32 %v1943_v20, 0.0  ;;  %v3963_v20 = vld [vmem:[#allocation2 + $0x324] sm:$0xf] }
 0x3a0   :  { %v1606_v42 = vpop.f32.mrf.mxu2  ;;  %v2228_v0 = vpop.f32.mrf.mxu1 }
 0x3a1   :  { %v1607_v61 = vadd.f32 %v1606_v42, %v1438_v3  ;;  %v3974_v42 = vld [vmem:[#allocation2 + $0x374] sm:$0xf0] }
 0x3a3   :  { %v1776_v11 = vadd.f32 %v5068_v41, %v1607_v61  ;;  %1996 = vmatmul.bf16.gmra.mxu0 %v5146_v2  ;;  %v1441_v41 = vadd.f32 %v5152_v23, %v4382_v28  ;;  %v5160_v61 = vor.u32 %v3974_v42, %v3761_v60 }
 0x3a5   :  { %v1945_v9 = vadd.f32 %v5070_v59, %v1776_v11  ;;  %1648 = vmatmul.bf16.gmra.mxu2 %v5136_v16  ;;  %v5156_v59 = vpop.f32.mrf.mxu3  ;;  %v5158_v26 = vpop.f32.mrf.mxu0  ;;  %v3723_v11 = vld [vmem:[#allocation2 + $0x330] sm:$0xf0]  ;;  %v3763_v16 = vld [vmem:[#allocation2 + $0x378] sm:$0xf0] }
 0x3a7   :  { %v2058_v14 = vmax.f32 %v1945_v9, 0.0  ;;  %v1443_v9 = vadd.f32 %v5152_v23, %v4384_v33  ;;  %v3972_v33 = vld [vmem:[#allocation2 + $0x36c] sm:$0xf] }
 0x3a8   :  { %v1609_v46 = vpop.f32.mrf.mxu2  ;;  %v2231_v24 = vpop.f32.mrf.mxu1  ;;  %1832 = vmatmul.bf16.gmra.mxu3 %v5160_v61 }
 0x3a9   :  { %v2106_v17 = vpack.c.bf16 %v2058_v14, %v2057_v58  ;;  %v1610_v3 = vadd.f32 %v1609_v46, %v1441_v41  ;;  %v5166_v41 = vor.u32 %v3963_v20, %v3723_v11 }
 0x3ab   :  { %2270 = vmatmul.bf16.gmra.mxu1 %v2106_v17  ;;  %v1779_v2 = vadd.f32 %v5082_v6, %v1610_v3  ;;  %v2362_v6 = vpack.c.bf16 %v2228_v0, %v5122_v10  ;;  %v2361_v10 = vpack.c.bf16 %v5107_v40, %v5093_v19  ;;  %v1448_v19 = vadd.f32 %v5152_v23, %v4394_v47 }
 0x3ad   :  { %v5168_v17 = vpop.f32.mrf.mxu3  ;;  %v1948_v60 = vadd.f32 %v5086_v50, %v1779_v2  ;;  %v5172_v48 = vpop.f32.mrf.mxu0  ;;  %v1446_v2 = vadd.f32 %v5152_v23, %v4392_v43  ;;  %v3739_v43 = vld [vmem:[#allocation2 + $0x350] sm:$0xf0] }
 0x3af   :  { %v2059_v20 = vmax.f32 %v1948_v60, 0.0  ;;  %v3967_v60 = vld [vmem:[#allocation2 + $0x344] sm:$0xf] }
 0x3b0   :  { %v1611_v28 = vpop.f32.mrf.mxu2  ;;  %v2233_v58 = vpop.f32.mrf.mxu1 }
 0x3b1   :  { %v1612_v14 = vadd.f32 %v1611_v28, %v1443_v9  ;;  %v2363_v46 = vpack.c.bf16 %v2233_v58, %v2231_v24  ;;  %v5177_v24 = vor.u32 %v3972_v33, %v3763_v16  ;;  %v3777_v28 = vld [vmem:[#allocation2 + $0x388] sm:$0xf]  ;;  %v3978_v58 = vld [vmem:[#allocation2 + $0x394] sm:$0xf0] }
 0x3b3   :  { %v1781_v42 = vadd.f32 %v5097_v12, %v1612_v14  ;;  %2392 = vmatpush.bf16.msra.mxu2 %v2363_v46  ;;  %2001 = vmatmul.bf16.gmra.mxu0 %v5177_v24  ;;  %v2360_v14 = vpack.c.bf16 %v5078_v49, %v5064_v45  ;;  %v5192_v46 = vor.u32 %v3978_v58, %v3777_v28 }
 0x3b4   :  { %v5202_v45 = vor.u32 %v3967_v60, %v3739_v43  ;;  %v1451_v28 = vadd.f32 %v5152_v23, %v4402_v53  ;;  %v5877_v60 = vpack.c.bf16 %v4985_v52, %v4971_v25  ;;  %v3982_v43 = vld [vmem:[#allocation2 + $0x3b4] sm:$0xf0]  ;;  %v1453_v53 = vadd.f32 %v5152_v23, %v4404_v56 }
 0x3b5   :  { %v1950_v3 = vadd.f32 %v5099_v4, %v1781_v42  ;;  %1653 = vmatmul.bf16.gmra.mxu2 %v5166_v41  ;;  %v5186_v4 = vpop.f32.mrf.mxu3  ;;  %v5188_v16 = vpop.f32.mrf.mxu0 }
 0x3b7   :  { %2393 = vmatpush.bf16.msra.mxu2 %v2362_v6  ;;  %v2060_v11 = vmax.f32 %v1950_v3, 0.0 }
 0x3b8   :  { %v1614_v50 = vpop.f32.mrf.mxu2  ;;  %v5180_v12 = vpop.f32.mrf.mxu1  ;;  %1837 = vmatmul.bf16.gmra.mxu3 %v5192_v46 }
 0x3b9   :  { %v2107_v0 = vpack.c.bf16 %v2060_v11, %v2059_v20  ;;  %v1615_v9 = vadd.f32 %v1614_v50, %v1446_v2  ;;  %v3976_v50 = vld [vmem:[#allocation2 + $0x38c] sm:$0xf]  ;;  %v3779_v2 = vld [vmem:[#allocation2 + $0x398] sm:$0xf0] }
 0x3bb   :  { %2275 = vmatmul.bf16.gmra.mxu1 %v2107_v0  ;;  %2394 = vmatpush.bf16.msra.mxu2 %v2361_v10  ;;  %v1784_v40 = vadd.f32 %v5111_v38, %v1615_v9  ;;  %v5875_v38 = vpack.c.bf16 %v5047_v22, %v5033_v30  ;;  %v5215_v0 = vor.u32 %v3976_v50, %v3779_v2 }
 0x3bd   :  { %v5204_v49 = vpop.f32.mrf.mxu3  ;;  %v1953_v20 = vadd.f32 %v5115_v54, %v1784_v40  ;;  %v5876_v54 = vpack.c.bf16 %v5016_v32, %v5002_v39  ;;  %v3793_v32 = vld [vmem:[#allocation2 + $0x3a8] sm:$0xf]  ;;  %v3971_v40 = vld [vmem:[#allocation2 + $0x364] sm:$0xf] }
 0x3bf   :  { %2395 = vmatpush.bf16.msra.mxu2 %v2360_v14  ;;  %v2061_v9 = vmax.f32 %v1953_v20, 0.0  ;;  %v5878_v20 = vpack.c.bf16 %v4954_v18, %v4940_v55  ;;  %v3980_v55 = vld [vmem:[#allocation2 + $0x3ac] sm:$0xf]  ;;  %v3795_v18 = vld [vmem:[#allocation2 + $0x3b8] sm:$0xf0] }
 0x3c0   :  { %v1616_v42 = vpop.f32.mrf.mxu2  ;;  %v5198_v33 = vpop.f32.mrf.mxu1 }
 0x3c1   :  { %v1617_v6 = vadd.f32 %v1616_v42, %v1448_v19  ;;  %v5211_v11 = vpop.f32.mrf.mxu0  ;;  %v5232_v19 = vor.u32 %v3982_v43, %v3793_v32  ;;  %v3755_v42 = vld [vmem:[#allocation2 + $0x370] sm:$0xf0]  ;;  %v3809_v32 = vld [vmem:[#allocation2 + $0x3c8] sm:$0xf]  ;;  %v3986_v43 = vld [vmem:[#allocation2 + $0x3d4] sm:$0xf0] }
 0x3c2   :  { %v5245_v50 = vor.u32 %v3971_v40, %v3755_v42  ;;  %v5266_v40 = vor.u32 %v3986_v43, %v3809_v32  ;;  %v3975_v42 = vld [vmem:[#allocation2 + $0x384] sm:$0xf] }
 0x3c3   :  { %v1786_v47 = vadd.f32 %v5126_v35, %v1617_v6  ;;  %2396 = vmatpush.bf16.msra.mxu2 %v5875_v38  ;;  %2006 = vmatmul.bf16.gmra.mxu0 %v5215_v0 }
 0x3c5   :  { %v1955_v10 = vadd.f32 %v5128_v51, %v1786_v47  ;;  %1658 = vmatmul.bf16.gmra.mxu2 %v5202_v45  ;;  %v5225_v51 = vpop.f32.mrf.mxu3 }
 0x3c7   :  { %2397 = vmatpush.bf16.msra.mxu2 %v5876_v54  ;;  %v2062_v35 = vmax.f32 %v1955_v10, 0.0  ;;  %v5255_v54 = vor.u32 %v3980_v55, %v3795_v18 }
 0x3c8   :  { %v1619_v30 = vpop.f32.mrf.mxu2  ;;  %v5221_v22 = vpop.f32.mrf.mxu1  ;;  %1842 = vmatmul.bf16.gmra.mxu3 %v5232_v19 }
 0x3c9   :  { %v2108_v58 = vpack.c.bf16 %v2062_v35, %v2061_v9  ;;  %v1620_v14 = vadd.f32 %v1619_v30, %v1451_v28  ;;  %v5230_v39 = vpop.f32.mrf.mxu0 }
 0x3cb   :  { %2280 = vmatmul.bf16.gmra.mxu1 %v2108_v58  ;;  %2398 = vmatpush.bf16.msra.mxu2 %v5877_v60  ;;  %v1789_v6 = vadd.f32 %v5138_v36, %v1620_v14 }
 0x3cd   :  { %v5247_v2 = vpop.f32.mrf.mxu3  ;;  %v1958_v56 = vadd.f32 %v5142_v31, %v1789_v6  ;;  %v1456_v31 = vadd.f32 %v5152_v23, %v4412_v62  ;;  %v1458_v6 = vadd.f32 %v5152_v23, %v4414_v1  ;;  %v3984_v1 = vld [vmem:[#allocation2 + $0x3cc] sm:$0xf] }
 0x3cf   :  { %2399 = vmatpush.bf16.msra.mxu2 %v5878_v20  ;;  %v2063_v35 = vmax.f32 %v1958_v56, 0.0 }
 0x3d0   :  { %v1621_v25 = vpop.f32.mrf.mxu2  ;;  %v5241_v52 = vpop.f32.mrf.mxu1 }
 0x3d1   :  { %v1622_v47 = vadd.f32 %v1621_v25, %v1453_v53  ;;  %v5251_v10 = vpop.f32.mrf.mxu0  ;;  %v3771_v53 = vld [vmem:[#allocation2 + $0x390] sm:$0xf0] }
 0x3d3   :  { %v1791_v36 = vadd.f32 %v5156_v59, %v1622_v47  ;;  %2011 = vmatmul.bf16.gmra.mxu0 %v5255_v54 }
 0x3d5   :  { %v1960_v9 = vadd.f32 %v5158_v26, %v1791_v36  ;;  %1663 = vmatmul.bf16.gmra.mxu2 %v5245_v50  ;;  %v5262_v14 = vpop.f32.mrf.mxu3  ;;  %v5276_v36 = vor.u32 %v3975_v42, %v3771_v53  ;;  %v3990_v42 = vld [vmem:[#allocation2 + $0x3f4] sm:$0xf0] }
 0x3d7   :  { %v2064_v30 = vmax.f32 %v1960_v9, 0.0 }
 0x3d8   :  { %v1624_v28 = vpop.f32.mrf.mxu2  ;;  %v5258_v58 = vpop.f32.mrf.mxu1  ;;  %1847 = vmatmul.bf16.gmra.mxu3 %v5266_v40 }
 0x3d9   :  { %v2109_v59 = vpack.c.bf16 %v2064_v30, %v2063_v35  ;;  %v1625_v60 = vadd.f32 %v1624_v28, %v1456_v31  ;;  %v5264_v26 = vpop.f32.mrf.mxu0  ;;  %v3811_v35 = vld [vmem:[#allocation2 + $0x3d8] sm:$0xf0] }
 0x3da   :  { %v5286_v28 = vor.u32 %v3984_v1, %v3811_v35 }
 0x3db   :  { %2285 = vmatmul.bf16.gmra.mxu1 %v2109_v59  ;;  %v1794_v20 = vadd.f32 %v5168_v17, %v1625_v60 }
 0x3dd   :  { %v1963_v55 = vadd.f32 %v5172_v48, %v1794_v20  ;;  %v5280_v9 = vpop.f32.mrf.mxu3  ;;  %v3979_v20 = vld [vmem:[#allocation2 + $0x3a4] sm:$0xf] }
 0x3df   :  { %v2065_v31 = vmax.f32 %v1963_v55, 0.0 }
 0x3e0   :  { %v1626_v62 = vpop.f32.mrf.mxu2  ;;  %v5272_v25 = vpop.f32.mrf.mxu1 }
 0x3e1   :  { %v1627_v47 = vadd.f32 %v1626_v62, %v1458_v6  ;;  %v5284_v30 = vpop.f32.mrf.mxu0  ;;  %v3787_v62 = vld [vmem:[#allocation2 + $0x3b0] sm:$0xf0] }
 0x3e3   :  { %v1796_v18 = vadd.f32 %v5186_v4, %v1627_v47  ;;  %2016 = vmatmul.bf16.gmra.mxu0 %v5286_v28  ;;  %v1461_v4 = vadd.f32 %v5152_v23, %v4422_v8  ;;  %v1463_v47 = vadd.f32 %v5152_v23, %v4424_v13  ;;  %v3827_v13 = vld [vmem:[#allocation2 + $0x3f8] sm:$0xf0] }
 0x3e5   :  { %v1965_v17 = vadd.f32 %v5188_v16, %v1796_v18  ;;  %1668 = vmatmul.bf16.gmra.mxu2 %v5276_v36  ;;  %v3825_v16 = vld [vmem:[#allocation2 + $0x3e8] sm:$0xf]  ;;  %v5293_v53 = vpop.f32.mrf.mxu3 }
 0x3e6   :  { %v5295_v6 = vor.u32 %v3990_v42, %v3825_v16 }
 0x3e7   :  { %v2066_v59 = vmax.f32 %v1965_v17, 0.0 }
 0x3e8   :  { %v1629_v60 = vpop.f32.mrf.mxu2  ;;  %v5289_v48 = vpop.f32.mrf.mxu1  ;;  %1852 = vmatmul.bf16.gmra.mxu3 %v5295_v6 }
 0x3e9   :  { %v2110_v32 = vpack.c.bf16 %v2066_v59, %v2065_v31  ;;  %v1630_v43 = vadd.f32 %v1629_v60, %v1461_v4  ;;  %v1979_v18 = vpop.f32.mrf.mxu0  ;;  %v5305_v31 = vor.u32 %v3979_v20, %v3787_v62  ;;  %v3988_v4 = vld [vmem:[#allocation2 + $0x3ec] sm:$0xf] }
 0x3eb   :  { %2290 = vmatmul.bf16.gmra.mxu1 %v2110_v32  ;;  %v1799_v55 = vadd.f32 %v5204_v49, %v1630_v43  ;;  %v5311_v32 = vor.u32 %v3988_v4, %v3827_v13 }
 0x3ed   :  { %v1968_v59 = vadd.f32 %v5211_v11, %v1799_v55  ;;  %v1813_v42 = vpop.f32.mrf.mxu3  ;;  %v1466_v11 = vadd.f32 %v5152_v23, %v4432_v29 }
 0x3ef   :  { %v2067_v43 = vmax.f32 %v1968_v59, 0.0 }
 0x3f0   :  { %v1631_v8 = vpop.f32.mrf.mxu2  ;;  %v5301_v1 = vpop.f32.mrf.mxu1 }
 0x3f1   :  { %v1632_v35 = vadd.f32 %v1631_v8, %v1463_v47  ;;  %v1982_v62 = vpop.f32.mrf.mxu0  ;;  %v3803_v8 = vld [vmem:[#allocation2 + $0x3d0] sm:$0xf0] }
 0x3f3   :  { %v1801_v60 = vadd.f32 %v5225_v51, %v1632_v35  ;;  %2021 = vmatmul.bf16.gmra.mxu0 %v5311_v32  ;;  %v1468_v35 = vadd.f32 %v5152_v23, %v4437_v34 }
 0x3f5   :  { %v1970_v49 = vadd.f32 %v5230_v39, %v1801_v60  ;;  %1673 = vmatmul.bf16.gmra.mxu2 %v5305_v31  ;;  %v3983_v39 = vld [vmem:[#allocation2 + $0x3c4] sm:$0xf]  ;;  %v1815_v3 = vpop.f32.mrf.mxu3 }
 0x3f7   :  { %v2068_v16 = vmax.f32 %v1970_v49, 0.0  ;;  %v5323_v49 = vor.u32 %v3983_v39, %v3803_v8 }
 0x3f8   :  { %v1634_v47 = vpop.f32.mrf.mxu2  ;;  %v5314_v20 = vpop.f32.mrf.mxu1 }
 0x3f9   :  { %v2111_v51 = vpack.c.bf16 %v2068_v16, %v2067_v43  ;;  %v1635_v55 = vadd.f32 %v1634_v47, %v1466_v11  ;;  %v1984_v16 = vpop.f32.mrf.mxu0 }
 0x3fb   :  { %2295 = vmatmul.bf16.gmra.mxu1 %v2111_v51  ;;  %v1804_v59 = vadd.f32 %v5247_v2, %v1635_v55  ;;  %v1471_v55 = vadd.f32 %v5152_v23, %v4448_v44 }
 0x3fd   :  { %v1973_v29 = vadd.f32 %v5251_v10, %v1804_v59  ;;  %v3987_v59 = vld [vmem:[#allocation2 + $0x3e4] sm:$0xf] }
 0x3ff   :  { %v2069_v11 = vmax.f32 %v1973_v29, 0.0 }
 0x400   :  { %v1636_v60 = vpop.f32.mrf.mxu2  ;;  %v5321_v4 = vpop.f32.mrf.mxu1 }
 0x401   :  { %v1637_v13 = vadd.f32 %v1636_v60, %v1468_v35  ;;  %v1818_v35 = vpop.f32.mrf.mxu3  ;;  %v1987_v10 = vpop.f32.mrf.mxu0 }
 0x403   :  { %v1806_v43 = vadd.f32 %v5262_v14, %v1637_v13  ;;  %v3819_v14 = vld [vmem:[#allocation2 + $0x3f0] sm:$0xf0] }
 0x405   :  { %v1975_v47 = vadd.f32 %v5264_v26, %v1806_v43  ;;  %1678 = vmatmul.bf16.gmra.mxu2 %v5323_v49  ;;  %v1473_v26 = vadd.f32 %v5152_v23, %v4453_v57 }
 0x407   :  { %v2070_v34 = vmax.f32 %v1975_v47, 0.0  ;;  %v5336_v47 = vor.u32 %v3987_v59, %v3819_v14 }
 0x408   :  { %v1639_v51 = vpop.f32.mrf.mxu2  ;;  %v5329_v2 = vpop.f32.mrf.mxu1 }
 0x409   :  { %v2112_v39 = vpack.c.bf16 %v2070_v34, %v2069_v11  ;;  %v1640_v8 = vadd.f32 %v1639_v51, %v1471_v55  ;;  %v1820_v34 = vpop.f32.mrf.mxu3 }
 0x40b   :  { %2300 = vmatmul.bf16.gmra.mxu1 %v2112_v39  ;;  %v1809_v60 = vadd.f32 %v5280_v9, %v1640_v8  ;;  %v1989_v39 = vpop.f32.mrf.mxu0  ;;  %v1476_v9 = vadd.f32 %v5152_v23, %v4466_v15 }
 0x40d   :  { %v1978_v38 = vadd.f32 %v5284_v30, %v1809_v60  ;;  %v1478_v30 = vadd.f32 %v5152_v23, %v4473_v27 }
 0x40f   :  { %v2071_v51 = vmax.f32 %v1978_v38, 0.0 }
 0x410   :  { %v1641_v13 = vpop.f32.mrf.mxu2  ;;  %v2263_v29 = vpop.f32.mrf.mxu1 }
 0x411   :  { %v1642_v43 = vadd.f32 %v1641_v13, %v1473_v26 }
 0x413   :  { %v1811_v44 = vadd.f32 %v5293_v53, %v1642_v43  ;;  %v1823_v53 = vpop.f32.mrf.mxu3  ;;  %v1992_v13 = vpop.f32.mrf.mxu0 }
 0x415   :  { %v1980_v11 = vadd.f32 %v1979_v18, %v1811_v44  ;;  %1683 = vmatmul.bf16.gmra.mxu2 %v5336_v47 }
 0x417   :  { %v2072_v55 = vmax.f32 %v1980_v11, 0.0 }
 0x418   :  { %v1644_v56 = vpop.f32.mrf.mxu2  ;;  %v2266_v57 = vpop.f32.mrf.mxu1 }
 0x419   :  { %v2113_v8 = vpack.c.bf16 %v2072_v55, %v2071_v51  ;;  %v1645_v26 = vadd.f32 %v1644_v56, %v1476_v9  ;;  %v1481_v56 = vadd.f32 %v5152_v23, %v4486_v63 }
 0x41b   :  { %2305 = vmatmul.bf16.gmra.mxu1 %v2113_v8  ;;  %v1814_v59 = vadd.f32 %v1813_v42, %v1645_v26  ;;  %v1825_v27 = vpop.f32.mrf.mxu3  ;;  %v1994_v9 = vpop.f32.mrf.mxu0  ;;  %v5879_v8 = vld [vmem:[#allocation41_spill] sm:$0xff] }
 0x41c   :  { %v1483_v26 = vadd.f32 %v5152_v23, %v5879_v8 }
 0x41d   :  { %v1983_v38 = vadd.f32 %v1982_v62, %v1814_v59 }
 0x41f   :  { %v2073_v11 = vmax.f32 %v1983_v38, 0.0 }
 0x420   :  { %v1646_v18 = vpop.f32.mrf.mxu2  ;;  %v2268_v14 = vpop.f32.mrf.mxu1 }
 0x421   :  { %v1647_v60 = vadd.f32 %v1646_v18, %v1478_v30  ;;  %v2370_v38 = vpack.c.bf16 %v2268_v14, %v2266_v57  ;;  %v5882_v14 = vld [vmem:[#allocation47_spill] sm:$0xff] }
 0x423   :  { %v1816_v43 = vadd.f32 %v1815_v3, %v1647_v60  ;;  %v1828_v60 = vpop.f32.mrf.mxu3  ;;  %v1997_v63 = vpop.f32.mrf.mxu0 }
 0x425   :  { %v1985_v44 = vadd.f32 %v1984_v16, %v1816_v43  ;;  %2400 = vmatmul.bf16.vlgmr.msra.gmra.mxu2 %v4362_v37 }
 0x427   :  { %v2074_v17 = vmax.f32 %v1985_v44, 0.0 }
 0x428   :  { %v1649_v15 = vpop.f32.mrf.mxu2  ;;  %v2271_v51 = vpop.f32.mrf.mxu1 }
 0x429   :  { %v2114_v55 = vpack.c.bf16 %v2074_v17, %v2073_v11  ;;  %v1650_v42 = vadd.f32 %v1649_v15, %v1481_v56  ;;  %v5880_v17 = vld [vmem:[#allocation17_spill] sm:$0xff] }
 0x42b   :  { %2310 = vmatmul.bf16.gmra.mxu1 %v2114_v55  ;;  %v1819_v62 = vadd.f32 %v1818_v35, %v1650_v42  ;;  %v5881_v35 = vld [vmem:[#allocation45_spill] sm:$0xff]  ;;  %v1830_v57 = vpop.f32.mrf.mxu3  ;;  %v1488_v42 = vadd.f32 %v5152_v23, %v5882_v14 }
 0x42c   :  { %v1486_v55 = vadd.f32 %v5152_v23, %v5881_v35 }
 0x42d   :  { %v1988_v59 = vadd.f32 %v1987_v10, %v1819_v62 }
 0x42f   :  { %v2075_v44 = vmax.f32 %v1988_v59, 0.0 }
 0x430   :  { %v1651_v3 = vpop.f32.mrf.mxu2  ;;  %v2273_v16 = vpop.f32.mrf.mxu1 }
 0x431   :  { %v1652_v30 = vadd.f32 %v1651_v3, %v1483_v26  ;;  %v2371_v37 = vpack.c.bf16 %v2273_v16, %v2271_v51  ;;  %v2369_v51 = vpack.c.bf16 %v2263_v29, %v5329_v2  ;;  %v1999_v26 = vpop.f32.mrf.mxu0 }
 0x433   :  { %v1821_v18 = vadd.f32 %v1820_v34, %v1652_v30  ;;  %2561 = vmatpush.bf16.msra.mxu3 %v2371_v37  ;;  %v5883_v37 = vpack.c.bf16 %v5301_v1, %v5289_v48  ;;  %v5887_v1 = vpack.c.bf16 %v5241_v52, %v5221_v22 }
 0x435   :  { %v1990_v43 = vadd.f32 %v1989_v39, %v1821_v18  ;;  %2405 = vmatmul.bf16.gmra.mxu2 %v5880_v17  ;;  %v2368_v39 = vpack.c.bf16 %v5321_v4, %v5314_v20  ;;  %v5884_v4 = vld [vmem:[#allocation19_spill] sm:$0xff] }
 0x437   :  { %2562 = vmatpush.bf16.msra.mxu3 %v2370_v38  ;;  %v2076_v11 = vmax.f32 %v1990_v43, 0.0  ;;  %v1833_v38 = vpop.f32.mrf.mxu3 }
 0x438   :  { %v1654_v15 = vpop.f32.mrf.mxu2  ;;  %v5351_v56 = vpop.f32.mrf.mxu1 }
 0x439   :  { %v2115_v10 = vpack.c.bf16 %v2076_v11, %v2075_v44  ;;  %v1655_v34 = vadd.f32 %v1654_v15, %v1486_v55  ;;  %v5886_v44 = vld [vmem:[#allocation51_spill] sm:$0xff]  ;;  %v2002_v11 = vpop.f32.mrf.mxu0  ;;  %v5889_v15 = vpack.c.bf16 %v5198_v33, %v5180_v12 }
 0x43b   :  { %2315 = vmatmul.bf16.gmra.mxu1 %v2115_v10  ;;  %2563 = vmatpush.bf16.msra.mxu3 %v2369_v51  ;;  %v1824_v8 = vadd.f32 %v1823_v53, %v1655_v34  ;;  %v5885_v53 = vpack.c.bf16 %v5272_v25, %v5258_v58 }
 0x43d   :  { %v1993_v29 = vadd.f32 %v1992_v13, %v1824_v8  ;;  %v1491_v13 = vadd.f32 %v5152_v23, %v5886_v44  ;;  %v5891_v8 = vld [vmem:[#allocation21_spill] sm:$0xff]  ;;  %v5894_v44 = vld [vmem:[#allocation42_spill] sm:$0xff] }
 0x43f   :  { %2564 = vmatpush.bf16.msra.mxu3 %v2368_v39  ;;  %v2077_v59 = vmax.f32 %v1993_v29, 0.0  ;;  %v1835_v34 = vpop.f32.mrf.mxu3  ;;  %v5890_v39 = vld [vmem:[#allocation37_spill] sm:$0xff] }
 0x440   :  { %v1656_v62 = vpop.f32.mrf.mxu2  ;;  %v5360_v3 = vpop.f32.mrf.mxu1 }
 0x441   :  { %v1657_v16 = vadd.f32 %v1656_v62, %v1488_v42  ;;  %v2372_v2 = vpack.c.bf16 %v5360_v3, %v5351_v56  ;;  %v2004_v14 = vpop.f32.mrf.mxu0 }
 0x443   :  { %v1826_v30 = vadd.f32 %v1825_v27, %v1657_v16  ;;  %2565 = vmatpush.bf16.msra.mxu3 %v5883_v37  ;;  %v5892_v16 = vld [vmem:[#allocation57_spill] sm:$0xff] }
 0x444   :  { %v1496_v29 = vadd.f32 %v5152_v23, %v5892_v16 }
 0x445   :  { %v1995_v20 = vadd.f32 %v1994_v9, %v1826_v30  ;;  %2410 = vmatmul.bf16.gmra.mxu2 %v5884_v4  ;;  %v5888_v9 = vld [vmem:[#allocation53_spill] sm:$0xff] }
 0x446   :  { %v1493_v58 = vadd.f32 %v5152_v23, %v5888_v9  ;;  %v5895_v9 = vld [vmem:[#allocation23_spill] sm:$0xff] }
 0x447   :  { %2566 = vmatpush.bf16.msra.mxu3 %v5885_v53  ;;  %v2078_v18 = vmax.f32 %v1995_v20, 0.0  ;;  %v1838_v20 = vpop.f32.mrf.mxu3 }
 0x448   :  { %v1659_v43 = vpop.f32.mrf.mxu2  ;;  %v5371_v17 = vpop.f32.mrf.mxu1 }
 0x449   :  { %v2116_v27 = vpack.c.bf16 %v2078_v18, %v2077_v59  ;;  %v1660_v48 = vadd.f32 %v1659_v43, %v1491_v13  ;;  %v2007_v4 = vpop.f32.mrf.mxu0  ;;  %v5893_v59 = vld [vmem:[#allocation59_spill] sm:$0xff] }
 0x44b   :  { %2320 = vmatmul.bf16.gmra.mxu1 %v2116_v27  ;;  %2567 = vmatpush.bf16.msra.mxu3 %v5887_v1  ;;  %v1829_v25 = vadd.f32 %v1828_v60, %v1660_v48 }
 0x44d   :  { %v1998_v22 = vadd.f32 %v1997_v63, %v1829_v25  ;;  %v1498_v63 = vadd.f32 %v5152_v23, %v5893_v59 }
 0x44f   :  { %2568 = vmatpush.bf16.msra.mxu3 %v5889_v15  ;;  %v2079_v60 = vmax.f32 %v1998_v22, 0.0  ;;  %v1840_v1 = vpop.f32.mrf.mxu3 }
 0x450   :  { %v1661_v35 = vpop.f32.mrf.mxu2  ;;  %v5383_v55 = vpop.f32.mrf.mxu1 }
 0x451   :  { %v1662_v51 = vadd.f32 %v1661_v35, %v1493_v58  ;;  %v2373_v10 = vpack.c.bf16 %v5383_v55, %v5371_v17  ;;  %v2009_v15 = vpop.f32.mrf.mxu0  ;;  %v5920_v55 = vld [vmem:[#allocation36_spill] sm:$0xff] }
 0x452   :  { %2569 = vmatmul.bf16.vlgmr.msra.gmra.mxu3 %v5890_v39 }
 0x453   :  { %v1831_v52 = vadd.f32 %v1830_v57, %v1662_v51  ;;  %v5896_v51 = vld [vmem:[#allocation63_spill] sm:$0xff] }
 0x454   :  { %v1501_v39 = vadd.f32 %v5152_v23, %v5896_v51 }
 0x455   :  { %v2000_v42 = vadd.f32 %v1999_v26, %v1831_v52  ;;  %2415 = vmatmul.bf16.gmra.mxu2 %v5891_v8 }
 0x457   :  { %v2080_v62 = vmax.f32 %v2000_v42, 0.0  ;;  %v5897_v42 = vld [vmem:[#allocation65_spill] sm:$0xff] }
 0x458   :  { %v1664_v12 = vpop.f32.mrf.mxu2  ;;  %v5389_v33 = vpop.f32.mrf.mxu1 }
 0x459   :  { %v2117_v30 = vpack.c.bf16 %v2080_v62, %v2079_v60  ;;  %v1665_v37 = vadd.f32 %v1664_v12, %v1496_v29  ;;  %v2012_v16 = vpop.f32.mrf.mxu0  ;;  %v5898_v29 = vld [vmem:[#allocation48_spill] sm:$0xff] }
 0x45b   :  { %2325 = vmatmul.bf16.gmra.mxu1 %v2117_v30  ;;  %v1834_v57 = vadd.f32 %v1833_v38, %v1665_v37 }
 0x45d   :  { %v2003_v13 = vadd.f32 %v2002_v11, %v1834_v57  ;;  %v1503_v11 = vadd.f32 %v5152_v23, %v5897_v42 }
 0x45f   :  { %v2081_v58 = vmax.f32 %v2003_v13, 0.0 }
 0x460   :  { %v1666_v26 = vpop.f32.mrf.mxu2  ;;  %v5395_v53 = vpop.f32.mrf.mxu1 }
 0x461   :  { %v1667_v18 = vadd.f32 %v1666_v26, %v1498_v63  ;;  %v2374_v43 = vpack.c.bf16 %v5395_v53, %v5389_v33  ;;  %v5899_v63 = vld [vmem:[#allocation25_spill] sm:$0xff]  ;;  %v5919_v33 = vld [vmem:[#allocation32_spill] sm:$0xff] }
 0x462   :  { %2574 = vmatmul.bf16.gmra.mxu3 %v5894_v44  ;;  %v5900_v44 = vld [vmem:[#allocation69_spill] sm:$0xff] }
 0x463   :  { %v1836_v27 = vadd.f32 %v1835_v34, %v1667_v18  ;;  %v1506_v13 = vadd.f32 %v5152_v23, %v5900_v44 }
 0x465   :  { %v2005_v48 = vadd.f32 %v2004_v14, %v1836_v27  ;;  %2420 = vmatmul.bf16.gmra.mxu2 %v5895_v9  ;;  %v1843_v14 = vpop.f32.mrf.mxu3 }
 0x467   :  { %v2082_v25 = vmax.f32 %v2005_v48, 0.0 }
 0x468   :  { %v1669_v35 = vpop.f32.mrf.mxu2  ;;  %v5401_v38 = vpop.f32.mrf.mxu1 }
 0x469   :  { %v2118_v22 = vpack.c.bf16 %v2082_v25, %v2081_v58  ;;  %v1670_v52 = vadd.f32 %v1669_v35, %v1501_v39  ;;  %v2014_v58 = vpop.f32.mrf.mxu0  ;;  %v5901_v25 = vld [vmem:[#allocation71_spill] sm:$0xff]  ;;  %v5902_v39 = vld [vmem:[#allocation54_spill] sm:$0xff] }
 0x46b   :  { %2330 = vmatmul.bf16.gmra.mxu1 %v2118_v22  ;;  %v1839_v34 = vadd.f32 %v1838_v20, %v1670_v52 }
 0x46d   :  { %v2008_v30 = vadd.f32 %v2007_v4, %v1839_v34  ;;  %v1845_v27 = vpop.f32.mrf.mxu3  ;;  %v1508_v4 = vadd.f32 %v5152_v23, %v5901_v25 }
 0x46f   :  { %v2083_v57 = vmax.f32 %v2008_v30, 0.0 }
 0x470   :  { %v1671_v8 = vpop.f32.mrf.mxu2  ;;  %v5407_v60 = vpop.f32.mrf.mxu1 }
 0x471   :  { %v1672_v62 = vadd.f32 %v1671_v8, %v1503_v11  ;;  %v2375_v12 = vpack.c.bf16 %v5407_v60, %v5401_v38  ;;  %v2017_v34 = vpop.f32.mrf.mxu0  ;;  %v5903_v8 = vld [vmem:[#allocation27_spill] sm:$0xff]  ;;  %v5918_v60 = vld [vmem:[#allocation49_spill] sm:$0xff] }
 0x472   :  { %2579 = vmatmul.bf16.gmra.mxu3 %v5898_v29  ;;  %v5917_v38 = vld [vmem:[#allocation83_spill] sm:$0xff] }
 0x473   :  { %v1841_v37 = vadd.f32 %v1840_v1, %v1672_v62 }
 0x475   :  { %v2010_v59 = vadd.f32 %v2009_v15, %v1841_v37  ;;  %2425 = vmatmul.bf16.gmra.mxu2 %v5899_v63  ;;  %v1848_v42 = vpop.f32.mrf.mxu3 }
 0x477   :  { %v2084_v26 = vmax.f32 %v2010_v59, 0.0  ;;  %v5904_v59 = vld [vmem:[#allocation75_spill] sm:$0xff] }
 0x478   :  { %v1674_v18 = vpop.f32.mrf.mxu2  ;;  %v5413_v20 = vpop.f32.mrf.mxu1 }
 0x479   :  { %v2119_v48 = vpack.c.bf16 %v2084_v26, %v2083_v57  ;;  %v1675_v9 = vadd.f32 %v1674_v18, %v1506_v13  ;;  %v5905_v18 = vld [vmem:[#allocation77_spill] sm:$0xff]  ;;  %v2019_v13 = vpop.f32.mrf.mxu0 }
 0x47b   :  { %2335 = vmatmul.bf16.gmra.mxu1 %v2119_v48  ;;  %v1844_v1 = vadd.f32 %v1843_v14, %v1675_v9  ;;  %v1511_v14 = vadd.f32 %v5152_v23, %v5904_v59  ;;  %v5909_v59 = vld [vmem:[#allocation82_spill] sm:$0xff] }
 0x47d   :  { %v2013_v22 = vadd.f32 %v2012_v16, %v1844_v1  ;;  %v1850_v26 = vpop.f32.mrf.mxu3  ;;  %v1513_v16 = vadd.f32 %v5152_v23, %v5905_v18 }
 0x47f   :  { %v2085_v62 = vmax.f32 %v2013_v22, 0.0 }
 0x480   :  { %v1676_v15 = vpop.f32.mrf.mxu2  ;;  %v5419_v35 = vpop.f32.mrf.mxu1 }
 0x481   :  { %v1677_v51 = vadd.f32 %v1676_v15, %v1508_v4  ;;  %v5907_v15 = vld [vmem:[#allocation30_spill] sm:$0xff] }
 0x482   :  { %2584 = vmatmul.bf16.gmra.mxu3 %v5902_v39 }
 0x483   :  { %v1846_v52 = vadd.f32 %v1845_v27, %v1677_v51 }
 0x485   :  { %v2015_v11 = vadd.f32 %v2014_v58, %v1846_v52  ;;  %2430 = vmatmul.bf16.gmra.mxu2 %v5903_v8  ;;  %v5906_v58 = vld [vmem:[#allocation60_spill] sm:$0xff]  ;;  %v1853_v39 = vpop.f32.mrf.mxu3 }
 0x486   :  { %v5908_v8 = vld [vmem:[#allocation80_spill] sm:$0xff] }
 0x487   :  { %v2086_v29 = vmax.f32 %v2015_v11, 0.0 }
 0x488   :  { %v1679_v30 = vpop.f32.mrf.mxu2  ;;  %v2301_v37 = vpop.f32.mrf.mxu1 }
 0x489   :  { %v2120_v63 = vpack.c.bf16 %v2086_v29, %v2085_v62  ;;  %v1680_v57 = vadd.f32 %v1679_v30, %v1511_v14  ;;  %v1516_v62 = vadd.f32 %v5152_v23, %v5908_v8  ;;  %v2022_v29 = vpop.f32.mrf.mxu0  ;;  %v1518_v14 = vadd.f32 %v5152_v23, %v5909_v59  ;;  %v5915_v59 = vld [vmem:[#allocation43_spill] sm:$0xff] }
 0x48b   :  { %2340 = vmatmul.bf16.gmra.mxu1 %v2120_v63  ;;  %v1849_v44 = vadd.f32 %v1848_v42, %v1680_v57 }
 0x48d   :  { %v2018_v25 = vadd.f32 %v2017_v34, %v1849_v44  ;;  %v1855_v18 = vpop.f32.mrf.mxu3 }
 0x48f   :  { %v2087_v51 = vmax.f32 %v2018_v25, 0.0 }
 0x490   :  { %v1681_v27 = vpop.f32.mrf.mxu2  ;;  %v2303_v48 = vpop.f32.mrf.mxu1 }
 0x491   :  { %v1682_v9 = vadd.f32 %v1681_v27, %v1513_v16  ;;  %v5910_v16 = vld [vmem:[#allocation66_spill] sm:$0xff]  ;;  %v2024_v27 = vpop.f32.mrf.mxu0 }
 0x492   :  { %2589 = vmatmul.bf16.gmra.mxu3 %v5906_v58  ;;  %v5911_v58 = vld [vmem:[#allocation34_spill] sm:$0xff] }
 0x493   :  { %v1851_v4 = vadd.f32 %v1850_v26, %v1682_v9 }
 0x495   :  { %v2020_v1 = vadd.f32 %v2019_v13, %v1851_v4  ;;  %2435 = vmatmul.bf16.gmra.mxu2 %v5907_v15 }
 0x497   :  { %v2088_v22 = vmax.f32 %v2020_v1, 0.0 }
 0x498   :  { %v1684_v52 = vpop.f32.mrf.mxu2  ;;  %v2306_v11 = vpop.f32.mrf.mxu1 }
 0x499   :  { %v2121_v42 = vpack.c.bf16 %v2088_v22, %v2087_v51  ;;  %v1685_v30 = vadd.f32 %v1684_v52, %v1516_v62  ;;  %v5913_v52 = vld [vmem:[#allocation38_spill] sm:$0xff]  ;;  %v2377_v62 = vpack.c.bf16 %v2303_v48, %v2301_v37 }
 0x49b   :  { %2345 = vmatmul.bf16.gmra.mxu1 %v2121_v42  ;;  %v1854_v34 = vadd.f32 %v1853_v39, %v1685_v30  ;;  %v5912_v39 = vld [vmem:[#allocation72_spill] sm:$0xff]  ;;  %v2376_v42 = vpack.c.bf16 %v5419_v35, %v5413_v20  ;;  %v5914_v30 = vld [vmem:[#allocation78_spill] sm:$0xff] }
 0x49c   :  { %v5916_v35 = vld [vmem:[#allocation28_spill] sm:$0xff] }
 0x49d   :  { %v2023_v44 = vadd.f32 %v2022_v29, %v1854_v34 }
 0x49f   :  { %v2089_v25 = vmax.f32 %v2023_v44, 0.0 }
 0x4a0   :  { %v1686_v63 = vpop.f32.mrf.mxu2  ;;  %v2308_v57 = vpop.f32.mrf.mxu1 }
 0x4a1   :  { %v1687_v26 = vadd.f32 %v1686_v63, %v1518_v14  ;;  %v2378_v22 = vpack.c.bf16 %v2308_v57, %v2306_v11  ;;  %v5923_v14 = vld [vmem:[#allocation46_spill] sm:$0xff]  ;;  %v5924_v57 = vld [vmem:[#allocation52_spill] sm:$0xff] }
 0x4a2   :  { %2594 = vmatmul.bf16.gmra.mxu3 %v5910_v16  ;;  %v5925_v16 = vld [vmem:[#allocation58_spill] sm:$0xff] }
 0x4a3   :  { %v1856_v13 = vadd.f32 %v1855_v18, %v1687_v26 }
 0x4a5   :  { %v2025_v9 = vadd.f32 %v2024_v27, %v1856_v13  ;;  %2440 = vmatmul.bf16.gmra.mxu2 %v5911_v58 }
 0x4a7   :  { %v2090_v4 = vmax.f32 %v2025_v9, 0.0  ;;  %v5926_v9 = vld [vmem:[#allocation64_spill] sm:$0xff] }
 0x4a8   :  { %v2311_v1 = vpop.f32.mrf.mxu1 }
 0x4a9   :  { %v2122_v15 = vpack.c.bf16 %v2090_v4, %v2089_v25 }
 0x4ab   :  { %2350 = vmatmul.bf16.gmra.mxu1 %v2122_v15  ;;  %v5928_v15 = vld [vmem:[#allocation70_spill] sm:$0xff] }
 0x4b0   :  { %v2313_v51 = vpop.f32.mrf.mxu1 }
 0x4b1   :  { %v2379_v23 = vpack.c.bf16 %v2313_v51, %v2311_v1  ;;  %v5927_v1 = vld [vmem:[#allocation31_spill] sm:$0xff] }
 0x4b2   :  { %2599 = vmatmul.bf16.gmra.mxu3 %v5912_v39  ;;  %v5929_v51 = vld [vmem:[#allocation35_spill] sm:$0xff] }
 0x4b3   :  { %2730 = vmatpush.bf16.msra.mxu0 %v2379_v23  ;;  %v5930_v23 = vld [vmem:[#allocation76_spill] sm:$0xff]  ;;  %v5931_v39 = vld [vmem:[#allocation39_spill] sm:$0xff] }
 0x4b5   :  { %2445 = vmatmul.bf16.gmra.mxu2 %v5913_v52  ;;  %v5933_v52 = vld [vmem:[#allocation44_spill] sm:$0xff] }
 0x4b7   :  { %2731 = vmatpush.bf16.msra.mxu0 %v2378_v22  ;;  %v5932_v22 = vld [vmem:[#allocation81_spill] sm:$0xff] }
 0x4b8   :  { %v2316_v8 = vpop.f32.mrf.mxu1 }
 0x4bb   :  { %2732 = vmatpush.bf16.msra.mxu0 %v2377_v62  ;;  %v5934_v62 = vld [vmem:[#allocation85_spill] sm:$0xff] }
 0x4bf   :  { %2733 = vmatpush.bf16.msra.mxu0 %v2376_v42  ;;  %v5935_v42 = vld [vmem:[#allocation50_spill] sm:$0xff] }
 0x4c0   :  { %v2318_v29 = vpop.f32.mrf.mxu1 }
 0x4c1   :  { %v2380_v4 = vpack.c.bf16 %v2318_v29, %v2316_v8  ;;  %v2401_v8 = vpop.f32.mrf.mxu2  ;;  %v5936_v29 = vld [vmem:[#allocation56_spill] sm:$0xff] }
 0x4c2   :  { %2604 = vmatmul.bf16.gmra.mxu3 %v5914_v30 }
 0x4c3   :  { %2734 = vmatpush.bf16.msra.mxu0 %v2375_v12 }
 0x4c5   :  { %2450 = vmatmul.bf16.gmra.mxu2 %v5915_v59 }
 0x4c7   :  { %2735 = vmatpush.bf16.msra.mxu0 %v2374_v43 }
 0x4c8   :  { %v2321_v11 = vpop.f32.mrf.mxu1 }
 0x4cb   :  { %2736 = vmatpush.bf16.msra.mxu0 %v2373_v10  ;;  %v5921_v10 = vld [vmem:[#allocation88_spill] sm:$0xff] }
 0x4cf   :  { %2737 = vmatpush.bf16.msra.mxu0 %v2372_v2  ;;  %v5922_v2 = vld [vmem:[#allocation40_spill] sm:$0xff] }
 0x4d0   :  { %v2323_v20 = vpop.f32.mrf.mxu1 }
 0x4d1   :  { %v2381_v25 = vpack.c.bf16 %v2323_v20, %v2321_v11  ;;  %v2403_v11 = vpop.f32.mrf.mxu2  ;;  %v5937_v20 = vld [vmem:[#allocation55_spill] sm:$0xff] }
 0x4d2   :  { %2738 = vmatmul.bf16.vlgmr.msra.gmra.mxu0 %v5916_v35  ;;  %2609 = vmatmul.bf16.gmra.mxu3 %v5917_v38  ;;  %v5938_v38 = vld [vmem:[#allocation93_spill] sm:$0xff] }
 0x4d5   :  { %2455 = vmatmul.bf16.gmra.mxu2 %v5918_v60  ;;  %v2570_v30 = vpop.f32.mrf.mxu3 }
 0x4d8   :  { %v2326_v12 = vpop.f32.mrf.mxu1 }
 0x4dd   :  { %v2572_v35 = vpop.f32.mrf.mxu3 }
 0x4e0   :  { %v2328_v37 = vpop.f32.mrf.mxu1 }
 0x4e1   :  { %v2382_v58 = vpack.c.bf16 %v2328_v37, %v2326_v12  ;;  %v5939_v12 = vld [vmem:[#allocation87_spill] sm:$0xff]  ;;  %v2406_v37 = vpop.f32.mrf.mxu2 }
 0x4e2   :  { %2743 = vmatmul.bf16.gmra.mxu0 %v5919_v33  ;;  %2614 = vmatmul.bf16.gmra.mxu3 %v4701_v5  ;;  %v5940_v33 = vld [vmem:[#allocation62_spill] sm:$0xff] }
 0x4e5   :  { %2460 = vmatmul.bf16.gmra.mxu2 %v5937_v20  ;;  %v5950_v20 = vld [vmem:[#allocation95_spill] sm:$0xff] }
 0x4e8   :  { %v2331_v53 = vpop.f32.mrf.mxu1 }
 0x4f0   :  { %v2333_v17 = vpop.f32.mrf.mxu1 }
 0x4f2   :  { %2748 = vmatmul.bf16.gmra.mxu0 %v5920_v55  ;;  %2619 = vmatmul.bf16.gmra.mxu3 %v5921_v10  ;;  %v2408_v55 = vpop.f32.mrf.mxu2  ;;  %v5941_v10 = vld [vmem:[#allocation61_spill] sm:$0xff] }
 0x4f5   :  { %2465 = vmatmul.bf16.gmra.mxu2 %v5941_v10 }
 0x4f8   :  { %v2336_v56 = vpop.f32.mrf.mxu1 }
 0x500   :  { %v2338_v3 = vpop.f32.mrf.mxu1 }
 0x501   :  { %v2384_v27 = vpack.c.bf16 %v2338_v3, %v2336_v56  ;;  %v5942_v3 = vld [vmem:[#allocation96_spill] sm:$0xff] }
 0x502   :  { %2753 = vmatmul.bf16.gmra.mxu0 %v5922_v2  ;;  %2624 = vmatmul.bf16.gmra.mxu3 %v4757_v21  ;;  %v2383_v21 = vpack.c.bf16 %v2333_v17, %v2331_v53  ;;  %v2575_v53 = vpop.f32.mrf.mxu3 }
 0x508   :  { %v2341_v43 = vpop.f32.mrf.mxu1 }
 0x50a   :  { %v2577_v56 = vpop.f32.mrf.mxu3 }
 0x510   :  { %v2343_v48 = vpop.f32.mrf.mxu1 }
 0x511   :  { %v2385_v13 = vpack.c.bf16 %v2343_v48, %v2341_v43  ;;  %v5943_v43 = vld [vmem:[#allocation90_spill] sm:$0xff]  ;;  %v5486_v48 = vld [vmem:[%s5644_s5] ss:$0 sm:$0xff] }
 0x512   :  { %2758 = vmatmul.bf16.gmra.mxu0 %v5923_v14  ;;  %2629 = vmatmul.bf16.gmra.mxu3 %v5938_v38  ;;  %v2411_v14 = vpop.f32.mrf.mxu2 }
 0x513   :  { %v2412_v10 = vadd.f32 %v5486_v48, %v2411_v14 }
 0x518   :  { %v2346_v34 = vpop.f32.mrf.mxu1 }
 0x520   :  { %v2348_v63 = vpop.f32.mrf.mxu1 }
 0x521   :  { %v2386_v44 = vpack.c.bf16 %v2348_v63, %v2346_v34  ;;  %v5944_v34 = vld [vmem:[#allocation68_spill] sm:$0xff]  ;;  %v2580_v63 = vpop.f32.mrf.mxu3 }
 0x522   :  { %2763 = vmatmul.bf16.gmra.mxu0 %v5924_v57  ;;  %2634 = vmatmul.bf16.gmra.mxu3 %v5942_v3  ;;  %v2402_v57 = vadd.f32 %v5486_v48, %v2401_v8  ;;  %v5948_v8 = vld [vmem:[#allocation73_spill] sm:$0xff] }
 0x528   :  { %v2351_v5 = vpop.f32.mrf.mxu1 }
 0x530   :  { %v2353_v26 = vpop.f32.mrf.mxu1 }
 0x531   :  { %v2387_v18 = vpack.c.bf16 %v2353_v26, %v2351_v5  ;;  %v2571_v26 = vadd.f32 %v2570_v30, %v2402_v57  ;;  %v5949_v30 = vld [vmem:[#allocation101_spill] sm:$0xff] }
 0x532   :  { %2768 = vmatmul.bf16.gmra.mxu0 %v5925_v16  ;;  %v5945_v16 = vld [vmem:[#allocation67_spill] sm:$0xff] }
 0x533   :  { %2899 = vmatpush.bf16.msra.mxu1 %v2387_v18  ;;  %v2413_v18 = vpop.f32.mrf.mxu2  ;;  %2470 = vmatmul.bf16.gmra.mxu2 %v5945_v16  ;;  %v5952_v16 = vld [vmem:[#allocation8_spill] sm:$0xff] }
 0x537   :  { %2900 = vmatpush.bf16.msra.mxu1 %v2386_v44  ;;  %v2582_v44 = vpop.f32.mrf.mxu3  ;;  %2639 = vmatmul.bf16.gmra.mxu3 %v4842_v7 }
 0x53b   :  { %2901 = vmatpush.bf16.msra.mxu1 %v2385_v13 }
 0x53f   :  { %2902 = vmatpush.bf16.msra.mxu1 %v2384_v27 }
 0x542   :  { %2773 = vmatmul.bf16.gmra.mxu0 %v5926_v9  ;;  %v2404_v9 = vadd.f32 %v5486_v48, %v2403_v11 }
 0x543   :  { %2903 = vmatpush.bf16.msra.mxu1 %v2383_v21  ;;  %v5946_v21 = vld [vmem:[#allocation92_spill] sm:$0xff] }
 0x547   :  { %2904 = vmatpush.bf16.msra.mxu1 %v2382_v58 }
 0x54b   :  { %2905 = vmatpush.bf16.msra.mxu1 %v2381_v25 }
 0x54f   :  { %2906 = vmatpush.bf16.msra.mxu1 %v2380_v4  ;;  %v2739_v59 = vpop.f32.mrf.mxu0  ;;  %v2416_v4 = vpop.f32.mrf.mxu2 }
 0x550   :  { %v2740_v13 = vadd.f32 %v2739_v59, %v2571_v26 }
 0x552   :  { %2907 = vmatmul.bf16.vlgmr.msra.gmra.mxu1 %v5927_v1  ;;  %2778 = vmatmul.bf16.gmra.mxu0 %v5928_v15  ;;  %v5947_v1 = vld [vmem:[#allocation74_spill] sm:$0xff]  ;;  %v2573_v15 = vadd.f32 %v2572_v35, %v2404_v9  ;;  %v2409_v35 = vadd.f32 %v5486_v48, %v2408_v55 }
 0x557   :  { %v2741_v60 = vpop.f32.mrf.mxu0 }
 0x55f   :  { %v2744_v17 = vpop.f32.mrf.mxu0 }
 0x562   :  { %2912 = vmatmul.bf16.gmra.mxu1 %v5929_v51  ;;  %2783 = vmatmul.bf16.gmra.mxu0 %v5930_v23  ;;  %v2585_v51 = vpop.f32.mrf.mxu3  ;;  %v2407_v23 = vadd.f32 %v5486_v48, %v2406_v37 }
 0x567   :  { %v2746_v2 = vpop.f32.mrf.mxu0 }
 0x56f   :  { %v2749_v5 = vpop.f32.mrf.mxu0 }
 0x572   :  { %2917 = vmatmul.bf16.gmra.mxu1 %v5931_v39  ;;  %2788 = vmatmul.bf16.gmra.mxu0 %v5932_v22  ;;  %v2742_v22 = vadd.f32 %v2741_v60, %v2573_v15  ;;  %v5951_v60 = vld [vmem:[#allocation79_spill] sm:$0xff] }
 0x577   :  { %v2751_v27 = vpop.f32.mrf.mxu0 }
 0x57f   :  { %v2754_v39 = vpop.f32.mrf.mxu0 }
 0x582   :  { %2922 = vmatmul.bf16.gmra.mxu1 %v5933_v52  ;;  %2793 = vmatmul.bf16.gmra.mxu0 %v5934_v62  ;;  %v2576_v62 = vadd.f32 %v2575_v53, %v2407_v23  ;;  %v2417_v23 = vadd.f32 %v5486_v48, %v2416_v4 }
 0x584   :  { %v2745_v59 = vadd.f32 %v2744_v17, %v2576_v62  ;;  %v2581_v17 = vadd.f32 %v2580_v63, %v2412_v10 }
 0x587   :  { %v2756_v11 = vpop.f32.mrf.mxu0 }
 0x58f   :  { %v2759_v3 = vpop.f32.mrf.mxu0 }
 0x592   :  { %2927 = vmatmul.bf16.gmra.mxu1 %v5935_v42  ;;  %2798 = vmatmul.bf16.gmra.mxu0 %v5939_v12  ;;  %v2418_v42 = vpop.f32.mrf.mxu2 }
 0x593   :  { %2475 = vmatmul.bf16.gmra.mxu2 %v5948_v8 }
 0x597   :  { %v2761_v9 = vpop.f32.mrf.mxu0 }
 0x59a   :  { %v2421_v37 = vpop.f32.mrf.mxu2 }
 0x59b   :  { %v2422_v10 = vadd.f32 %v5486_v48, %v2421_v37 }
 0x5a2   :  { %2932 = vmatmul.bf16.gmra.mxu1 %v5936_v29  ;;  %2803 = vmatmul.bf16.gmra.mxu0 %v5943_v43  ;;  %v2587_v29 = vpop.f32.mrf.mxu3  ;;  %v2423_v26 = vpop.f32.mrf.mxu2 }
 0x5a3   :  { %2644 = vmatmul.bf16.gmra.mxu3 %v5949_v30  ;;  %2480 = vmatmul.bf16.gmra.mxu2 %v5952_v16  ;;  %v5956_v30 = vld [vmem:[#allocation9_spill] sm:$0xff] }
 0x5aa   :  { %v2590_v53 = vpop.f32.mrf.mxu3 }
 0x5b2   :  { %2937 = vmatmul.bf16.gmra.mxu1 %v5940_v33  ;;  %2808 = vmatmul.bf16.gmra.mxu0 %v5946_v21  ;;  %v2578_v33 = vadd.f32 %v2577_v56, %v2409_v35  ;;  %v2592_v55 = vpop.f32.mrf.mxu3  ;;  %v2750_v21 = vadd.f32 %v2749_v5, %v2581_v17  ;;  %v2414_v56 = vadd.f32 %v5486_v48, %v2413_v18 }
 0x5b3   :  { %v2586_v5 = vadd.f32 %v2585_v51, %v2417_v23 }
 0x5b4   :  { %v2747_v43 = vadd.f32 %v2746_v2, %v2578_v33  ;;  %v5955_v2 = vld [vmem:[#allocation84_spill] sm:$0xff]  ;;  %v2583_v63 = vadd.f32 %v2582_v44, %v2414_v56  ;;  %v2419_v44 = vadd.f32 %v5486_v48, %v2418_v42 }
 0x5b6   :  { %v2588_v51 = vadd.f32 %v2587_v29, %v2419_v44  ;;  %v2424_v29 = vadd.f32 %v5486_v48, %v2423_v26 }
 0x5ba   :  { %v2595_v15 = vpop.f32.mrf.mxu3 }
 0x5c2   :  { %2942 = vmatmul.bf16.gmra.mxu1 %v5944_v34  ;;  %2813 = vmatmul.bf16.gmra.mxu0 %v5950_v20  ;;  %v2597_v18 = vpop.f32.mrf.mxu3  ;;  %v2755_v20 = vadd.f32 %v2754_v39, %v2586_v5  ;;  %v2591_v39 = vadd.f32 %v2590_v53, %v2422_v10  ;;  %v2593_v53 = vadd.f32 %v2592_v55, %v2424_v29 }
 0x5ca   :  { %v2600_v33 = vpop.f32.mrf.mxu3 }
 0x5cf   :  { %v2908_v58 = vpop.f32.mrf.mxu1 }
 0x5d0   :  { %v2909_v25 = vadd.f32 %v2908_v58, %v2740_v13  ;;  %v5953_v13 = vld [vmem:[#allocation104_spill] sm:$0xff]  ;;  %v5954_v58 = vld [vmem:[#allocation98_spill] sm:$0xff] }
 0x5d1   :  { %2649 = vmatmul.bf16.gmra.mxu3 %v5953_v13  ;;  %v5960_v13 = vld [vmem:[#allocation10_spill] sm:$0xff] }
 0x5d2   :  { %3068 = vst [vmem:[#allocation5] sm:$0xff] %v2909_v25  ;;  %2947 = vmatmul.bf16.gmra.mxu1 %v5947_v1  ;;  %2818 = vmatmul.bf16.gmra.mxu0 %v5954_v58  ;;  %v2426_v1 = vpop.f32.mrf.mxu2  ;;  %v2602_v42 = vpop.f32.mrf.mxu3  ;;  %v2760_v58 = vadd.f32 %v2759_v3, %v2591_v39 }
 0x5d3   :  { %v2427_v23 = vadd.f32 %v5486_v48, %v2426_v1 }
 0x5d5   :  { %v2596_v3 = vadd.f32 %v2595_v15, %v2427_v23 }
 0x5d7   :  { %v2910_v52 = vpop.f32.mrf.mxu1 }
 0x5d8   :  { %v2911_v7 = vadd.f32 %v2910_v52, %v2742_v22  ;;  %v2764_v22 = vpop.f32.mrf.mxu0  ;;  %v2752_v52 = vadd.f32 %v2751_v27, %v2583_v63  ;;  %v5959_v27 = vld [vmem:[#allocation86_spill] sm:$0xff] }
 0x5da   :  { %3069 = vst [vmem:[#allocation5 + $0x8] sm:$0xff] %v2911_v7  ;;  %v2428_v8 = vpop.f32.mrf.mxu2  ;;  %2485 = vmatmul.bf16.gmra.mxu2 %v5956_v30  ;;  %v2605_v63 = vpop.f32.mrf.mxu3 }
 0x5db   :  { %v2429_v55 = vadd.f32 %v5486_v48, %v2428_v8 }
 0x5dd   :  { %v2598_v15 = vadd.f32 %v2597_v18, %v2429_v55 }
 0x5df   :  { %v2913_v38 = vpop.f32.mrf.mxu1 }
 0x5e0   :  { %v2914_v12 = vadd.f32 %v2913_v38, %v2745_v59  ;;  %v5957_v59 = vld [vmem:[#allocation107_spill] sm:$0xff]  ;;  %v2766_v35 = vpop.f32.mrf.mxu0  ;;  %v5958_v38 = vld [vmem:[#allocation100_spill] sm:$0xff] }
 0x5e1   :  { %2654 = vmatmul.bf16.gmra.mxu3 %v5957_v59  ;;  %v5964_v59 = vld [vmem:[#allocation11_spill] sm:$0xff] }
 0x5e2   :  { %3070 = vst [vmem:[#allocation5 + $0x10] sm:$0xff] %v2914_v12  ;;  %2952 = vmatmul.bf16.gmra.mxu1 %v5951_v60  ;;  %2823 = vmatmul.bf16.gmra.mxu0 %v5958_v38  ;;  %v2431_v60 = vpop.f32.mrf.mxu2  ;;  %v2607_v26 = vpop.f32.mrf.mxu3  ;;  %v2765_v38 = vadd.f32 %v2764_v22, %v2596_v3 }
 0x5e3   :  { %v2432_v10 = vadd.f32 %v5486_v48, %v2431_v60 }
 0x5e5   :  { %v2601_v22 = vadd.f32 %v2600_v33, %v2432_v10 }
 0x5e7   :  { %v2915_v34 = vpop.f32.mrf.mxu1 }
 0x5e8   :  { %v2916_v57 = vadd.f32 %v2915_v34, %v2747_v43  ;;  %v2769_v43 = vpop.f32.mrf.mxu0  ;;  %v2757_v34 = vadd.f32 %v2756_v11, %v2588_v51  ;;  %v5963_v11 = vld [vmem:[#allocation89_spill] sm:$0xff] }
 0x5ea   :  { %3071 = vst [vmem:[#allocation5 + $0x18] sm:$0xff] %v2916_v57  ;;  %v2433_v16 = vpop.f32.mrf.mxu2  ;;  %2490 = vmatmul.bf16.gmra.mxu2 %v5960_v13  ;;  %v2610_v51 = vpop.f32.mrf.mxu3 }
 0x5eb   :  { %v2434_v18 = vadd.f32 %v5486_v48, %v2433_v16 }
 0x5ed   :  { %v2603_v33 = vadd.f32 %v2602_v42, %v2434_v18 }
 0x5ef   :  { %v2918_v25 = vpop.f32.mrf.mxu1 }
 0x5f0   :  { %v2919_v14 = vadd.f32 %v2918_v25, %v2750_v21  ;;  %v5961_v21 = vld [vmem:[#allocation110_spill] sm:$0xff]  ;;  %v2771_v56 = vpop.f32.mrf.mxu0  ;;  %v5962_v25 = vld [vmem:[#allocation103_spill] sm:$0xff] }
 0x5f1   :  { %2659 = vmatmul.bf16.gmra.mxu3 %v5961_v21  ;;  %v5968_v21 = vld [vmem:[#allocation12_spill] sm:$0xff] }
 0x5f2   :  { %3072 = vst [vmem:[#allocation5 + $0x20] sm:$0xff] %v2919_v14  ;;  %2957 = vmatmul.bf16.gmra.mxu1 %v5955_v2  ;;  %2828 = vmatmul.bf16.gmra.mxu0 %v5962_v25  ;;  %v2436_v2 = vpop.f32.mrf.mxu2  ;;  %v2612_v8 = vpop.f32.mrf.mxu3  ;;  %v2770_v25 = vadd.f32 %v2769_v43, %v2601_v22 }
 0x5f3   :  { %v2437_v23 = vadd.f32 %v5486_v48, %v2436_v2 }
 0x5f5   :  { %v2606_v43 = vadd.f32 %v2605_v63, %v2437_v23 }
 0x5f7   :  { %v2920_v7 = vpop.f32.mrf.mxu1 }
 0x5f8   :  { %v2921_v62 = vadd.f32 %v2920_v7, %v2752_v52  ;;  %v2774_v52 = vpop.f32.mrf.mxu0  ;;  %v2762_v7 = vadd.f32 %v2761_v9, %v2593_v53  ;;  %v5967_v9 = vld [vmem:[#allocation91_spill] sm:$0xff] }
 0x5fa   :  { %3073 = vst [vmem:[#allocation5 + $0x28] sm:$0xff] %v2921_v62  ;;  %v2438_v30 = vpop.f32.mrf.mxu2  ;;  %2495 = vmatmul.bf16.gmra.mxu2 %v5964_v59  ;;  %v2615_v53 = vpop.f32.mrf.mxu3 }
 0x5fb   :  { %v2439_v42 = vadd.f32 %v5486_v48, %v2438_v30 }
 0x5fd   :  { %v2608_v63 = vadd.f32 %v2607_v26, %v2439_v42 }
 0x5ff   :  { %v2923_v12 = vpop.f32.mrf.mxu1 }
 0x600   :  { %v2924_v4 = vadd.f32 %v2923_v12, %v2755_v20  ;;  %v5965_v20 = vld [vmem:[#allocation113_spill] sm:$0xff]  ;;  %v2776_v44 = vpop.f32.mrf.mxu0  ;;  %v5966_v12 = vld [vmem:[#allocation106_spill] sm:$0xff] }
 0x601   :  { %2664 = vmatmul.bf16.gmra.mxu3 %v5965_v20  ;;  %v5972_v20 = vld [vmem:[#allocation13_spill] sm:$0xff] }
 0x602   :  { %3074 = vst [vmem:[#allocation5 + $0x30] sm:$0xff] %v2924_v4  ;;  %2962 = vmatmul.bf16.gmra.mxu1 %v5959_v27  ;;  %2833 = vmatmul.bf16.gmra.mxu0 %v5966_v12  ;;  %v2441_v27 = vpop.f32.mrf.mxu2  ;;  %v2617_v16 = vpop.f32.mrf.mxu3  ;;  %v2775_v12 = vadd.f32 %v2774_v52, %v2606_v43 }
 0x603   :  { %v2442_v10 = vadd.f32 %v5486_v48, %v2441_v27 }
 0x605   :  { %v2611_v52 = vadd.f32 %v2610_v51, %v2442_v10 }
 0x607   :  { %v2925_v57 = vpop.f32.mrf.mxu1 }
 0x608   :  { %v2926_v17 = vadd.f32 %v2925_v57, %v2757_v34  ;;  %v2779_v34 = vpop.f32.mrf.mxu0  ;;  %v2767_v57 = vadd.f32 %v2766_v35, %v2598_v15  ;;  %v5971_v35 = vld [vmem:[#allocation94_spill] sm:$0xff] }
 0x60a   :  { %3075 = vst [vmem:[#allocation5 + $0x38] sm:$0xff] %v2926_v17  ;;  %v2443_v13 = vpop.f32.mrf.mxu2  ;;  %2500 = vmatmul.bf16.gmra.mxu2 %v5968_v21  ;;  %v2620_v15 = vpop.f32.mrf.mxu3 }
 0x60b   :  { %v2444_v26 = vadd.f32 %v5486_v48, %v2443_v13 }
 0x60d   :  { %v2613_v51 = vadd.f32 %v2612_v8, %v2444_v26 }
 0x60f   :  { %v2928_v14 = vpop.f32.mrf.mxu1 }
 0x610   :  { %v2929_v37 = vadd.f32 %v2928_v14, %v2760_v58  ;;  %v5969_v58 = vld [vmem:[#allocation116_spill] sm:$0xff]  ;;  %v2781_v29 = vpop.f32.mrf.mxu0  ;;  %v5970_v14 = vld [vmem:[#allocation109_spill] sm:$0xff] }
 0x611   :  { %2669 = vmatmul.bf16.gmra.mxu3 %v5969_v58  ;;  %v5976_v58 = vld [vmem:[#allocation14_spill] sm:$0xff] }
 0x612   :  { %3076 = vst [vmem:[#allocation5 + $0x40] sm:$0xff] %v2929_v37  ;;  %2967 = vmatmul.bf16.gmra.mxu1 %v5963_v11  ;;  %2838 = vmatmul.bf16.gmra.mxu0 %v5970_v14  ;;  %v2446_v11 = vpop.f32.mrf.mxu2  ;;  %v2622_v30 = vpop.f32.mrf.mxu3  ;;  %v2780_v14 = vadd.f32 %v2779_v34, %v2611_v52 }
 0x613   :  { %v2447_v23 = vadd.f32 %v5486_v48, %v2446_v11 }
 0x615   :  { %v2616_v34 = vadd.f32 %v2615_v53, %v2447_v23 }
 0x617   :  { %v2930_v62 = vpop.f32.mrf.mxu1 }
 0x618   :  { %v2931_v5 = vadd.f32 %v2930_v62, %v2762_v7  ;;  %v2784_v7 = vpop.f32.mrf.mxu0  ;;  %v2772_v62 = vadd.f32 %v2771_v56, %v2603_v33  ;;  %v5975_v56 = vld [vmem:[#allocation97_spill] sm:$0xff] }
 0x61a   :  { %3077 = vst [vmem:[#allocation5 + $0x48] sm:$0xff] %v2931_v5  ;;  %v2448_v59 = vpop.f32.mrf.mxu2  ;;  %2505 = vmatmul.bf16.gmra.mxu2 %v5972_v20  ;;  %v2625_v33 = vpop.f32.mrf.mxu3 }
 0x61b   :  { %v2449_v8 = vadd.f32 %v5486_v48, %v2448_v59 }
 0x61d   :  { %v2618_v53 = vadd.f32 %v2617_v16, %v2449_v8  ;;  %v5989_v8 = vld [vmem:[#allocation124_spill] sm:$0xff] }
 0x61f   :  { %v2933_v4 = vpop.f32.mrf.mxu1 }
 0x620   :  { %v2934_v1 = vadd.f32 %v2933_v4, %v2765_v38  ;;  %v5973_v38 = vld [vmem:[#allocation119_spill] sm:$0xff]  ;;  %v2786_v55 = vpop.f32.mrf.mxu0  ;;  %v5974_v4 = vld [vmem:[#allocation112_spill] sm:$0xff] }
 0x621   :  { %2674 = vmatmul.bf16.gmra.mxu3 %v5973_v38  ;;  %v5980_v38 = vld [vmem:[#allocation15_spill] sm:$0xff] }
 0x622   :  { %3078 = vst [vmem:[#allocation5 + $0x50] sm:$0xff] %v2934_v1  ;;  %2972 = vmatmul.bf16.gmra.mxu1 %v5967_v9  ;;  %2843 = vmatmul.bf16.gmra.mxu0 %v5974_v4  ;;  %v2451_v9 = vpop.f32.mrf.mxu2  ;;  %v2627_v13 = vpop.f32.mrf.mxu3  ;;  %v2785_v4 = vadd.f32 %v2784_v7, %v2616_v34 }
 0x623   :  { %v2452_v10 = vadd.f32 %v5486_v48, %v2451_v9 }
 0x625   :  { %v2621_v7 = vadd.f32 %v2620_v15, %v2452_v10 }
 0x627   :  { %v2935_v17 = vpop.f32.mrf.mxu1 }
 0x628   :  { %v2936_v39 = vadd.f32 %v2935_v17, %v2767_v57  ;;  %v2789_v57 = vpop.f32.mrf.mxu0  ;;  %v2777_v17 = vadd.f32 %v2776_v44, %v2608_v63  ;;  %v5979_v44 = vld [vmem:[#allocation99_spill] sm:$0xff] }
 0x62a   :  { %3079 = vst [vmem:[#allocation5 + $0x58] sm:$0xff] %v2936_v39  ;;  %v2453_v21 = vpop.f32.mrf.mxu2  ;;  %2510 = vmatmul.bf16.gmra.mxu2 %v5976_v58  ;;  %v2630_v63 = vpop.f32.mrf.mxu3 }
 0x62b   :  { %v2454_v16 = vadd.f32 %v5486_v48, %v2453_v21 }
 0x62d   :  { %v2623_v15 = vadd.f32 %v2622_v30, %v2454_v16 }
 0x62f   :  { %v2938_v37 = vpop.f32.mrf.mxu1 }
 0x630   :  { %v2939_v60 = vadd.f32 %v2938_v37, %v2770_v25  ;;  %v5977_v25 = vld [vmem:[#allocation122_spill] sm:$0xff]  ;;  %v2791_v18 = vpop.f32.mrf.mxu0  ;;  %v5978_v37 = vld [vmem:[#allocation115_spill] sm:$0xff] }
 0x631   :  { %2679 = vmatmul.bf16.gmra.mxu3 %v5977_v25  ;;  %v5984_v25 = vld [vmem:[#allocation16_spill] sm:$0xff] }
 0x632   :  { %3080 = vst [vmem:[#allocation5 + $0x60] sm:$0xff] %v2939_v60  ;;  %2977 = vmatmul.bf16.gmra.mxu1 %v5971_v35  ;;  %2848 = vmatmul.bf16.gmra.mxu0 %v5978_v37  ;;  %v2456_v35 = vpop.f32.mrf.mxu2  ;;  %v2632_v59 = vpop.f32.mrf.mxu3  ;;  %v2790_v37 = vadd.f32 %v2789_v57, %v2621_v7  ;;  %v5991_v7 = vld [vmem:[#allocation20_spill] sm:$0xff] }
 0x633   :  { %v2457_v23 = vadd.f32 %v5486_v48, %v2456_v35 }
 0x635   :  { %v2626_v57 = vadd.f32 %v2625_v33, %v2457_v23 }
 0x637   :  { %v2940_v5 = vpop.f32.mrf.mxu1 }
 0x638   :  { %v2941_v3 = vadd.f32 %v2940_v5, %v2772_v62  ;;  %v2794_v62 = vpop.f32.mrf.mxu0  ;;  %v2782_v5 = vadd.f32 %v2781_v29, %v2613_v51  ;;  %v5983_v29 = vld [vmem:[#allocation102_spill] sm:$0xff] }
 0x63a   :  { %3081 = vst [vmem:[#allocation5 + $0x68] sm:$0xff] %v2941_v3  ;;  %v2458_v20 = vpop.f32.mrf.mxu2  ;;  %2515 = vmatmul.bf16.gmra.mxu2 %v5980_v38  ;;  %v2635_v51 = vpop.f32.mrf.mxu3 }
 0x63b   :  { %v2459_v30 = vadd.f32 %v5486_v48, %v2458_v20 }
 0x63d   :  { %v2628_v33 = vadd.f32 %v2627_v13, %v2459_v30 }
 0x63f   :  { %v2943_v1 = vpop.f32.mrf.mxu1 }
 0x640   :  { %v2944_v2 = vadd.f32 %v2943_v1, %v2775_v12  ;;  %v5981_v12 = vld [vmem:[#allocation125_spill] sm:$0xff]  ;;  %v2796_v42 = vpop.f32.mrf.mxu0  ;;  %v5982_v1 = vld [vmem:[#allocation118_spill] sm:$0xff] }
 0x641   :  { %2684 = vmatmul.bf16.gmra.mxu3 %v5981_v12  ;;  %v5988_v12 = vld [vmem:[#allocation18_spill] sm:$0xff] }
 0x642   :  { %3082 = vst [vmem:[#allocation5 + $0x70] sm:$0xff] %v2944_v2  ;;  %2982 = vmatmul.bf16.gmra.mxu1 %v5975_v56  ;;  %2853 = vmatmul.bf16.gmra.mxu0 %v5982_v1  ;;  %v2461_v56 = vpop.f32.mrf.mxu2  ;;  %v2637_v21 = vpop.f32.mrf.mxu3 }
 0x647   :  { %v2945_v39 = vpop.f32.mrf.mxu1 }
 0x648   :  { %v2946_v22 = vadd.f32 %v2945_v39, %v2777_v17  ;;  %v2799_v17 = vpop.f32.mrf.mxu0  ;;  %v2787_v39 = vadd.f32 %v2786_v55, %v2618_v53  ;;  %v5987_v55 = vld [vmem:[#allocation105_spill] sm:$0xff]  ;;  %v2462_v53 = vadd.f32 %v5486_v48, %v2461_v56 }
 0x64a   :  { %3083 = vst [vmem:[#allocation5 + $0x78] sm:$0xff] %v2946_v22  ;;  %v2463_v58 = vpop.f32.mrf.mxu2  ;;  %2520 = vmatmul.bf16.gmra.mxu2 %v5984_v25 }
 0x64b   :  { %v2464_v13 = vadd.f32 %v5486_v48, %v2463_v58 }
 0x64f   :  { %v2948_v60 = vpop.f32.mrf.mxu1 }
 0x650   :  { %v2949_v27 = vadd.f32 %v2948_v60, %v2780_v14  ;;  %v5985_v14 = vld [vmem:[#allocation128_spill] sm:$0xff]  ;;  %v2801_v26 = vpop.f32.mrf.mxu0  ;;  %v5986_v60 = vld [vmem:[#allocation121_spill] sm:$0xff] }
 0x651   :  { %2689 = vmatmul.bf16.gmra.mxu3 %v5985_v14 }
 0x652   :  { %3084 = vst [vmem:[#allocation5 + $0x80] sm:$0xff] %v2949_v27  ;;  %2987 = vmatmul.bf16.gmra.mxu1 %v5979_v44  ;;  %2858 = vmatmul.bf16.gmra.mxu0 %v5986_v60  ;;  %v2466_v44 = vpop.f32.mrf.mxu2 }
 0x657   :  { %v2950_v3 = vpop.f32.mrf.mxu1 }
 0x658   :  { %v2951_v43 = vadd.f32 %v2950_v3, %v2782_v5  ;;  %v2804_v5 = vpop.f32.mrf.mxu0  ;;  %v2792_v3 = vadd.f32 %v2791_v18, %v2623_v15  ;;  %v5990_v18 = vld [vmem:[#allocation108_spill] sm:$0xff] }
 0x65a   :  { %3085 = vst [vmem:[#allocation5 + $0x88] sm:$0xff] %v2951_v43  ;;  %v2468_v38 = vpop.f32.mrf.mxu2  ;;  %2525 = vmatmul.bf16.gmra.mxu2 %v5988_v12 }
 0x65f   :  { %v2953_v2 = vpop.f32.mrf.mxu1 }
 0x660   :  { %v2954_v11 = vadd.f32 %v2953_v2, %v2785_v4  ;;  %v2795_v4 = vadd.f32 %v2794_v62, %v2626_v57  ;;  %v2806_v1 = vpop.f32.mrf.mxu0  ;;  %v2631_v62 = vadd.f32 %v2630_v63, %v2462_v53  ;;  %v2633_v63 = vadd.f32 %v2632_v59, %v2464_v13  ;;  %v5996_v53 = vld [vmem:[#allocation24_spill] sm:$0xff] }
 0x661   :  { %2694 = vmatmul.bf16.gmra.mxu3 %v5166_v41  ;;  %v2469_v59 = vadd.f32 %v5486_v48, %v2468_v38 }
 0x662   :  { %3086 = vst [vmem:[#allocation5 + $0x90] sm:$0xff] %v2954_v11  ;;  %2992 = vmatmul.bf16.gmra.mxu1 %v5983_v29  ;;  %2863 = vmatmul.bf16.gmra.mxu0 %v5989_v8  ;;  %v2471_v11 = vpop.f32.mrf.mxu2  ;;  %v2640_v29 = vpop.f32.mrf.mxu3  ;;  %v2800_v25 = vadd.f32 %v2799_v17, %v2631_v62  ;;  %v2802_v15 = vadd.f32 %v2801_v26, %v2633_v63  ;;  %v5995_v26 = vld [vmem:[#allocation114_spill] sm:$0xff] }
 0x663   :  { %v2472_v30 = vadd.f32 %v5486_v48, %v2471_v11 }
 0x667   :  { %v2955_v22 = vpop.f32.mrf.mxu1 }
 0x668   :  { %v2956_v52 = vadd.f32 %v2955_v22, %v2787_v39  ;;  %v2809_v10 = vpop.f32.mrf.mxu0  ;;  %v2797_v39 = vadd.f32 %v2796_v42, %v2628_v33  ;;  %v5993_v42 = vld [vmem:[#allocation111_spill] sm:$0xff] }
 0x66a   :  { %3087 = vst [vmem:[#allocation5 + $0x98] sm:$0xff] %v2956_v52  ;;  %v2473_v52 = vpop.f32.mrf.mxu2  ;;  %2530 = vmatmul.bf16.gmra.mxu2 %v5991_v7  ;;  %v2642_v20 = vpop.f32.mrf.mxu3 }
 0x66f   :  { %v2958_v27 = vpop.f32.mrf.mxu1 }
 0x670   :  { %v2959_v9 = vadd.f32 %v2958_v27, %v2790_v37  ;;  %v2811_v14 = vpop.f32.mrf.mxu0  ;;  %v5992_v37 = vld [vmem:[#allocation127_spill] sm:$0xff] }
 0x671   :  { %2699 = vmatmul.bf16.gmra.mxu3 %v5202_v45 }
 0x672   :  { %3088 = vst [vmem:[#allocation5 + $0xa0] sm:$0xff] %v2959_v9  ;;  %2997 = vmatmul.bf16.gmra.mxu1 %v5987_v55  ;;  %2868 = vmatmul.bf16.gmra.mxu0 %v5992_v37  ;;  %v2476_v16 = vpop.f32.mrf.mxu2  ;;  %v2645_v27 = vpop.f32.mrf.mxu3  ;;  %v2467_v9 = vadd.f32 %v5486_v48, %v2466_v44 }
 0x673   :  { %v2477_v7 = vadd.f32 %v5486_v48, %v2476_v16 }
 0x674   :  { %v2636_v17 = vadd.f32 %v2635_v51, %v2467_v9  ;;  %v2638_v51 = vadd.f32 %v2637_v21, %v2469_v59  ;;  %v2474_v21 = vadd.f32 %v5486_v48, %v2473_v52  ;;  %v6000_v59 = vld [vmem:[#allocation29_spill] sm:$0xff] }
 0x677   :  { %v2960_v43 = vpop.f32.mrf.mxu1 }
 0x678   :  { %v2961_v34 = vadd.f32 %v2960_v43, %v2792_v3  ;;  %v2814_v55 = vpop.f32.mrf.mxu0  ;;  %v5994_v43 = vld [vmem:[#allocation22_spill] sm:$0xff] }
 0x67a   :  { %3089 = vst [vmem:[#allocation5 + $0xa8] sm:$0xff] %v2961_v34  ;;  %v2478_v3 = vpop.f32.mrf.mxu2  ;;  %2535 = vmatmul.bf16.gmra.mxu2 %v5994_v43  ;;  %v2647_v58 = vpop.f32.mrf.mxu3  ;;  %v2805_v34 = vadd.f32 %v2804_v5, %v2636_v17  ;;  %v2641_v5 = vadd.f32 %v2640_v29, %v2472_v30  ;;  %v2643_v29 = vadd.f32 %v2642_v20, %v2474_v21 }
 0x67b   :  { %v2479_v20 = vadd.f32 %v5486_v48, %v2478_v3 }
 0x67c   :  { %v2810_v38 = vadd.f32 %v2809_v10, %v2641_v5  ;;  %v2812_v37 = vadd.f32 %v2811_v14, %v2643_v29  ;;  %v2646_v10 = vadd.f32 %v2645_v27, %v2477_v7  ;;  %v5999_v14 = vld [vmem:[#allocation120_spill] sm:$0xff] }
 0x67d   :  { %v2648_v27 = vadd.f32 %v2647_v58, %v2479_v20 }
 0x67e   :  { %v2815_v52 = vadd.f32 %v2814_v55, %v2646_v10 }
 0x67f   :  { %v2963_v2 = vpop.f32.mrf.mxu1 }
 0x680   :  { %v2964_v35 = vadd.f32 %v2963_v2, %v2795_v4  ;;  %v2816_v57 = vpop.f32.mrf.mxu0 }
 0x681   :  { %2704 = vmatmul.bf16.gmra.mxu3 %v5245_v50  ;;  %v2817_v17 = vadd.f32 %v2816_v57, %v2648_v27  ;;  %v6001_v57 = vld [vmem:[#allocation123_spill] sm:$0xff] }
 0x682   :  { %3090 = vst [vmem:[#allocation5 + $0xb0] sm:$0xff] %v2964_v35  ;;  %3002 = vmatmul.bf16.gmra.mxu1 %v5990_v18  ;;  %2873 = vmatmul.bf16.gmra.mxu0 %v5160_v61  ;;  %v2481_v4 = vpop.f32.mrf.mxu2  ;;  %v2650_v8 = vpop.f32.mrf.mxu3  ;;  %v2807_v35 = vadd.f32 %v2806_v1, %v2638_v51  ;;  %v5997_v1 = vld [vmem:[#allocation117_spill] sm:$0xff] }
 0x687   :  { %v2965_v22 = vpop.f32.mrf.mxu1 }
 0x688   :  { %v2966_v41 = vadd.f32 %v2965_v22, %v2797_v39  ;;  %v2819_v2 = vpop.f32.mrf.mxu0 }
 0x68a   :  { %3091 = vst [vmem:[#allocation5 + $0xb8] sm:$0xff] %v2966_v41  ;;  %v2483_v33 = vpop.f32.mrf.mxu2  ;;  %2540 = vmatmul.bf16.gmra.mxu2 %v5996_v53  ;;  %v2652_v61 = vpop.f32.mrf.mxu3  ;;  %v6002_v53 = vld [vmem:[#allocation33_spill] sm:$0xff] }
 0x68b   :  { %v2484_v58 = vadd.f32 %v5486_v48, %v2483_v33 }
 0x68d   :  { %v2653_v51 = vadd.f32 %v2652_v61, %v2484_v58 }
 0x68f   :  { %v2968_v60 = vpop.f32.mrf.mxu1 }
 0x690   :  { %v2969_v56 = vadd.f32 %v2968_v60, %v2800_v25  ;;  %v2821_v39 = vpop.f32.mrf.mxu0 }
 0x691   :  { %2709 = vmatmul.bf16.gmra.mxu3 %v5276_v36 }
 0x692   :  { %3092 = vst [vmem:[#allocation5 + $0xc0] sm:$0xff] %v2969_v56  ;;  %3007 = vmatmul.bf16.gmra.mxu1 %v5993_v42  ;;  %2878 = vmatmul.bf16.gmra.mxu0 %v5192_v46  ;;  %v2486_v41 = vpop.f32.mrf.mxu2  ;;  %v2655_v62 = vpop.f32.mrf.mxu3  ;;  %v5998_v56 = vld [vmem:[#allocation26_spill] sm:$0xff] }
 0x693   :  { %v2487_v30 = vadd.f32 %v5486_v48, %v2486_v41 }
 0x697   :  { %v2970_v23 = vpop.f32.mrf.mxu1 }
 0x698   :  { %v2971_v45 = vadd.f32 %v2970_v23, %v2802_v15  ;;  %v2824_v25 = vpop.f32.mrf.mxu0  ;;  %v2482_v23 = vadd.f32 %v5486_v48, %v2481_v4 }
 0x69a   :  { %3093 = vst [vmem:[#allocation5 + $0xc8] sm:$0xff] %v2971_v45  ;;  %v2488_v60 = vpop.f32.mrf.mxu2  ;;  %2545 = vmatmul.bf16.gmra.mxu2 %v5998_v56  ;;  %v2657_v46 = vpop.f32.mrf.mxu3  ;;  %v2651_v55 = vadd.f32 %v2650_v8, %v2482_v23 }
 0x69b   :  { %v2489_v61 = vadd.f32 %v5486_v48, %v2488_v60 }
 0x69c   :  { %v2820_v3 = vadd.f32 %v2819_v2, %v2651_v55  ;;  %v2656_v2 = vadd.f32 %v2655_v62, %v2487_v30 }
 0x69d   :  { %v2658_v41 = vadd.f32 %v2657_v46, %v2489_v61  ;;  %v6004_v46 = vld [vmem:[#allocation129_spill] sm:$0xff] }
 0x69e   :  { %v2825_v33 = vadd.f32 %v2824_v25, %v2656_v2 }
 0x69f   :  { %v2973_v12 = vpop.f32.mrf.mxu1 }
 0x6a0   :  { %v2974_v44 = vadd.f32 %v2973_v12, %v2805_v34  ;;  %v2826_v42 = vpop.f32.mrf.mxu0 }
 0x6a1   :  { %2714 = vmatmul.bf16.gmra.mxu3 %v5305_v31  ;;  %v2827_v7 = vadd.f32 %v2826_v42, %v2658_v41 }
 0x6a2   :  { %3094 = vst [vmem:[#allocation5 + $0xd0] sm:$0xff] %v2974_v44  ;;  %3012 = vmatmul.bf16.gmra.mxu1 %v5995_v26  ;;  %2883 = vmatmul.bf16.gmra.mxu0 %v5232_v19  ;;  %v2491_v9 = vpop.f32.mrf.mxu2  ;;  %v2660_v15 = vpop.f32.mrf.mxu3 }
 0x6a3   :  { %v2492_v29 = vadd.f32 %v5486_v48, %v2491_v9 }
 0x6a5   :  { %v2661_v25 = vadd.f32 %v2660_v15, %v2492_v29 }
 0x6a7   :  { %v2975_v18 = vpop.f32.mrf.mxu1 }
 0x6a8   :  { %v2976_v50 = vadd.f32 %v2975_v18, %v2807_v35  ;;  %v2829_v45 = vpop.f32.mrf.mxu0  ;;  %v2822_v18 = vadd.f32 %v2821_v39, %v2653_v51  ;;  %v6003_v39 = vld [vmem:[#allocation126_spill] sm:$0xff] }
 0x6aa   :  { %3095 = vst [vmem:[#allocation5 + $0xd8] sm:$0xff] %v2976_v50  ;;  %v2493_v34 = vpop.f32.mrf.mxu2  ;;  %2550 = vmatmul.bf16.gmra.mxu2 %v6000_v59  ;;  %v2662_v19 = vpop.f32.mrf.mxu3 }
 0x6ab   :  { %v2494_v60 = vadd.f32 %v5486_v48, %v2493_v34 }
 0x6af   :  { %v2978_v22 = vpop.f32.mrf.mxu1 }
 0x6b0   :  { %v2979_v11 = vadd.f32 %v2978_v22, %v2810_v38  ;;  %v2831_v12 = vpop.f32.mrf.mxu0 }
 0x6b1   :  { %2719 = vmatmul.bf16.gmra.mxu3 %v5323_v49 }
 0x6b2   :  { %3096 = vst [vmem:[#allocation5 + $0xe0] sm:$0xff] %v2979_v11  ;;  %3017 = vmatmul.bf16.gmra.mxu1 %v5997_v1  ;;  %2888 = vmatmul.bf16.gmra.mxu0 %v5266_v40  ;;  %v2496_v26 = vpop.f32.mrf.mxu2  ;;  %v2665_v8 = vpop.f32.mrf.mxu3 }
 0x6b3   :  { %v2497_v42 = vadd.f32 %v5486_v48, %v2496_v26 }
 0x6b5   :  { %v2666_v23 = vadd.f32 %v2665_v8, %v2497_v42 }
 0x6b7   :  { %v2980_v13 = vpop.f32.mrf.mxu1 }
 0x6b8   :  { %v2981_v36 = vadd.f32 %v2980_v13, %v2812_v37  ;;  %v2834_v35 = vpop.f32.mrf.mxu0 }
 0x6ba   :  { %3097 = vst [vmem:[#allocation5 + $0xe8] sm:$0xff] %v2981_v36  ;;  %v2498_v5 = vpop.f32.mrf.mxu2  ;;  %2555 = vmatmul.bf16.gmra.mxu2 %v6002_v53  ;;  %v2667_v40 = vpop.f32.mrf.mxu3  ;;  %v2830_v36 = vadd.f32 %v2829_v45, %v2661_v25 }
 0x6bb   :  { %v2499_v55 = vadd.f32 %v5486_v48, %v2498_v5 }
 0x6bf   :  { %v2983_v63 = vpop.f32.mrf.mxu1 }
 0x6c0   :  { %v2984_v16 = vadd.f32 %v2983_v63, %v2815_v52  ;;  %v2836_v38 = vpop.f32.mrf.mxu0  ;;  %v2663_v63 = vadd.f32 %v2662_v19, %v2494_v60  ;;  %v2668_v19 = vadd.f32 %v2667_v40, %v2499_v55 }
 0x6c1   :  { %2724 = vmatmul.bf16.gmra.mxu3 %v5336_v47 }
 0x6c2   :  { %3098 = vst [vmem:[#allocation5 + $0xf0] sm:$0xff] %v2984_v16  ;;  %3022 = vmatmul.bf16.gmra.mxu1 %v5999_v14  ;;  %2893 = vmatmul.bf16.gmra.mxu0 %v5295_v6  ;;  %v2501_v11 = vpop.f32.mrf.mxu2  ;;  %v2670_v1 = vpop.f32.mrf.mxu3  ;;  %v2832_v14 = vadd.f32 %v2831_v12, %v2663_v63 }
 0x6c3   :  { %v2502_v12 = vadd.f32 %v5486_v48, %v2501_v11 }
 0x6c5   :  { %v2671_v51 = vadd.f32 %v2670_v1, %v2502_v12 }
 0x6c7   :  { %v2985_v43 = vpop.f32.mrf.mxu1 }
 0x6c8   :  { %v2986_v31 = vadd.f32 %v2985_v43, %v2817_v17  ;;  %v2839_v62 = vpop.f32.mrf.mxu0  ;;  %v2835_v43 = vadd.f32 %v2834_v35, %v2666_v23 }
 0x6c9   :  { %v2840_v35 = vadd.f32 %v2839_v62, %v2671_v51 }
 0x6ca   :  { %3099 = vst [vmem:[#allocation5 + $0xf8] sm:$0xff] %v2986_v31  ;;  %v2503_v13 = vpop.f32.mrf.mxu2  ;;  %v2672_v6 = vpop.f32.mrf.mxu3 }
 0x6cf   :  { %v2988_v44 = vpop.f32.mrf.mxu1 }
 0x6d0   :  { %v2989_v4 = vadd.f32 %v2988_v44, %v2820_v3  ;;  %v2841_v10 = vpop.f32.mrf.mxu0 }
 0x6d2   :  { %3100 = vst [vmem:[#allocation5 + $0x100] sm:$0xff] %v2989_v4  ;;  %3027 = vmatmul.bf16.gmra.mxu1 %v6001_v57  ;;  %v2506_v20 = vpop.f32.mrf.mxu2  ;;  %v2675_v16 = vpop.f32.mrf.mxu3  ;;  %v2837_v4 = vadd.f32 %v2836_v38, %v2668_v19 }
 0x6d3   :  { %v2507_v53 = vadd.f32 %v5486_v48, %v2506_v20 }
 0x6d7   :  { %v2990_v50 = vpop.f32.mrf.mxu1 }
 0x6d8   :  { %v2991_v49 = vadd.f32 %v2990_v50, %v2822_v18  ;;  %v2844_v9 = vpop.f32.mrf.mxu0  ;;  %v2504_v18 = vadd.f32 %v5486_v48, %v2503_v13 }
 0x6da   :  { %3101 = vst [vmem:[#allocation5 + $0x108] sm:$0xff] %v2991_v49  ;;  %v2508_v17 = vpop.f32.mrf.mxu2  ;;  %v2677_v45 = vpop.f32.mrf.mxu3 }
 0x6db   :  { %v2509_v41 = vadd.f32 %v5486_v48, %v2508_v17 }
 0x6df   :  { %v2993_v21 = vpop.f32.mrf.mxu1 }
 0x6e0   :  { %v2994_v22 = vadd.f32 %v2993_v21, %v2825_v33  ;;  %v2846_v31 = vpop.f32.mrf.mxu0  ;;  %v2676_v21 = vadd.f32 %v2675_v16, %v2507_v53 }
 0x6e2   :  { %3102 = vst [vmem:[#allocation5 + $0x110] sm:$0xff] %v2994_v22  ;;  %3032 = vmatmul.bf16.gmra.mxu1 %v6003_v39  ;;  %v2511_v3 = vpop.f32.mrf.mxu2  ;;  %v2680_v58 = vpop.f32.mrf.mxu3  ;;  %v2845_v39 = vadd.f32 %v2844_v9, %v2676_v21 }
 0x6e7   :  { %v2995_v37 = vpop.f32.mrf.mxu1 }
 0x6e8   :  { %v2996_v47 = vadd.f32 %v2995_v37, %v2827_v7  ;;  %v2849_v44 = vpop.f32.mrf.mxu0  ;;  %v2512_v37 = vadd.f32 %v5486_v48, %v2511_v3 }
 0x6ea   :  { %3103 = vst [vmem:[#allocation5 + $0x118] sm:$0xff] %v2996_v47  ;;  %v2513_v8 = vpop.f32.mrf.mxu2  ;;  %v2682_v30 = vpop.f32.mrf.mxu3 }
 0x6ef   :  { %v2998_v56 = vpop.f32.mrf.mxu1 }
 0x6f0   :  { %v2999_v52 = vadd.f32 %v2998_v56, %v2830_v36  ;;  %v2851_v49 = vpop.f32.mrf.mxu0  ;;  %v2681_v36 = vadd.f32 %v2680_v58, %v2512_v37 }
 0x6f2   :  { %3104 = vst [vmem:[#allocation5 + $0x120] sm:$0xff] %v2999_v52  ;;  %3037 = vmatmul.bf16.gmra.mxu1 %v6004_v46  ;;  %v2516_v5 = vpop.f32.mrf.mxu2  ;;  %v2685_v40 = vpop.f32.mrf.mxu3  ;;  %v2850_v60 = vadd.f32 %v2849_v44, %v2681_v36  ;;  %v2514_v52 = vadd.f32 %v5486_v48, %v2513_v8 }
 0x6f3   :  { %v2517_v42 = vadd.f32 %v5486_v48, %v2516_v5 }
 0x6f5   :  { %v2686_v23 = vadd.f32 %v2685_v40, %v2517_v42 }
 0x6f7   :  { %v3000_v27 = vpop.f32.mrf.mxu1 }
 0x6f8   :  { %v3001_v15 = vadd.f32 %v3000_v27, %v2832_v14  ;;  %v2854_v22 = vpop.f32.mrf.mxu0 }
 0x6fa   :  { %3105 = vst [vmem:[#allocation5 + $0x128] sm:$0xff] %v3001_v15  ;;  %v2518_v11 = vpop.f32.mrf.mxu2  ;;  %v2687_v29 = vpop.f32.mrf.mxu3 }
 0x6ff   :  { %v3003_v34 = vpop.f32.mrf.mxu1 }
 0x700   :  { %v3004_v59 = vadd.f32 %v3003_v34, %v2835_v43  ;;  %v2856_v7 = vpop.f32.mrf.mxu0 }
 0x702   :  { %3106 = vst [vmem:[#allocation5 + $0x130] sm:$0xff] %v3004_v59  ;;  %3042 = vmatmul.bf16.gmra.mxu1 %v5177_v24  ;;  %v2673_v24 = vadd.f32 %v2672_v6, %v2504_v18  ;;  %v2521_v47 = vpop.f32.mrf.mxu2 }
 0x703   :  { %v2522_v19 = vadd.f32 %v5486_v48, %v2521_v47 }
 0x704   :  { %v2842_v33 = vadd.f32 %v2841_v10, %v2673_v24  ;;  %v2690_v10 = vpop.f32.mrf.mxu3 }
 0x707   :  { %v3005_v26 = vpop.f32.mrf.mxu1 }
 0x708   :  { %v3006_v57 = vadd.f32 %v3005_v26, %v2837_v4  ;;  %v2859_v56 = vpop.f32.mrf.mxu0  ;;  %v2691_v26 = vadd.f32 %v2690_v10, %v2522_v19 }
 0x70a   :  { %3107 = vst [vmem:[#allocation5 + $0x138] sm:$0xff] %v3006_v57  ;;  %v2523_v46 = vpop.f32.mrf.mxu2  ;;  %v2860_v51 = vadd.f32 %v2859_v56, %v2691_v26 }
 0x70c   :  { %v2692_v16 = vpop.f32.mrf.mxu3 }
 0x70f   :  { %v3008_v50 = vpop.f32.mrf.mxu1 }
 0x710   :  { %v3009_v2 = vadd.f32 %v3008_v50, %v2840_v35  ;;  %v2861_v27 = vpop.f32.mrf.mxu0 }
 0x712   :  { %3108 = vst [vmem:[#allocation5 + $0x140] sm:$0xff] %v3009_v2  ;;  %3047 = vmatmul.bf16.gmra.mxu1 %v5215_v0  ;;  %v2678_v0 = vadd.f32 %v2677_v45, %v2509_v41  ;;  %v2526_v17 = vpop.f32.mrf.mxu2  ;;  %v2855_v45 = vadd.f32 %v2854_v22, %v2686_v23 }
 0x714   :  { %v2847_v25 = vadd.f32 %v2846_v31, %v2678_v0  ;;  %v2695_v43 = vpop.f32.mrf.mxu3  ;;  %v2519_v31 = vadd.f32 %v5486_v48, %v2518_v11 }
 0x717   :  { %v3010_v38 = vpop.f32.mrf.mxu1 }
 0x718   :  { %v3011_v61 = vadd.f32 %v3010_v38, %v2842_v33  ;;  %v2864_v59 = vpop.f32.mrf.mxu0 }
 0x71a   :  { %3109 = vst [vmem:[#allocation5 + $0x148] sm:$0xff] %v3011_v61  ;;  %v2528_v3 = vpop.f32.mrf.mxu2 }
 0x71c   :  { %v2697_v44 = vpop.f32.mrf.mxu3 }
 0x71f   :  { %v3013_v1 = vpop.f32.mrf.mxu1 }
 0x720   :  { %v3014_v62 = vadd.f32 %v3013_v1, %v2845_v39  ;;  %v2866_v57 = vpop.f32.mrf.mxu0 }
 0x722   :  { %3110 = vst [vmem:[#allocation5 + $0x150] sm:$0xff] %v3014_v62  ;;  %3052 = vmatmul.bf16.gmra.mxu1 %v5255_v54  ;;  %v2683_v54 = vadd.f32 %v2682_v30, %v2514_v52  ;;  %v2531_v8 = vpop.f32.mrf.mxu2  ;;  %v5619_v30 = vld [vmem:[%s5644_s5] ss:$0 sm:$0xff]  ;;  %s4108_s5 = smov [#allocation5]  }
 0x723   :  { %v2529_v21 = vadd.f32 %v5619_v30, %v2528_v3  ;;  %s3136_s13 = sshll.u32 %s4108_s5, 4  ;;  %s3137_s13 = int_to_ptr.vmem [resolvable:$true] %s3136_s13 }
 0x724   :  { %v2852_v9 = vadd.f32 %v2851_v49, %v2683_v54  ;;  %v2700_v50 = vpop.f32.mrf.mxu3  ;;  %v2527_v49 = vadd.f32 %v5619_v30, %v2526_v17 }
 0x725   :  { %v2698_v1 = vadd.f32 %v2697_v44, %v2529_v21 }
 0x726   :  { %v2696_v33 = vadd.f32 %v2695_v43, %v2527_v49 }
 0x727   :  { %v3015_v13 = vpop.f32.mrf.mxu1  ;;  %v2867_v0 = vadd.f32 %v2866_v57, %v2698_v1 }
 0x728   :  { %v3016_v6 = vadd.f32 %v3015_v13, %v2847_v25  ;;  %v2869_v2 = vpop.f32.mrf.mxu0  ;;  %v2865_v61 = vadd.f32 %v2864_v59, %v2696_v33 }
 0x72a   :  { %3111 = vst [vmem:[#allocation5 + $0x158] sm:$0xff] %v3016_v6  ;;  %v2533_v53 = vpop.f32.mrf.mxu2 }
 0x72b   :  { %v2534_v36 = vadd.f32 %v5619_v30, %v2533_v53 }
 0x72c   :  { %v2702_v38 = vpop.f32.mrf.mxu3 }
 0x72d   :  { %v2703_v52 = vadd.f32 %v2702_v38, %v2534_v36 }
 0x72f   :  { %v3018_v20 = vpop.f32.mrf.mxu1 }
 0x730   :  { %v3019_v63 = vadd.f32 %v3018_v20, %v2850_v60  ;;  %v2871_v11 = vpop.f32.mrf.mxu0 }
 0x731   :  { %v2872_v54 = vadd.f32 %v2871_v11, %v2703_v52 }
 0x732   :  { %3112 = vst [vmem:[#allocation5 + $0x160] sm:$0xff] %v3019_v63  ;;  %3057 = vmatmul.bf16.gmra.mxu1 %v5286_v28  ;;  %v2688_v28 = vadd.f32 %v2687_v29, %v2519_v31  ;;  %v2536_v41 = vpop.f32.mrf.mxu2  ;;  %v2532_v29 = vadd.f32 %v5619_v30, %v2531_v8 }
 0x734   :  { %v2857_v58 = vadd.f32 %v2856_v7, %v2688_v28  ;;  %v2705_v62 = vpop.f32.mrf.mxu3  ;;  %v2701_v47 = vadd.f32 %v2700_v50, %v2532_v29 }
 0x736   :  { %v2870_v6 = vadd.f32 %v2869_v2, %v2701_v47 }
 0x737   :  { %v3020_v14 = vpop.f32.mrf.mxu1 }
 0x738   :  { %v3021_v15 = vadd.f32 %v3020_v14, %v2852_v9  ;;  %v2874_v25 = vpop.f32.mrf.mxu0 }
 0x73a   :  { %3113 = vst [vmem:[#allocation5 + $0x168] sm:$0xff] %v3021_v15  ;;  %v2538_v13 = vpop.f32.mrf.mxu2 }
 0x73b   :  { %v2539_v23 = vadd.f32 %v5619_v30, %v2538_v13 }
 0x73c   :  { %v2707_v60 = vpop.f32.mrf.mxu3 }
 0x73d   :  { %v2708_v31 = vadd.f32 %v2707_v60, %v2539_v23 }
 0x73f   :  { %v3023_v55 = vpop.f32.mrf.mxu1 }
 0x740   :  { %v3024_v34 = vadd.f32 %v3023_v55, %v2855_v45  ;;  %v2876_v20 = vpop.f32.mrf.mxu0 }
 0x741   :  { %v2877_v59 = vadd.f32 %v2876_v20, %v2708_v31 }
 0x742   :  { %3114 = vst [vmem:[#allocation5 + $0x170] sm:$0xff] %v3024_v34  ;;  %3062 = vmatmul.bf16.gmra.mxu1 %v5311_v32  ;;  %v2524_v32 = vadd.f32 %v5619_v30, %v2523_v46  ;;  %v2537_v46 = vadd.f32 %v5619_v30, %v2536_v41  ;;  %v2541_v63 = vpop.f32.mrf.mxu2 }
 0x743   :  { %v2542_v34 = vadd.f32 %v5619_v30, %v2541_v63 }
 0x744   :  { %v2693_v48 = vadd.f32 %v2692_v16, %v2524_v32  ;;  %v2706_v9 = vadd.f32 %v2705_v62, %v2537_v46  ;;  %v2710_v14 = vpop.f32.mrf.mxu3 }
 0x746   :  { %v2862_v5 = vadd.f32 %v2861_v27, %v2693_v48  ;;  %v2875_v27 = vadd.f32 %v2874_v25, %v2706_v9 }
 0x747   :  { %v3025_v12 = vpop.f32.mrf.mxu1 }
 0x748   :  { %v3026_v4 = vadd.f32 %v3025_v12, %v2857_v58  ;;  %v2879_v15 = vpop.f32.mrf.mxu0  ;;  %v2711_v58 = vadd.f32 %v2710_v14, %v2542_v34 }
 0x74a   :  { %3115 = vst [vmem:[#allocation5 + $0x178] sm:$0xff] %v3026_v4  ;;  %v2543_v45 = vpop.f32.mrf.mxu2  ;;  %v2880_v44 = vadd.f32 %v2879_v15, %v2711_v58 }
 0x74b   :  { %v2544_v26 = vadd.f32 %v5619_v30, %v2543_v45 }
 0x74c   :  { %v2712_v55 = vpop.f32.mrf.mxu3 }
 0x74d   :  { %v2713_v32 = vadd.f32 %v2712_v55, %v2544_v26 }
 0x74f   :  { %v3028_v35 = vpop.f32.mrf.mxu1 }
 0x750   :  { %v3029_v18 = vadd.f32 %v3028_v35, %v2860_v51  ;;  %v2881_v3 = vpop.f32.mrf.mxu0 }
 0x751   :  { %v2882_v50 = vadd.f32 %v2881_v3, %v2713_v32 }
 0x752   :  { %3116 = vst [vmem:[#allocation5 + $0x180] sm:$0xff] %v3029_v18  ;;  %v2546_v12 = vpop.f32.mrf.mxu2 }
 0x753   :  { %v2547_v18 = vadd.f32 %v5619_v30, %v2546_v12 }
 0x754   :  { %v2715_v4 = vpop.f32.mrf.mxu3 }
 0x757   :  { %v3030_v24 = vpop.f32.mrf.mxu1 }
 0x758   :  { %v3031_v40 = vadd.f32 %v3030_v24, %v2862_v5  ;;  %v2884_v8 = vpop.f32.mrf.mxu0  ;;  %v2716_v5 = vadd.f32 %v2715_v4, %v2547_v18 }
 0x75a   :  { %3117 = vst [vmem:[#allocation5 + $0x188] sm:$0xff] %v3031_v40  ;;  %v2548_v35 = vpop.f32.mrf.mxu2  ;;  %v2885_v53 = vadd.f32 %v2884_v8, %v2716_v5 }
 0x75b   :  { %v2549_v33 = vadd.f32 %v5619_v30, %v2548_v35 }
 0x75c   :  { %v2717_v49 = vpop.f32.mrf.mxu3 }
 0x75f   :  { %v3033_v22 = vpop.f32.mrf.mxu1 }
 0x760   :  { %v3034_v39 = vadd.f32 %v3033_v22, %v2865_v61  ;;  %v2886_v24 = vpop.f32.mrf.mxu0  ;;  %v2718_v22 = vadd.f32 %v2717_v49, %v2549_v33 }
 0x762   :  { %3118 = vst [vmem:[#allocation5 + $0x190] sm:$0xff] %v3034_v39  ;;  %v2551_v40 = vpop.f32.mrf.mxu2  ;;  %v2887_v41 = vadd.f32 %v2886_v24, %v2718_v22 }
 0x763   :  { %v2552_v11 = vadd.f32 %v5619_v30, %v2551_v40 }
 0x764   :  { %v2720_v21 = vpop.f32.mrf.mxu3 }
 0x767   :  { %v3035_v7 = vpop.f32.mrf.mxu1 }
 0x768   :  { %v3036_v37 = vadd.f32 %v3035_v7, %v2867_v0  ;;  %v2889_v39 = vpop.f32.mrf.mxu0  ;;  %v2721_v0 = vadd.f32 %v2720_v21, %v2552_v11 }
 0x76a   :  { %3119 = vst [vmem:[#allocation5 + $0x198] sm:$0xff] %v3036_v37  ;;  %v2553_v29 = vpop.f32.mrf.mxu2  ;;  %v2890_v37 = vadd.f32 %v2889_v39, %v2721_v0 }
 0x76b   :  { %v2554_v47 = vadd.f32 %v5619_v30, %v2553_v29 }
 0x76c   :  { %v2722_v7 = vpop.f32.mrf.mxu3 }
 0x76f   :  { %v3038_v10 = vpop.f32.mrf.mxu1 }
 0x770   :  { %v3039_v56 = vadd.f32 %v3038_v10, %v2870_v6  ;;  %v2891_v13 = vpop.f32.mrf.mxu0  ;;  %v2723_v10 = vadd.f32 %v2722_v7, %v2554_v47 }
 0x772   :  { %3120 = vst [vmem:[#allocation5 + $0x1a0] sm:$0xff] %v3039_v56  ;;  %v2556_v36 = vpop.f32.mrf.mxu2  ;;  %v2892_v52 = vadd.f32 %v2891_v13, %v2723_v10 }
 0x773   :  { %v2557_v60 = vadd.f32 %v5619_v30, %v2556_v36 }
 0x774   :  { %v2725_v56 = vpop.f32.mrf.mxu3 }
 0x775   :  { %v2726_v63 = vadd.f32 %v2725_v56, %v2557_v60 }
 0x777   :  { %v3040_v16 = vpop.f32.mrf.mxu1 }
 0x778   :  { %v3041_v42 = vadd.f32 %v3040_v16, %v2872_v54  ;;  %v2894_v54 = vpop.f32.mrf.mxu0 }
 0x77a   :  { %3121 = vst [vmem:[#allocation5 + $0x1a8] sm:$0xff] %v3041_v42  ;;  %v2558_v16 = vpop.f32.mrf.mxu2  ;;  %v2895_v42 = vadd.f32 %v2894_v54, %v2726_v63 }
 0x77b   :  { %v2559_v9 = vadd.f32 %v5619_v30, %v2558_v16 }
 0x77f   :  { %v3043_v17 = vpop.f32.mrf.mxu1 }
 0x780   :  { %v3044_v43 = vadd.f32 %v3043_v17, %v2875_v27  ;;  %v2727_v27 = vpop.f32.mrf.mxu3  ;;  %v2896_v17 = vpop.f32.mrf.mxu0 }
 0x781   :  { %v2728_v23 = vadd.f32 %v2727_v27, %v2559_v9 }
 0x782   :  { %3122 = vst [vmem:[#allocation5 + $0x1b0] sm:$0xff] %v3044_v43 }
 0x783   :  { %v2897_v45 = vadd.f32 %v2896_v17, %v2728_v23 }
 0x787   :  { %v3045_v28 = vpop.f32.mrf.mxu1 }
 0x788   :  { %v3046_v19 = vadd.f32 %v3045_v28, %v2877_v59 }
 0x78a   :  { %3123 = vst [vmem:[#allocation5 + $0x1b8] sm:$0xff] %v3046_v19 }
 0x78f   :  { %v3048_v57 = vpop.f32.mrf.mxu1 }
 0x790   :  { %v3049_v51 = vadd.f32 %v3048_v57, %v2880_v44 }
 0x792   :  { %3124 = vst [vmem:[#allocation5 + $0x1c0] sm:$0xff] %v3049_v51 }
 0x797   :  { %v3050_v48 = vpop.f32.mrf.mxu1 }
 0x798   :  { %v3051_v2 = vadd.f32 %v3050_v48, %v2882_v50 }
 0x79a   :  { %3125 = vst [vmem:[#allocation5 + $0x1c8] sm:$0xff] %v3051_v2 }
 0x79f   :  { %v3053_v38 = vpop.f32.mrf.mxu1 }
 0x7a0   :  { %v3054_v61 = vadd.f32 %v3053_v38, %v2885_v53 }
 0x7a2   :  { %3126 = vst [vmem:[#allocation5 + $0x1d0] sm:$0xff] %v3054_v61 }
 0x7a7   :  { %v3055_v1 = vpop.f32.mrf.mxu1 }
 0x7a8   :  { %v3056_v62 = vadd.f32 %v3055_v1, %v2887_v41 }
 0x7aa   :  { %3127 = vst [vmem:[#allocation5 + $0x1d8] sm:$0xff] %v3056_v62 }
 0x7af   :  { %v3058_v25 = vpop.f32.mrf.mxu1 }
 0x7b0   :  { %v3059_v6 = vadd.f32 %v3058_v25, %v2890_v37 }
 0x7b2   :  { %3128 = vst [vmem:[#allocation5 + $0x1e0] sm:$0xff] %v3059_v6 }
 0x7b7   :  { %v3060_v20 = vpop.f32.mrf.mxu1 }
 0x7b8   :  { %v3061_v46 = vadd.f32 %v3060_v20, %v2892_v52 }
 0x7ba   :  { %3129 = vst [vmem:[#allocation5 + $0x1e8] sm:$0xff] %v3061_v46 }
 0x7bf   :  { %v3063_v14 = vpop.f32.mrf.mxu1 }
 0x7c0   :  { %v3064_v15 = vadd.f32 %v3063_v14, %v2895_v42 }
 0x7c2   :  { %3130 = vst [vmem:[#allocation5 + $0x1f0] sm:$0xff] %v3064_v15 }
 0x7c7   :  { %v3065_v43 = vpop.f32.mrf.mxu1 }
 0x7c8   :  { %v3066_v31 = vadd.f32 %v3065_v43, %v2897_v45 }
 0x7ca   :  { %3131 = vst [vmem:[#allocation5 + $0x1f8] sm:$0xff] %v3066_v31 }
 0x7cb   :  { %3144 = dma.vmem_to_hbm [thread:$0]  %s3137_s13, 8192, %s3139_s16, [#allocation4], %s4109_s17, %s4109_s17, %s4110_s1  }
 0x7cc   :  { %4103 = dma.done.wait [#allocation4], 8192  }
 0x7cd   :  { %4104 = vsyncadd [#allocation4], 4294959104 }
 0x7ce   :  { %3149 = vsyncpa [#allocation3], 1 }
 0x7cf   :  { %3150 = vsyncpa [#allocation4], 1 }

</bundles_post_ra>
